<compile_context>
chip_gen: v7x
topology: tpu7x:2x2x1
jax: 0.10.0
libtpu: 0.0.40
codegen_flags: <defaults>
</compile_context>

<pallas_src>
import jax
import jax.numpy as jnp
from jax import lax
from jax.experimental import pallas as pl
from jax.experimental.pallas import tpu as pltpu

NEG_SLOPE = 0.01          # F.leaky_relu default negative_slope
DILATIONS = (1, 3, 9)     # convs1 dilations; convs2 are all dilation=1
KSIZE = 3
HALO = 128                # lane-aligned halo width (>= 16-sample receptive halo)


def _round_up(n, m):
    return ((n + m - 1) // m) * m


def _leaky_relu(x):
    # max(x, a*x) == leaky_relu(x) for 0 < a < 1: 2 VPU ops instead of cmp+sel+mul.
    return jnp.maximum(x, NEG_SLOPE * x)


def _pick_l_tile(C, L, vmem_budget_bytes):
    """Largest 128-multiple length tile whose per-step VMEM footprint fits the budget."""
    l_cap = max(128, _round_up(L, 128))
    best = 128
    for lt in (128, 256, 512, 1024, 2048, 4096):
        if lt > l_cap:
            break
        win = lt + 2 * HALO
        est = (
            2 * 2 * C * (lt + 2 * HALO)      # bf16 input blocks, double-buffered
            + 2 * 4 * C * lt                 # f32 output block, double-buffered
            + 2 * 6 * C * 3 * C              # bf16 weight slab (single buffer)
            + 4 * 6 * C                      # f32 bias slab
            + 4 * 6 * C * win                # ~f32 transients (h, res, act, conv out)
            + 2 * 3 * C * win                # bf16 (3C, win) fused-tap operand
        )
        if est <= vmem_budget_bytes:
            best = lt
    return best


def pack_resblock_params(params):
    """Repack per-conv (C, C, 3) weights / (C,) biases into MXU-friendly slabs.

    Returns (w_all, b_all): bf16 (6, C, 3C) with the 3 taps fused along K and
    f32 (6, C, 1).  Conv order: [c1_0, c2_0, c1_1, c2_1, c1_2, c2_2].  Call this
    ONCE per parameter set (outside the per-step forward) so the repack is not
    re-executed on every invocation.
    """
    w_slabs, b_slabs = [], []
    for (w1, b1, w2, b2) in params:
        for w, b in ((w1, b1), (w2, b2)):
            c_out = w.shape[0]
            w_cat = jnp.concatenate([w[:, :, 0], w[:, :, 1], w[:, :, 2]], axis=1)  # (C, 3C)
            w_slabs.append(w_cat)
            b_slabs.append(b.reshape(c_out, 1))
    w_all = jnp.stack(w_slabs).astype(jnp.bfloat16)   # (6, C, 3C) bf16 MXU operand
    b_all = jnp.stack(b_slabs).astype(jnp.float32)    # (6, C, 1)  f32
    return w_all, b_all


def resblock_forward(x, w_all, b_all, *, l_tile=None):
    """x: (B, C, L).  (w_all, b_all) from pack_resblock_params.  Returns (B, C, L)."""
    B, C, L = x.shape

    try:
        vmem_cap = pltpu.get_tpu_info().vmem_capacity_bytes
    except Exception:
        vmem_cap = None

    if l_tile is None:
        budget = (vmem_cap // 2) if vmem_cap else 24 * 1024 * 1024
        l_tile = _pick_l_tile(C, L, budget)
    l_tile = max(128, (l_tile // 128) * 128)

    Lr = _round_up(L, l_tile)
    n_l = Lr // l_tile
    lt128 = l_tile // 128
    win = 2 * HALO + l_tile

    # bf16 activations into the kernel (half the DMA bytes / input-block VMEM);
    # the cast is fused with the zero pad, so f32 callers pay one HBM pass that
    # they would need anyway.  Left pad = l_tile keeps every center block
    # l_tile-aligned; right pad covers the ragged tail plus the last halo.
    # TODO(synk): for callers that already hold bf16 activations the pad is the
    # only wrapper-side copy left; it could be removed with clamped halo
    # index_maps + masking the first conv input as well.
    x_pad = jnp.pad(x.astype(jnp.bfloat16),
                    ((0, 0), (0, 0), (l_tile, (Lr - L) + HALO)))

    def kernel(xl_ref, xc_ref, xr_ref, w_ref, b_ref, out_ref):
        j = pl.program_id(1)

        # (C, win) bf16 working window; f32 master copy for the residual chain.
        xw = jnp.concatenate([xl_ref[...], xc_ref[...], xr_ref[...]], axis=-1)
        h = xw.astype(jnp.float32)

        # One hoisted [0, L) validity mask.  Window lane c holds global sample
        # g = j*l_tile - HALO + c; PyTorch zero-padding of every conv is
        # enforced by zeroing invalid columns of the conv *input* (roll
        # wraparound only contaminates the outer <=16 window columns, far from
        # the interior's receptive field, so shifted reads need no extra mask).
        lane = lax.broadcasted_iota(jnp.int32, (1, win), 1)
        g = lane + (j * l_tile - HALO)
        valid = (g >= 0) & (g < L)

        def conv_same(a, idx, d, mask_input):
            # "same" 3-tap dilated conv == ONE (C,3C) x (3C,win) bf16 MXU matmul.
            if mask_input:
                a = jnp.where(valid, a, 0.0)
            ab = a.astype(jnp.bfloat16)                     # cast once; shuffle in bf16
            xm = jnp.roll(ab, d, axis=1)                    # a[:, c - d]
            xp = jnp.roll(ab, -d, axis=1)                   # a[:, c + d]
            x_cat = jnp.concatenate([xm, ab, xp], axis=0)   # (3C, win) bf16
            return jnp.dot(w_ref[idx], x_cat,
                           preferred_element_type=jnp.float32) + b_ref[idx]

        for i, d in enumerate(DILATIONS):
            res = h
            a = _leaky_relu(h)
            # convs1[0]'s input is the padded window itself (already zero
            # outside [0, L)), so its mask is skipped.
            a = conv_same(a, 2 * i + 0, d, mask_input=(i > 0))   # convs1[i]
            a = _leaky_relu(a)
            a = conv_same(a, 2 * i + 1, 1, mask_input=True)      # convs2[i]
            h = a + res

        # Only the interior l_tile columns are valid (halo columns are scratch).
        out_ref[...] = h[:, HALO:HALO + l_tile].astype(out_ref.dtype)

    # ---- BlockSpecs (Squeezed batch dim -> kernel refs are 2-D) ----
    x_left_spec = pl.BlockSpec((pl.Squeezed(), C, HALO),
                               lambda b, j: (b, 0, (j + 1) * lt128 - 1))
    x_center_spec = pl.BlockSpec((pl.Squeezed(), C, l_tile),
                                 lambda b, j: (b, 0, j + 1))
    x_right_spec = pl.BlockSpec((pl.Squeezed(), C, HALO),
                                lambda b, j: (b, 0, (j + 2) * lt128))
    out_spec = pl.BlockSpec((pl.Squeezed(), C, l_tile), lambda b, j: (b, 0, j))

    vmem_limit = int(vmem_cap * 7 // 8) if vmem_cap else 48 * 1024 * 1024

    def build_call(single_buffer_consts):
        # Constant weight/bias slabs never change block index; a single VMEM
        # buffer avoids pointless double-buffering (matters on v7x at large C).
        const_kw = {"pipeline_mode": pl.Buffered(1)} if single_buffer_consts else {}
        w_spec = pl.BlockSpec(w_all.shape, lambda b, j: (0, 0, 0), **const_kw)
        b_spec = pl.BlockSpec(b_all.shape, lambda b, j: (0, 0, 0), **const_kw)
        return pl.pallas_call(
            kernel,
            out_shape=jax.ShapeDtypeStruct((B, C, Lr), x.dtype),
            grid_spec=pltpu.PrefetchScalarGridSpec(
                num_scalar_prefetch=0,
                grid=(B, n_l),
                in_specs=[x_left_spec, x_center_spec, x_right_spec, w_spec, b_spec],
                out_specs=out_spec,
            ),
            compiler_params=pltpu.CompilerParams(
                dimension_semantics=("parallel", "parallel"),
                vmem_limit_bytes=vmem_limit,
            ),
        )

    try:
        out = build_call(True)(x_pad, x_pad, x_pad, w_all, b_all)
    except Exception:
        # pipeline_mode unsupported on this path -> default double-buffered consts.
        out = build_call(False)(x_pad, x_pad, x_pad, w_all, b_all)

    return out if Lr == L else out[:, :, :L]


# ---------- pure-JAX reference (same numerics contract: bf16 activations /
# conv operands, f32 accumulation and residual) ----------
def resblock_ref(x, params):
    x = x.astype(jnp.bfloat16).astype(jnp.float32)
    for (w1, b1, w2, b2), d in zip(params, DILATIONS):
        xp = x
        h = jnp.maximum(x, NEG_SLOPE * x)
        h = lax.conv_general_dilated(
            h.astype(jnp.bfloat16), w1.astype(jnp.bfloat16),
            window_strides=(1,), padding=[(d, d)], rhs_dilation=(d,),
            dimension_numbers=("NCH", "OIH", "NCH"),
            preferred_element_type=jnp.float32) + b1[None, :, None]
        h = jnp.maximum(h, NEG_SLOPE * h)
        h = lax.conv_general_dilated(
            h.astype(jnp.bfloat16), w2.astype(jnp.bfloat16),
            window_strides=(1,), padding=[(1, 1)], rhs_dilation=(1,),
            dimension_numbers=("NCH", "OIH", "NCH"),
            preferred_element_type=jnp.float32) + b2[None, :, None]
        x = h + xp
    return x


# ---------- deterministic weight-normed parameter init ----------
def init_params(key, channels):
    """Build 3 stages of (w1, b1, w2, b2).  weight_norm: w = g * v / ||v||_{in,k}."""
    params = []
    for _ in range(3):
        stage = []
        for _ in range(2):  # convs1[i], convs2[i]
            key, kv, kg, kb = jax.random.split(key, 4)
            v = jax.random.normal(kv, (channels, channels, KSIZE), jnp.float32) * 0.1
            g = jax.random.uniform(kg, (channels,), jnp.float32, 0.5, 1.5)
            norm = jnp.sqrt(jnp.sum(v * v, axis=(1, 2), keepdims=True)) + 1e-12
            w = g[:, None, None] * v / norm
            b = jax.random.normal(kb, (channels,), jnp.float32) * 0.1
            stage.append((w, b))
        (w1, b1), (w2, b2) = stage
        params.append((w1, b1, w2, b2))
    return params


if __name__ == "__main__":
    # Small but representative: C multiple of 8, several L tiles so the halo /
    # boundary-mask path is actually exercised.
    B, C, L = 2, 16, 512
    key = jax.random.PRNGKey(0)
    kx, kp = jax.random.split(key)
    x = jax.random.normal(kx, (B, C, L), jnp.float32)
    params = init_params(kp, C)
    w_all, b_all = pack_resblock_params(params)   # packed once, reused per call

    out = resblock_forward(x, w_all, b_all, l_tile=128)   # 4 length tiles
    out = jax.block_until_ready(out)

    ref = resblock_ref(x, params)
    assert out.shape == ref.shape
    err = float(jnp.max(jnp.abs(out - ref)))
    assert err < 2e-2, f"Pallas output mismatch vs reference (max abs err {err})"

    print("KERNEL_OK")
</pallas_src>

<mosaic_0001>
module attributes {stable_mosaic.version = 11 : i64} {
  func.func @kernel(%arg0: i32, %arg1: i32, %arg2: memref<1x16x128xbf16, #tpu.memory_space<vmem>>, %arg3: memref<1x16x128xbf16, #tpu.memory_space<vmem>>, %arg4: memref<1x16x128xbf16, #tpu.memory_space<vmem>>, %arg5: memref<6x16x48xbf16, #tpu.memory_space<vmem>>, %arg6: memref<6x16x1xf32, #tpu.memory_space<vmem>>, %arg7: memref<1x16x128xf32, #tpu.memory_space<vmem>>) attributes {dimension_semantics = [#tpu.dimension_semantics<parallel>, #tpu.dimension_semantics<parallel>], iteration_bounds = array<i64: 2, 4>, scalar_prefetch = 0 : i64, scratch_operands = 0 : i64, tpu.core_type = #tpu.core_type<tc>, window_params = [{transform_indices = @transform_0, window_bounds = array<i64: 1, 16, 128>}, {transform_indices = @transform_1, window_bounds = array<i64: 1, 16, 128>}, {transform_indices = @transform_2, window_bounds = array<i64: 1, 16, 128>}, {pipeline_mode = #tpu.pipeline_mode<synchronous>, transform_indices = @transform_3, window_bounds = array<i64: 6, 16, 48>}, {pipeline_mode = #tpu.pipeline_mode<synchronous>, transform_indices = @transform_4, window_bounds = array<i64: 6, 16, 1>}, {transform_indices = @transform_5, window_bounds = array<i64: 1, 16, 128>}]} {
    %c0 = arith.constant 0 : index
    %c0_0 = arith.constant 0 : index
    %c0_1 = arith.constant 0 : index
    %0 = vector.load %arg2[%c0, %c0_0, %c0_1] : memref<1x16x128xbf16, #tpu.memory_space<vmem>>, vector<1x16x128xbf16>
    %1 = vector.shape_cast %0 : vector<1x16x128xbf16> to vector<16x128xbf16>
    %c0_2 = arith.constant 0 : index
    %c0_3 = arith.constant 0 : index
    %c0_4 = arith.constant 0 : index
    %2 = vector.load %arg3[%c0_2, %c0_3, %c0_4] : memref<1x16x128xbf16, #tpu.memory_space<vmem>>, vector<1x16x128xbf16>
    %3 = vector.shape_cast %2 : vector<1x16x128xbf16> to vector<16x128xbf16>
    %c0_5 = arith.constant 0 : index
    %c0_6 = arith.constant 0 : index
    %c0_7 = arith.constant 0 : index
    %4 = vector.load %arg4[%c0_5, %c0_6, %c0_7] : memref<1x16x128xbf16, #tpu.memory_space<vmem>>, vector<1x16x128xbf16>
    %5 = vector.shape_cast %4 : vector<1x16x128xbf16> to vector<16x128xbf16>
    %6 = tpu.concatenate %1, %3, %5 in 1 : vector<16x128xbf16>, vector<16x128xbf16>, vector<16x128xbf16> -> vector<16x384xbf16>
    %7 = arith.extf %6 : vector<16x384xbf16> to vector<16x384xf32>
    %8 = tpu.iota {dimensions = array<i32: 1>} : vector<1x384xi32>
    %c128_i32 = arith.constant 128 : i32
    %9 = arith.muli %arg1, %c128_i32 : i32
    %c128_i32_8 = arith.constant 128 : i32
    %10 = arith.subi %9, %c128_i32_8 : i32
    %11 = vector.broadcast %10 : i32 to vector<1x384xi32>
    %12 = arith.addi %8, %11 : vector<1x384xi32>
    %c0_i32 = arith.constant 0 : i32
    %13 = vector.broadcast %c0_i32 : i32 to vector<1x384xi32>
    %14 = arith.cmpi sge, %12, %13 : vector<1x384xi32>
    %c512_i32 = arith.constant 512 : i32
    %15 = vector.broadcast %c512_i32 : i32 to vector<1x384xi32>
    %16 = arith.cmpi slt, %12, %15 : vector<1x384xi32>
    %17 = arith.andi %14, %16 : vector<1x384xi1>
    %cst = arith.constant 0.00999999977 : f32
    %18 = vector.broadcast %cst : f32 to vector<16x384xf32>
    %19 = arith.mulf %18, %7 : vector<16x384xf32>
    %20 = arith.maximumf %7, %19 : vector<16x384xf32>
    %21 = arith.truncf %20 : vector<16x384xf32> to vector<16x384xbf16>
    %22 = vector.extract_strided_slice %21 {offsets = [0, 383], sizes = [16, 1], strides = [1, 1]} : vector<16x384xbf16> to vector<16x1xbf16>
    %23 = vector.extract_strided_slice %21 {offsets = [0, 0], sizes = [16, 383], strides = [1, 1]} : vector<16x384xbf16> to vector<16x383xbf16>
    %24 = tpu.concatenate %22, %23 in 1 : vector<16x1xbf16>, vector<16x383xbf16> -> vector<16x384xbf16>
    %25 = vector.extract_strided_slice %21 {offsets = [0, 1], sizes = [16, 383], strides = [1, 1]} : vector<16x384xbf16> to vector<16x383xbf16>
    %26 = vector.extract_strided_slice %21 {offsets = [0, 0], sizes = [16, 1], strides = [1, 1]} : vector<16x384xbf16> to vector<16x1xbf16>
    %27 = tpu.concatenate %25, %26 in 1 : vector<16x383xbf16>, vector<16x1xbf16> -> vector<16x384xbf16>
    %28 = tpu.concatenate %24, %21, %27 in 0 : vector<16x384xbf16>, vector<16x384xbf16>, vector<16x384xbf16> -> vector<48x384xbf16>
    %c0_9 = arith.constant 0 : index
    %c0_10 = arith.constant 0 : index
    %c0_11 = arith.constant 0 : index
    %29 = vector.load %arg5[%c0_9, %c0_10, %c0_11] : memref<6x16x48xbf16, #tpu.memory_space<vmem>>, vector<1x16x48xbf16>
    %30 = vector.shape_cast %29 : vector<1x16x48xbf16> to vector<16x48xbf16>
    %cst_12 = arith.constant dense<0.000000e+00> : vector<16x384xf32>
    %31 = tpu.matmul %30, %28, %cst_12 {dimension_numbers = #tpu.dot_dimension_numbers<[1], [0], [0], [1], [0, 0, 1, 1], [], []>} : vector<16x48xbf16>, vector<48x384xbf16>, vector<16x384xf32> -> vector<16x384xf32>
    %c0_13 = arith.constant 0 : index
    %c0_14 = arith.constant 0 : index
    %c0_15 = arith.constant 0 : index
    %32 = vector.load %arg6[%c0_13, %c0_14, %c0_15] : memref<6x16x1xf32, #tpu.memory_space<vmem>>, vector<1x16x1xf32>
    %33 = vector.shape_cast %32 : vector<1x16x1xf32> to vector<16x1xf32>
    %34 = vector.broadcast %33 : vector<16x1xf32> to vector<16x384xf32>
    %35 = arith.addf %31, %34 : vector<16x384xf32>
    %cst_16 = arith.constant 0.00999999977 : f32
    %36 = vector.broadcast %cst_16 : f32 to vector<16x384xf32>
    %37 = arith.mulf %36, %35 : vector<16x384xf32>
    %38 = arith.maximumf %35, %37 : vector<16x384xf32>
    %cst_17 = arith.constant 0.000000e+00 : f32
    %39 = vector.shape_cast %17 : vector<1x384xi1> to vector<1x384xi1>
    %40 = vector.broadcast %39 : vector<1x384xi1> to vector<16x384xi1>
    %41 = vector.broadcast %cst_17 : f32 to vector<16x384xf32>
    %42 = arith.select %40, %38, %41 : vector<16x384xi1>, vector<16x384xf32>
    %43 = arith.truncf %42 : vector<16x384xf32> to vector<16x384xbf16>
    %44 = vector.extract_strided_slice %43 {offsets = [0, 383], sizes = [16, 1], strides = [1, 1]} : vector<16x384xbf16> to vector<16x1xbf16>
    %45 = vector.extract_strided_slice %43 {offsets = [0, 0], sizes = [16, 383], strides = [1, 1]} : vector<16x384xbf16> to vector<16x383xbf16>
    %46 = tpu.concatenate %44, %45 in 1 : vector<16x1xbf16>, vector<16x383xbf16> -> vector<16x384xbf16>
    %47 = vector.extract_strided_slice %43 {offsets = [0, 1], sizes = [16, 383], strides = [1, 1]} : vector<16x384xbf16> to vector<16x383xbf16>
    %48 = vector.extract_strided_slice %43 {offsets = [0, 0], sizes = [16, 1], strides = [1, 1]} : vector<16x384xbf16> to vector<16x1xbf16>
    %49 = tpu.concatenate %47, %48 in 1 : vector<16x383xbf16>, vector<16x1xbf16> -> vector<16x384xbf16>
    %50 = tpu.concatenate %46, %43, %49 in 0 : vector<16x384xbf16>, vector<16x384xbf16>, vector<16x384xbf16> -> vector<48x384xbf16>
    %c1 = arith.constant 1 : index
    %c0_18 = arith.constant 0 : index
    %c0_19 = arith.constant 0 : index
    %51 = vector.load %arg5[%c1, %c0_18, %c0_19] : memref<6x16x48xbf16, #tpu.memory_space<vmem>>, vector<1x16x48xbf16>
    %52 = vector.shape_cast %51 : vector<1x16x48xbf16> to vector<16x48xbf16>
    %cst_20 = arith.constant dense<0.000000e+00> : vector<16x384xf32>
    %53 = tpu.matmul %52, %50, %cst_20 {dimension_numbers = #tpu.dot_dimension_numbers<[1], [0], [0], [1], [0, 0, 1, 1], [], []>} : vector<16x48xbf16>, vector<48x384xbf16>, vector<16x384xf32> -> vector<16x384xf32>
    %c1_21 = arith.constant 1 : index
    %c0_22 = arith.constant 0 : index
    %c0_23 = arith.constant 0 : index
    %54 = vector.load %arg6[%c1_21, %c0_22, %c0_23] : memref<6x16x1xf32, #tpu.memory_space<vmem>>, vector<1x16x1xf32>
    %55 = vector.shape_cast %54 : vector<1x16x1xf32> to vector<16x1xf32>
    %56 = vector.broadcast %55 : vector<16x1xf32> to vector<16x384xf32>
    %57 = arith.addf %53, %56 : vector<16x384xf32>
    %58 = arith.addf %57, %7 : vector<16x384xf32>
    %cst_24 = arith.constant 0.00999999977 : f32
    %59 = vector.broadcast %cst_24 : f32 to vector<16x384xf32>
    %60 = arith.mulf %59, %58 : vector<16x384xf32>
    %61 = arith.maximumf %58, %60 : vector<16x384xf32>
    %cst_25 = arith.constant 0.000000e+00 : f32
    %62 = vector.shape_cast %17 : vector<1x384xi1> to vector<1x384xi1>
    %63 = vector.broadcast %62 : vector<1x384xi1> to vector<16x384xi1>
    %64 = vector.broadcast %cst_25 : f32 to vector<16x384xf32>
    %65 = arith.select %63, %61, %64 : vector<16x384xi1>, vector<16x384xf32>
    %66 = arith.truncf %65 : vector<16x384xf32> to vector<16x384xbf16>
    %67 = vector.extract_strided_slice %66 {offsets = [0, 381], sizes = [16, 3], strides = [1, 1]} : vector<16x384xbf16> to vector<16x3xbf16>
    %68 = vector.extract_strided_slice %66 {offsets = [0, 0], sizes = [16, 381], strides = [1, 1]} : vector<16x384xbf16> to vector<16x381xbf16>
    %69 = tpu.concatenate %67, %68 in 1 : vector<16x3xbf16>, vector<16x381xbf16> -> vector<16x384xbf16>
    %70 = vector.extract_strided_slice %66 {offsets = [0, 3], sizes = [16, 381], strides = [1, 1]} : vector<16x384xbf16> to vector<16x381xbf16>
    %71 = vector.extract_strided_slice %66 {offsets = [0, 0], sizes = [16, 3], strides = [1, 1]} : vector<16x384xbf16> to vector<16x3xbf16>
    %72 = tpu.concatenate %70, %71 in 1 : vector<16x381xbf16>, vector<16x3xbf16> -> vector<16x384xbf16>
    %73 = tpu.concatenate %69, %66, %72 in 0 : vector<16x384xbf16>, vector<16x384xbf16>, vector<16x384xbf16> -> vector<48x384xbf16>
    %c2 = arith.constant 2 : index
    %c0_26 = arith.constant 0 : index
    %c0_27 = arith.constant 0 : index
    %74 = vector.load %arg5[%c2, %c0_26, %c0_27] : memref<6x16x48xbf16, #tpu.memory_space<vmem>>, vector<1x16x48xbf16>
    %75 = vector.shape_cast %74 : vector<1x16x48xbf16> to vector<16x48xbf16>
    %cst_28 = arith.constant dense<0.000000e+00> : vector<16x384xf32>
    %76 = tpu.matmul %75, %73, %cst_28 {dimension_numbers = #tpu.dot_dimension_numbers<[1], [0], [0], [1], [0, 0, 1, 1], [], []>} : vector<16x48xbf16>, vector<48x384xbf16>, vector<16x384xf32> -> vector<16x384xf32>
    %c2_29 = arith.constant 2 : index
    %c0_30 = arith.constant 0 : index
    %c0_31 = arith.constant 0 : index
    %77 = vector.load %arg6[%c2_29, %c0_30, %c0_31] : memref<6x16x1xf32, #tpu.memory_space<vmem>>, vector<1x16x1xf32>
    %78 = vector.shape_cast %77 : vector<1x16x1xf32> to vector<16x1xf32>
    %79 = vector.broadcast %78 : vector<16x1xf32> to vector<16x384xf32>
    %80 = arith.addf %76, %79 : vector<16x384xf32>
    %cst_32 = arith.constant 0.00999999977 : f32
    %81 = vector.broadcast %cst_32 : f32 to vector<16x384xf32>
    %82 = arith.mulf %81, %80 : vector<16x384xf32>
    %83 = arith.maximumf %80, %82 : vector<16x384xf32>
    %cst_33 = arith.constant 0.000000e+00 : f32
    %84 = vector.shape_cast %17 : vector<1x384xi1> to vector<1x384xi1>
    %85 = vector.broadcast %84 : vector<1x384xi1> to vector<16x384xi1>
    %86 = vector.broadcast %cst_33 : f32 to vector<16x384xf32>
    %87 = arith.select %85, %83, %86 : vector<16x384xi1>, vector<16x384xf32>
    %88 = arith.truncf %87 : vector<16x384xf32> to vector<16x384xbf16>
    %89 = vector.extract_strided_slice %88 {offsets = [0, 383], sizes = [16, 1], strides = [1, 1]} : vector<16x384xbf16> to vector<16x1xbf16>
    %90 = vector.extract_strided_slice %88 {offsets = [0, 0], sizes = [16, 383], strides = [1, 1]} : vector<16x384xbf16> to vector<16x383xbf16>
    %91 = tpu.concatenate %89, %90 in 1 : vector<16x1xbf16>, vector<16x383xbf16> -> vector<16x384xbf16>
    %92 = vector.extract_strided_slice %88 {offsets = [0, 1], sizes = [16, 383], strides = [1, 1]} : vector<16x384xbf16> to vector<16x383xbf16>
    %93 = vector.extract_strided_slice %88 {offsets = [0, 0], sizes = [16, 1], strides = [1, 1]} : vector<16x384xbf16> to vector<16x1xbf16>
    %94 = tpu.concatenate %92, %93 in 1 : vector<16x383xbf16>, vector<16x1xbf16> -> vector<16x384xbf16>
    %95 = tpu.concatenate %91, %88, %94 in 0 : vector<16x384xbf16>, vector<16x384xbf16>, vector<16x384xbf16> -> vector<48x384xbf16>
    %c3 = arith.constant 3 : index
    %c0_34 = arith.constant 0 : index
    %c0_35 = arith.constant 0 : index
    %96 = vector.load %arg5[%c3, %c0_34, %c0_35] : memref<6x16x48xbf16, #tpu.memory_space<vmem>>, vector<1x16x48xbf16>
    %97 = vector.shape_cast %96 : vector<1x16x48xbf16> to vector<16x48xbf16>
    %cst_36 = arith.constant dense<0.000000e+00> : vector<16x384xf32>
    %98 = tpu.matmul %97, %95, %cst_36 {dimension_numbers = #tpu.dot_dimension_numbers<[1], [0], [0], [1], [0, 0, 1, 1], [], []>} : vector<16x48xbf16>, vector<48x384xbf16>, vector<16x384xf32> -> vector<16x384xf32>
    %c3_37 = arith.constant 3 : index
    %c0_38 = arith.constant 0 : index
    %c0_39 = arith.constant 0 : index
    %99 = vector.load %arg6[%c3_37, %c0_38, %c0_39] : memref<6x16x1xf32, #tpu.memory_space<vmem>>, vector<1x16x1xf32>
    %100 = vector.shape_cast %99 : vector<1x16x1xf32> to vector<16x1xf32>
    %101 = vector.broadcast %100 : vector<16x1xf32> to vector<16x384xf32>
    %102 = arith.addf %98, %101 : vector<16x384xf32>
    %103 = arith.addf %102, %58 : vector<16x384xf32>
    %cst_40 = arith.constant 0.00999999977 : f32
    %104 = vector.broadcast %cst_40 : f32 to vector<16x384xf32>
    %105 = arith.mulf %104, %103 : vector<16x384xf32>
    %106 = arith.maximumf %103, %105 : vector<16x384xf32>
    %cst_41 = arith.constant 0.000000e+00 : f32
    %107 = vector.shape_cast %17 : vector<1x384xi1> to vector<1x384xi1>
    %108 = vector.broadcast %107 : vector<1x384xi1> to vector<16x384xi1>
    %109 = vector.broadcast %cst_41 : f32 to vector<16x384xf32>
    %110 = arith.select %108, %106, %109 : vector<16x384xi1>, vector<16x384xf32>
    %111 = arith.truncf %110 : vector<16x384xf32> to vector<16x384xbf16>
    %112 = vector.extract_strided_slice %111 {offsets = [0, 375], sizes = [16, 9], strides = [1, 1]} : vector<16x384xbf16> to vector<16x9xbf16>
    %113 = vector.extract_strided_slice %111 {offsets = [0, 0], sizes = [16, 375], strides = [1, 1]} : vector<16x384xbf16> to vector<16x375xbf16>
    %114 = tpu.concatenate %112, %113 in 1 : vector<16x9xbf16>, vector<16x375xbf16> -> vector<16x384xbf16>
    %115 = vector.extract_strided_slice %111 {offsets = [0, 9], sizes = [16, 375], strides = [1, 1]} : vector<16x384xbf16> to vector<16x375xbf16>
    %116 = vector.extract_strided_slice %111 {offsets = [0, 0], sizes = [16, 9], strides = [1, 1]} : vector<16x384xbf16> to vector<16x9xbf16>
    %117 = tpu.concatenate %115, %116 in 1 : vector<16x375xbf16>, vector<16x9xbf16> -> vector<16x384xbf16>
    %118 = tpu.concatenate %114, %111, %117 in 0 : vector<16x384xbf16>, vector<16x384xbf16>, vector<16x384xbf16> -> vector<48x384xbf16>
    %c4 = arith.constant 4 : index
    %c0_42 = arith.constant 0 : index
    %c0_43 = arith.constant 0 : index
    %119 = vector.load %arg5[%c4, %c0_42, %c0_43] : memref<6x16x48xbf16, #tpu.memory_space<vmem>>, vector<1x16x48xbf16>
    %120 = vector.shape_cast %119 : vector<1x16x48xbf16> to vector<16x48xbf16>
    %cst_44 = arith.constant dense<0.000000e+00> : vector<16x384xf32>
    %121 = tpu.matmul %120, %118, %cst_44 {dimension_numbers = #tpu.dot_dimension_numbers<[1], [0], [0], [1], [0, 0, 1, 1], [], []>} : vector<16x48xbf16>, vector<48x384xbf16>, vector<16x384xf32> -> vector<16x384xf32>
    %c4_45 = arith.constant 4 : index
    %c0_46 = arith.constant 0 : index
    %c0_47 = arith.constant 0 : index
    %122 = vector.load %arg6[%c4_45, %c0_46, %c0_47] : memref<6x16x1xf32, #tpu.memory_space<vmem>>, vector<1x16x1xf32>
    %123 = vector.shape_cast %122 : vector<1x16x1xf32> to vector<16x1xf32>
    %124 = vector.broadcast %123 : vector<16x1xf32> to vector<16x384xf32>
    %125 = arith.addf %121, %124 : vector<16x384xf32>
    %cst_48 = arith.constant 0.00999999977 : f32
    %126 = vector.broadcast %cst_48 : f32 to vector<16x384xf32>
    %127 = arith.mulf %126, %125 : vector<16x384xf32>
    %128 = arith.maximumf %125, %127 : vector<16x384xf32>
    %cst_49 = arith.constant 0.000000e+00 : f32
    %129 = vector.shape_cast %17 : vector<1x384xi1> to vector<1x384xi1>
    %130 = vector.broadcast %129 : vector<1x384xi1> to vector<16x384xi1>
    %131 = vector.broadcast %cst_49 : f32 to vector<16x384xf32>
    %132 = arith.select %130, %128, %131 : vector<16x384xi1>, vector<16x384xf32>
    %133 = arith.truncf %132 : vector<16x384xf32> to vector<16x384xbf16>
    %134 = vector.extract_strided_slice %133 {offsets = [0, 383], sizes = [16, 1], strides = [1, 1]} : vector<16x384xbf16> to vector<16x1xbf16>
    %135 = vector.extract_strided_slice %133 {offsets = [0, 0], sizes = [16, 383], strides = [1, 1]} : vector<16x384xbf16> to vector<16x383xbf16>
    %136 = tpu.concatenate %134, %135 in 1 : vector<16x1xbf16>, vector<16x383xbf16> -> vector<16x384xbf16>
    %137 = vector.extract_strided_slice %133 {offsets = [0, 1], sizes = [16, 383], strides = [1, 1]} : vector<16x384xbf16> to vector<16x383xbf16>
    %138 = vector.extract_strided_slice %133 {offsets = [0, 0], sizes = [16, 1], strides = [1, 1]} : vector<16x384xbf16> to vector<16x1xbf16>
    %139 = tpu.concatenate %137, %138 in 1 : vector<16x383xbf16>, vector<16x1xbf16> -> vector<16x384xbf16>
    %140 = tpu.concatenate %136, %133, %139 in 0 : vector<16x384xbf16>, vector<16x384xbf16>, vector<16x384xbf16> -> vector<48x384xbf16>
    %c5 = arith.constant 5 : index
    %c0_50 = arith.constant 0 : index
    %c0_51 = arith.constant 0 : index
    %141 = vector.load %arg5[%c5, %c0_50, %c0_51] : memref<6x16x48xbf16, #tpu.memory_space<vmem>>, vector<1x16x48xbf16>
    %142 = vector.shape_cast %141 : vector<1x16x48xbf16> to vector<16x48xbf16>
    %cst_52 = arith.constant dense<0.000000e+00> : vector<16x384xf32>
    %143 = tpu.matmul %142, %140, %cst_52 {dimension_numbers = #tpu.dot_dimension_numbers<[1], [0], [0], [1], [0, 0, 1, 1], [], []>} : vector<16x48xbf16>, vector<48x384xbf16>, vector<16x384xf32> -> vector<16x384xf32>
    %c5_53 = arith.constant 5 : index
    %c0_54 = arith.constant 0 : index
    %c0_55 = arith.constant 0 : index
    %144 = vector.load %arg6[%c5_53, %c0_54, %c0_55] : memref<6x16x1xf32, #tpu.memory_space<vmem>>, vector<1x16x1xf32>
    %145 = vector.shape_cast %144 : vector<1x16x1xf32> to vector<16x1xf32>
    %146 = vector.broadcast %145 : vector<16x1xf32> to vector<16x384xf32>
    %147 = arith.addf %143, %146 : vector<16x384xf32>
    %148 = arith.addf %147, %103 : vector<16x384xf32>
    %149 = vector.extract_strided_slice %148 {offsets = [0, 128], sizes = [16, 128], strides = [1, 1]} : vector<16x384xf32> to vector<16x128xf32>
    %c0_56 = arith.constant 0 : index
    %c0_57 = arith.constant 0 : index
    %c0_58 = arith.constant 0 : index
    %150 = vector.load %arg7[%c0_56, %c0_57, %c0_58] : memref<1x16x128xf32, #tpu.memory_space<vmem>>, vector<1x16x128xf32>
    %151 = vector.shape_cast %150 : vector<1x16x128xf32> to vector<16x128xf32>
    %152 = vector.shape_cast %149 : vector<16x128xf32> to vector<1x16x128xf32>
    tpu.vector_store %arg7[%c0_56, %c0_57, %c0_58], %152 {strides = array<i32>} : memref<1x16x128xf32, #tpu.memory_space<vmem>>, vector<1x16x128xf32>,
    return
  }
  func.func @transform_0(%arg0: i32, %arg1: i32) -> (i32, i32, i32) {
    %c1_i32 = arith.constant 1 : i32
    %0 = arith.addi %arg1, %c1_i32 : i32
    %c1_i32_0 = arith.constant 1 : i32
    %1 = arith.muli %0, %c1_i32_0 : i32
    %c1_i32_1 = arith.constant 1 : i32
    %2 = arith.subi %1, %c1_i32_1 : i32
    %c0_i32 = arith.constant 0 : i32
    %c0_i32_2 = arith.constant 0 : i32
    return %arg0, %c0_i32, %2 : i32, i32, i32
  }
  func.func @transform_1(%arg0: i32, %arg1: i32) -> (i32, i32, i32) {
    %c1_i32 = arith.constant 1 : i32
    %0 = arith.addi %arg1, %c1_i32 : i32
    %c0_i32 = arith.constant 0 : i32
    %c0_i32_0 = arith.constant 0 : i32
    return %arg0, %c0_i32, %0 : i32, i32, i32
  }
  func.func @transform_2(%arg0: i32, %arg1: i32) -> (i32, i32, i32) {
    %c2_i32 = arith.constant 2 : i32
    %0 = arith.addi %arg1, %c2_i32 : i32
    %c1_i32 = arith.constant 1 : i32
    %1 = arith.muli %0, %c1_i32 : i32
    %c0_i32 = arith.constant 0 : i32
    %c0_i32_0 = arith.constant 0 : i32
    return %arg0, %c0_i32, %1 : i32, i32, i32
  }
  func.func @transform_3(%arg0: i32, %arg1: i32) -> (i32, i32, i32) {
    %c0_i32 = arith.constant 0 : i32
    %c0_i32_0 = arith.constant 0 : i32
    %c0_i32_1 = arith.constant 0 : i32
    %c0_i32_2 = arith.constant 0 : i32
    return %c0_i32, %c0_i32_0, %c0_i32_1 : i32, i32, i32
  }
  func.func @transform_4(%arg0: i32, %arg1: i32) -> (i32, i32, i32) {
    %c0_i32 = arith.constant 0 : i32
    %c0_i32_0 = arith.constant 0 : i32
    %c0_i32_1 = arith.constant 0 : i32
    %c0_i32_2 = arith.constant 0 : i32
    return %c0_i32, %c0_i32_0, %c0_i32_1 : i32, i32, i32
  }
  func.func @transform_5(%arg0: i32, %arg1: i32) -> (i32, i32, i32) {
    %c0_i32 = arith.constant 0 : i32
    %c0_i32_0 = arith.constant 0 : i32
    return %arg0, %c0_i32, %arg1 : i32, i32, i32
  }
}

module attributes {stable_mosaic.version = 11 : i64} {
  func.func @kernel(%arg0: i32, %arg1: i32, %arg2: memref<1x16x128xbf16, #tpu.memory_space<vmem>>, %arg3: memref<1x16x128xbf16, #tpu.memory_space<vmem>>, %arg4: memref<1x16x128xbf16, #tpu.memory_space<vmem>>, %arg5: memref<6x16x48xbf16, #tpu.memory_space<vmem>>, %arg6: memref<6x16x1xf32, #tpu.memory_space<vmem>>, %arg7: memref<1x16x128xf32, #tpu.memory_space<vmem>>) attributes {dimension_semantics = [#tpu.dimension_semantics<parallel>, #tpu.dimension_semantics<parallel>], iteration_bounds = array<i64: 2, 4>, scalar_prefetch = 0 : i64, scratch_operands = 0 : i64, tpu.core_type = #tpu.core_type<tc>, window_params = [{transform_indices = @transform_0, window_bounds = array<i64: 1, 16, 128>}, {transform_indices = @transform_1, window_bounds = array<i64: 1, 16, 128>}, {transform_indices = @transform_2, window_bounds = array<i64: 1, 16, 128>}, {pipeline_mode = #tpu.pipeline_mode<synchronous>, transform_indices = @transform_3, window_bounds = array<i64: 6, 16, 48>}, {pipeline_mode = #tpu.pipeline_mode<synchronous>, transform_indices = @transform_4, window_bounds = array<i64: 6, 16, 1>}, {transform_indices = @transform_5, window_bounds = array<i64: 1, 16, 128>}]} {
    %c0 = arith.constant 0 : index
    %c0_0 = arith.constant 0 : index
    %c0_1 = arith.constant 0 : index
    %0 = vector.load %arg2[%c0, %c0_0, %c0_1] : memref<1x16x128xbf16, #tpu.memory_space<vmem>>, vector<1x16x128xbf16>
    %1 = vector.shape_cast %0 : vector<1x16x128xbf16> to vector<16x128xbf16>
    %c0_2 = arith.constant 0 : index
    %c0_3 = arith.constant 0 : index
    %c0_4 = arith.constant 0 : index
    %2 = vector.load %arg3[%c0_2, %c0_3, %c0_4] : memref<1x16x128xbf16, #tpu.memory_space<vmem>>, vector<1x16x128xbf16>
    %3 = vector.shape_cast %2 : vector<1x16x128xbf16> to vector<16x128xbf16>
    %c0_5 = arith.constant 0 : index
    %c0_6 = arith.constant 0 : index
    %c0_7 = arith.constant 0 : index
    %4 = vector.load %arg4[%c0_5, %c0_6, %c0_7] : memref<1x16x128xbf16, #tpu.memory_space<vmem>>, vector<1x16x128xbf16>
    %5 = vector.shape_cast %4 : vector<1x16x128xbf16> to vector<16x128xbf16>
    %6 = tpu.concatenate %1, %3, %5 in 1 : vector<16x128xbf16>, vector<16x128xbf16>, vector<16x128xbf16> -> vector<16x384xbf16>
    %7 = arith.extf %6 : vector<16x384xbf16> to vector<16x384xf32>
    %8 = tpu.iota {dimensions = array<i32: 1>} : vector<1x384xi32>
    %c128_i32 = arith.constant 128 : i32
    %9 = arith.muli %arg1, %c128_i32 : i32
    %c128_i32_8 = arith.constant 128 : i32
    %10 = arith.subi %9, %c128_i32_8 : i32
    %11 = vector.broadcast %10 : i32 to vector<1x384xi32>
    %12 = arith.addi %8, %11 : vector<1x384xi32>
    %c0_i32 = arith.constant 0 : i32
    %13 = vector.broadcast %c0_i32 : i32 to vector<1x384xi32>
    %14 = arith.cmpi sge, %12, %13 : vector<1x384xi32>
    %c512_i32 = arith.constant 512 : i32
    %15 = vector.broadcast %c512_i32 : i32 to vector<1x384xi32>
    %16 = arith.cmpi slt, %12, %15 : vector<1x384xi32>
    %17 = arith.andi %14, %16 : vector<1x384xi1>
    %cst = arith.constant 0.00999999977 : f32
    %18 = vector.broadcast %cst : f32 to vector<16x384xf32>
    %19 = arith.mulf %18, %7 : vector<16x384xf32>
    %20 = arith.maximumf %7, %19 : vector<16x384xf32>
    %21 = arith.truncf %20 : vector<16x384xf32> to vector<16x384xbf16>
    %22 = vector.extract_strided_slice %21 {offsets = [0, 383], sizes = [16, 1], strides = [1, 1]} : vector<16x384xbf16> to vector<16x1xbf16>
    %23 = vector.extract_strided_slice %21 {offsets = [0, 0], sizes = [16, 383], strides = [1, 1]} : vector<16x384xbf16> to vector<16x383xbf16>
    %24 = tpu.concatenate %22, %23 in 1 : vector<16x1xbf16>, vector<16x383xbf16> -> vector<16x384xbf16>
    %25 = vector.extract_strided_slice %21 {offsets = [0, 1], sizes = [16, 383], strides = [1, 1]} : vector<16x384xbf16> to vector<16x383xbf16>
    %26 = vector.extract_strided_slice %21 {offsets = [0, 0], sizes = [16, 1], strides = [1, 1]} : vector<16x384xbf16> to vector<16x1xbf16>
    %27 = tpu.concatenate %25, %26 in 1 : vector<16x383xbf16>, vector<16x1xbf16> -> vector<16x384xbf16>
    %28 = tpu.concatenate %24, %21, %27 in 0 : vector<16x384xbf16>, vector<16x384xbf16>, vector<16x384xbf16> -> vector<48x384xbf16>
    %c0_9 = arith.constant 0 : index
    %c0_10 = arith.constant 0 : index
    %c0_11 = arith.constant 0 : index
    %29 = vector.load %arg5[%c0_9, %c0_10, %c0_11] : memref<6x16x48xbf16, #tpu.memory_space<vmem>>, vector<1x16x48xbf16>
    %30 = vector.shape_cast %29 : vector<1x16x48xbf16> to vector<16x48xbf16>
    %cst_12 = arith.constant dense<0.000000e+00> : vector<16x384xf32>
    %31 = tpu.matmul %30, %28, %cst_12 {dimension_numbers = #tpu.dot_dimension_numbers<[1], [0], [0], [1], [0, 0, 1, 1], [], []>} : vector<16x48xbf16>, vector<48x384xbf16>, vector<16x384xf32> -> vector<16x384xf32>
    %c0_13 = arith.constant 0 : index
    %c0_14 = arith.constant 0 : index
    %c0_15 = arith.constant 0 : index
    %32 = vector.load %arg6[%c0_13, %c0_14, %c0_15] : memref<6x16x1xf32, #tpu.memory_space<vmem>>, vector<1x16x1xf32>
    %33 = vector.shape_cast %32 : vector<1x16x1xf32> to vector<16x1xf32>
    %34 = vector.broadcast %33 : vector<16x1xf32> to vector<16x384xf32>
    %35 = arith.addf %31, %34 : vector<16x384xf32>
    %cst_16 = arith.constant 0.00999999977 : f32
    %36 = vector.broadcast %cst_16 : f32 to vector<16x384xf32>
    %37 = arith.mulf %36, %35 : vector<16x384xf32>
    %38 = arith.maximumf %35, %37 : vector<16x384xf32>
    %cst_17 = arith.constant 0.000000e+00 : f32
    %39 = vector.shape_cast %17 : vector<1x384xi1> to vector<1x384xi1>
    %40 = vector.broadcast %39 : vector<1x384xi1> to vector<16x384xi1>
    %41 = vector.broadcast %cst_17 : f32 to vector<16x384xf32>
    %42 = arith.select %40, %38, %41 : vector<16x384xi1>, vector<16x384xf32>
    %43 = arith.truncf %42 : vector<16x384xf32> to vector<16x384xbf16>
    %44 = vector.extract_strided_slice %43 {offsets = [0, 383], sizes = [16, 1], strides = [1, 1]} : vector<16x384xbf16> to vector<16x1xbf16>
    %45 = vector.extract_strided_slice %43 {offsets = [0, 0], sizes = [16, 383], strides = [1, 1]} : vector<16x384xbf16> to vector<16x383xbf16>
    %46 = tpu.concatenate %44, %45 in 1 : vector<16x1xbf16>, vector<16x383xbf16> -> vector<16x384xbf16>
    %47 = vector.extract_strided_slice %43 {offsets = [0, 1], sizes = [16, 383], strides = [1, 1]} : vector<16x384xbf16> to vector<16x383xbf16>
    %48 = vector.extract_strided_slice %43 {offsets = [0, 0], sizes = [16, 1], strides = [1, 1]} : vector<16x384xbf16> to vector<16x1xbf16>
    %49 = tpu.concatenate %47, %48 in 1 : vector<16x383xbf16>, vector<16x1xbf16> -> vector<16x384xbf16>
    %50 = tpu.concatenate %46, %43, %49 in 0 : vector<16x384xbf16>, vector<16x384xbf16>, vector<16x384xbf16> -> vector<48x384xbf16>
    %c1 = arith.constant 1 : index
    %c0_18 = arith.constant 0 : index
    %c0_19 = arith.constant 0 : index
    %51 = vector.load %arg5[%c1, %c0_18, %c0_19] : memref<6x16x48xbf16, #tpu.memory_space<vmem>>, vector<1x16x48xbf16>
    %52 = vector.shape_cast %51 : vector<1x16x48xbf16> to vector<16x48xbf16>
    %cst_20 = arith.constant dense<0.000000e+00> : vector<16x384xf32>
    %53 = tpu.matmul %52, %50, %cst_20 {dimension_numbers = #tpu.dot_dimension_numbers<[1], [0], [0], [1], [0, 0, 1, 1], [], []>} : vector<16x48xbf16>, vector<48x384xbf16>, vector<16x384xf32> -> vector<16x384xf32>
    %c1_21 = arith.constant 1 : index
    %c0_22 = arith.constant 0 : index
    %c0_23 = arith.constant 0 : index
    %54 = vector.load %arg6[%c1_21, %c0_22, %c0_23] : memref<6x16x1xf32, #tpu.memory_space<vmem>>, vector<1x16x1xf32>
    %55 = vector.shape_cast %54 : vector<1x16x1xf32> to vector<16x1xf32>
    %56 = vector.broadcast %55 : vector<16x1xf32> to vector<16x384xf32>
    %57 = arith.addf %53, %56 : vector<16x384xf32>
    %58 = arith.addf %57, %7 : vector<16x384xf32>
    %cst_24 = arith.constant 0.00999999977 : f32
    %59 = vector.broadcast %cst_24 : f32 to vector<16x384xf32>
    %60 = arith.mulf %59, %58 : vector<16x384xf32>
    %61 = arith.maximumf %58, %60 : vector<16x384xf32>
    %cst_25 = arith.constant 0.000000e+00 : f32
    %62 = vector.shape_cast %17 : vector<1x384xi1> to vector<1x384xi1>
    %63 = vector.broadcast %62 : vector<1x384xi1> to vector<16x384xi1>
    %64 = vector.broadcast %cst_25 : f32 to vector<16x384xf32>
    %65 = arith.select %63, %61, %64 : vector<16x384xi1>, vector<16x384xf32>
    %66 = arith.truncf %65 : vector<16x384xf32> to vector<16x384xbf16>
    %67 = vector.extract_strided_slice %66 {offsets = [0, 381], sizes = [16, 3], strides = [1, 1]} : vector<16x384xbf16> to vector<16x3xbf16>
    %68 = vector.extract_strided_slice %66 {offsets = [0, 0], sizes = [16, 381], strides = [1, 1]} : vector<16x384xbf16> to vector<16x381xbf16>
    %69 = tpu.concatenate %67, %68 in 1 : vector<16x3xbf16>, vector<16x381xbf16> -> vector<16x384xbf16>
    %70 = vector.extract_strided_slice %66 {offsets = [0, 3], sizes = [16, 381], strides = [1, 1]} : vector<16x384xbf16> to vector<16x381xbf16>
    %71 = vector.extract_strided_slice %66 {offsets = [0, 0], sizes = [16, 3], strides = [1, 1]} : vector<16x384xbf16> to vector<16x3xbf16>
    %72 = tpu.concatenate %70, %71 in 1 : vector<16x381xbf16>, vector<16x3xbf16> -> vector<16x384xbf16>
    %73 = tpu.concatenate %69, %66, %72 in 0 : vector<16x384xbf16>, vector<16x384xbf16>, vector<16x384xbf16> -> vector<48x384xbf16>
    %c2 = arith.constant 2 : index
    %c0_26 = arith.constant 0 : index
    %c0_27 = arith.constant 0 : index
    %74 = vector.load %arg5[%c2, %c0_26, %c0_27] : memref<6x16x48xbf16, #tpu.memory_space<vmem>>, vector<1x16x48xbf16>
    %75 = vector.shape_cast %74 : vector<1x16x48xbf16> to vector<16x48xbf16>
    %cst_28 = arith.constant dense<0.000000e+00> : vector<16x384xf32>
    %76 = tpu.matmul %75, %73, %cst_28 {dimension_numbers = #tpu.dot_dimension_numbers<[1], [0], [0], [1], [0, 0, 1, 1], [], []>} : vector<16x48xbf16>, vector<48x384xbf16>, vector<16x384xf32> -> vector<16x384xf32>
    %c2_29 = arith.constant 2 : index
    %c0_30 = arith.constant 0 : index
    %c0_31 = arith.constant 0 : index
    %77 = vector.load %arg6[%c2_29, %c0_30, %c0_31] : memref<6x16x1xf32, #tpu.memory_space<vmem>>, vector<1x16x1xf32>
    %78 = vector.shape_cast %77 : vector<1x16x1xf32> to vector<16x1xf32>
    %79 = vector.broadcast %78 : vector<16x1xf32> to vector<16x384xf32>
    %80 = arith.addf %76, %79 : vector<16x384xf32>
    %cst_32 = arith.constant 0.00999999977 : f32
    %81 = vector.broadcast %cst_32 : f32 to vector<16x384xf32>
    %82 = arith.mulf %81, %80 : vector<16x384xf32>
    %83 = arith.maximumf %80, %82 : vector<16x384xf32>
    %cst_33 = arith.constant 0.000000e+00 : f32
    %84 = vector.shape_cast %17 : vector<1x384xi1> to vector<1x384xi1>
    %85 = vector.broadcast %84 : vector<1x384xi1> to vector<16x384xi1>
    %86 = vector.broadcast %cst_33 : f32 to vector<16x384xf32>
    %87 = arith.select %85, %83, %86 : vector<16x384xi1>, vector<16x384xf32>
    %88 = arith.truncf %87 : vector<16x384xf32> to vector<16x384xbf16>
    %89 = vector.extract_strided_slice %88 {offsets = [0, 383], sizes = [16, 1], strides = [1, 1]} : vector<16x384xbf16> to vector<16x1xbf16>
    %90 = vector.extract_strided_slice %88 {offsets = [0, 0], sizes = [16, 383], strides = [1, 1]} : vector<16x384xbf16> to vector<16x383xbf16>
    %91 = tpu.concatenate %89, %90 in 1 : vector<16x1xbf16>, vector<16x383xbf16> -> vector<16x384xbf16>
    %92 = vector.extract_strided_slice %88 {offsets = [0, 1], sizes = [16, 383], strides = [1, 1]} : vector<16x384xbf16> to vector<16x383xbf16>
    %93 = vector.extract_strided_slice %88 {offsets = [0, 0], sizes = [16, 1], strides = [1, 1]} : vector<16x384xbf16> to vector<16x1xbf16>
    %94 = tpu.concatenate %92, %93 in 1 : vector<16x383xbf16>, vector<16x1xbf16> -> vector<16x384xbf16>
    %95 = tpu.concatenate %91, %88, %94 in 0 : vector<16x384xbf16>, vector<16x384xbf16>, vector<16x384xbf16> -> vector<48x384xbf16>
    %c3 = arith.constant 3 : index
    %c0_34 = arith.constant 0 : index
    %c0_35 = arith.constant 0 : index
    %96 = vector.load %arg5[%c3, %c0_34, %c0_35] : memref<6x16x48xbf16, #tpu.memory_space<vmem>>, vector<1x16x48xbf16>
    %97 = vector.shape_cast %96 : vector<1x16x48xbf16> to vector<16x48xbf16>
    %cst_36 = arith.constant dense<0.000000e+00> : vector<16x384xf32>
    %98 = tpu.matmul %97, %95, %cst_36 {dimension_numbers = #tpu.dot_dimension_numbers<[1], [0], [0], [1], [0, 0, 1, 1], [], []>} : vector<16x48xbf16>, vector<48x384xbf16>, vector<16x384xf32> -> vector<16x384xf32>
    %c3_37 = arith.constant 3 : index
    %c0_38 = arith.constant 0 : index
    %c0_39 = arith.constant 0 : index
    %99 = vector.load %arg6[%c3_37, %c0_38, %c0_39] : memref<6x16x1xf32, #tpu.memory_space<vmem>>, vector<1x16x1xf32>
    %100 = vector.shape_cast %99 : vector<1x16x1xf32> to vector<16x1xf32>
    %101 = vector.broadcast %100 : vector<16x1xf32> to vector<16x384xf32>
    %102 = arith.addf %98, %101 : vector<16x384xf32>
    %103 = arith.addf %102, %58 : vector<16x384xf32>
    %cst_40 = arith.constant 0.00999999977 : f32
    %104 = vector.broadcast %cst_40 : f32 to vector<16x384xf32>
    %105 = arith.mulf %104, %103 : vector<16x384xf32>
    %106 = arith.maximumf %103, %105 : vector<16x384xf32>
    %cst_41 = arith.constant 0.000000e+00 : f32
    %107 = vector.shape_cast %17 : vector<1x384xi1> to vector<1x384xi1>
    %108 = vector.broadcast %107 : vector<1x384xi1> to vector<16x384xi1>
    %109 = vector.broadcast %cst_41 : f32 to vector<16x384xf32>
    %110 = arith.select %108, %106, %109 : vector<16x384xi1>, vector<16x384xf32>
    %111 = arith.truncf %110 : vector<16x384xf32> to vector<16x384xbf16>
    %112 = vector.extract_strided_slice %111 {offsets = [0, 375], sizes = [16, 9], strides = [1, 1]} : vector<16x384xbf16> to vector<16x9xbf16>
    %113 = vector.extract_strided_slice %111 {offsets = [0, 0], sizes = [16, 375], strides = [1, 1]} : vector<16x384xbf16> to vector<16x375xbf16>
    %114 = tpu.concatenate %112, %113 in 1 : vector<16x9xbf16>, vector<16x375xbf16> -> vector<16x384xbf16>
    %115 = vector.extract_strided_slice %111 {offsets = [0, 9], sizes = [16, 375], strides = [1, 1]} : vector<16x384xbf16> to vector<16x375xbf16>
    %116 = vector.extract_strided_slice %111 {offsets = [0, 0], sizes = [16, 9], strides = [1, 1]} : vector<16x384xbf16> to vector<16x9xbf16>
    %117 = tpu.concatenate %115, %116 in 1 : vector<16x375xbf16>, vector<16x9xbf16> -> vector<16x384xbf16>
    %118 = tpu.concatenate %114, %111, %117 in 0 : vector<16x384xbf16>, vector<16x384xbf16>, vector<16x384xbf16> -> vector<48x384xbf16>
    %c4 = arith.constant 4 : index
    %c0_42 = arith.constant 0 : index
    %c0_43 = arith.constant 0 : index
    %119 = vector.load %arg5[%c4, %c0_42, %c0_43] : memref<6x16x48xbf16, #tpu.memory_space<vmem>>, vector<1x16x48xbf16>
    %120 = vector.shape_cast %119 : vector<1x16x48xbf16> to vector<16x48xbf16>
    %cst_44 = arith.constant dense<0.000000e+00> : vector<16x384xf32>
    %121 = tpu.matmul %120, %118, %cst_44 {dimension_numbers = #tpu.dot_dimension_numbers<[1], [0], [0], [1], [0, 0, 1, 1], [], []>} : vector<16x48xbf16>, vector<48x384xbf16>, vector<16x384xf32> -> vector<16x384xf32>
    %c4_45 = arith.constant 4 : index
    %c0_46 = arith.constant 0 : index
    %c0_47 = arith.constant 0 : index
    %122 = vector.load %arg6[%c4_45, %c0_46, %c0_47] : memref<6x16x1xf32, #tpu.memory_space<vmem>>, vector<1x16x1xf32>
    %123 = vector.shape_cast %122 : vector<1x16x1xf32> to vector<16x1xf32>
    %124 = vector.broadcast %123 : vector<16x1xf32> to vector<16x384xf32>
    %125 = arith.addf %121, %124 : vector<16x384xf32>
    %cst_48 = arith.constant 0.00999999977 : f32
    %126 = vector.broadcast %cst_48 : f32 to vector<16x384xf32>
    %127 = arith.mulf %126, %125 : vector<16x384xf32>
    %128 = arith.maximumf %125, %127 : vector<16x384xf32>
    %cst_49 = arith.constant 0.000000e+00 : f32
    %129 = vector.shape_cast %17 : vector<1x384xi1> to vector<1x384xi1>
    %130 = vector.broadcast %129 : vector<1x384xi1> to vector<16x384xi1>
    %131 = vector.broadcast %cst_49 : f32 to vector<16x384xf32>
    %132 = arith.select %130, %128, %131 : vector<16x384xi1>, vector<16x384xf32>
    %133 = arith.truncf %132 : vector<16x384xf32> to vector<16x384xbf16>
    %134 = vector.extract_strided_slice %133 {offsets = [0, 383], sizes = [16, 1], strides = [1, 1]} : vector<16x384xbf16> to vector<16x1xbf16>
    %135 = vector.extract_strided_slice %133 {offsets = [0, 0], sizes = [16, 383], strides = [1, 1]} : vector<16x384xbf16> to vector<16x383xbf16>
    %136 = tpu.concatenate %134, %135 in 1 : vector<16x1xbf16>, vector<16x383xbf16> -> vector<16x384xbf16>
    %137 = vector.extract_strided_slice %133 {offsets = [0, 1], sizes = [16, 383], strides = [1, 1]} : vector<16x384xbf16> to vector<16x383xbf16>
    %138 = vector.extract_strided_slice %133 {offsets = [0, 0], sizes = [16, 1], strides = [1, 1]} : vector<16x384xbf16> to vector<16x1xbf16>
    %139 = tpu.concatenate %137, %138 in 1 : vector<16x383xbf16>, vector<16x1xbf16> -> vector<16x384xbf16>
    %140 = tpu.concatenate %136, %133, %139 in 0 : vector<16x384xbf16>, vector<16x384xbf16>, vector<16x384xbf16> -> vector<48x384xbf16>
    %c5 = arith.constant 5 : index
    %c0_50 = arith.constant 0 : index
    %c0_51 = arith.constant 0 : index
    %141 = vector.load %arg5[%c5, %c0_50, %c0_51] : memref<6x16x48xbf16, #tpu.memory_space<vmem>>, vector<1x16x48xbf16>
    %142 = vector.shape_cast %141 : vector<1x16x48xbf16> to vector<16x48xbf16>
    %cst_52 = arith.constant dense<0.000000e+00> : vector<16x384xf32>
    %143 = tpu.matmul %142, %140, %cst_52 {dimension_numbers = #tpu.dot_dimension_numbers<[1], [0], [0], [1], [0, 0, 1, 1], [], []>} : vector<16x48xbf16>, vector<48x384xbf16>, vector<16x384xf32> -> vector<16x384xf32>
    %c5_53 = arith.constant 5 : index
    %c0_54 = arith.constant 0 : index
    %c0_55 = arith.constant 0 : index
    %144 = vector.load %arg6[%c5_53, %c0_54, %c0_55] : memref<6x16x1xf32, #tpu.memory_space<vmem>>, vector<1x16x1xf32>
    %145 = vector.shape_cast %144 : vector<1x16x1xf32> to vector<16x1xf32>
    %146 = vector.broadcast %145 : vector<16x1xf32> to vector<16x384xf32>
    %147 = arith.addf %143, %146 : vector<16x384xf32>
    %148 = arith.addf %147, %103 : vector<16x384xf32>
    %149 = vector.extract_strided_slice %148 {offsets = [0, 128], sizes = [16, 128], strides = [1, 1]} : vector<16x384xf32> to vector<16x128xf32>
    %c0_56 = arith.constant 0 : index
    %c0_57 = arith.constant 0 : index
    %c0_58 = arith.constant 0 : index
    %150 = vector.load %arg7[%c0_56, %c0_57, %c0_58] : memref<1x16x128xf32, #tpu.memory_space<vmem>>, vector<1x16x128xf32>
    %151 = vector.shape_cast %150 : vector<1x16x128xf32> to vector<16x128xf32>
    %152 = vector.shape_cast %149 : vector<16x128xf32> to vector<1x16x128xf32>
    tpu.vector_store %arg7[%c0_56, %c0_57, %c0_58], %152 {strides = array<i32>} : memref<1x16x128xf32, #tpu.memory_space<vmem>>, vector<1x16x128xf32>,
    return
  }
  func.func @transform_0(%arg0: i32, %arg1: i32) -> (i32, i32, i32) {
    %c1_i32 = arith.constant 1 : i32
    %0 = arith.addi %arg1, %c1_i32 : i32
    %c1_i32_0 = arith.constant 1 : i32
    %1 = arith.muli %0, %c1_i32_0 : i32
    %c1_i32_1 = arith.constant 1 : i32
    %2 = arith.subi %1, %c1_i32_1 : i32
    %c0_i32 = arith.constant 0 : i32
    %c0_i32_2 = arith.constant 0 : i32
    return %arg0, %c0_i32, %2 : i32, i32, i32
  }
  func.func @transform_1(%arg0: i32, %arg1: i32) -> (i32, i32, i32) {
    %c1_i32 = arith.constant 1 : i32
    %0 = arith.addi %arg1, %c1_i32 : i32
    %c0_i32 = arith.constant 0 : i32
    %c0_i32_0 = arith.constant 0 : i32
    return %arg0, %c0_i32, %0 : i32, i32, i32
  }
  func.func @transform_2(%arg0: i32, %arg1: i32) -> (i32, i32, i32) {
    %c2_i32 = arith.constant 2 : i32
    %0 = arith.addi %arg1, %c2_i32 : i32
    %c1_i32 = arith.constant 1 : i32
    %1 = arith.muli %0, %c1_i32 : i32
    %c0_i32 = arith.constant 0 : i32
    %c0_i32_0 = arith.constant 0 : i32
    return %arg0, %c0_i32, %1 : i32, i32, i32
  }
  func.func @transform_3(%arg0: i32, %arg1: i32) -> (i32, i32, i32) {
    %c0_i32 = arith.constant 0 : i32
    %c0_i32_0 = arith.constant 0 : i32
    %c0_i32_1 = arith.constant 0 : i32
    %c0_i32_2 = arith.constant 0 : i32
    return %c0_i32, %c0_i32_0, %c0_i32_1 : i32, i32, i32
  }
  func.func @transform_4(%arg0: i32, %arg1: i32) -> (i32, i32, i32) {
    %c0_i32 = arith.constant 0 : i32
    %c0_i32_0 = arith.constant 0 : i32
    %c0_i32_1 = arith.constant 0 : i32
    %c0_i32_2 = arith.constant 0 : i32
    return %c0_i32, %c0_i32_0, %c0_i32_1 : i32, i32, i32
  }
  func.func @transform_5(%arg0: i32, %arg1: i32) -> (i32, i32, i32) {
    %c0_i32 = arith.constant 0 : i32
    %c0_i32_0 = arith.constant 0 : i32
    return %arg0, %c0_i32, %arg1 : i32, i32, i32
  }
}

</mosaic_0001>

<bundles_post_ra>
// kernel: tpu_custom_call.1
= control target key start
LH: loop header
LB: loop body
LE: loop exit
PB: predicated region body
PF: predicated region fallthrough
CT: control target
= control target key end

     0   :  { %s2871_s0 = inlined_call_operand.vmem [shape: bf16[2,16,768], index: 0, kind: input, shape index: {}]   ;;  %s2872_s1 = inlined_call_operand.hbm [shape: bf16[2,16,768], index: 1, kind: input, shape index: {}]   ;;  %s2873_s2 = inlined_call_operand.hbm [shape: bf16[2,16,768], index: 2, kind: input, shape index: {}]   ;;  %s2874_s3 = inlined_call_operand.hbm [shape: bf16[6,16,48], index: 3, kind: input, shape index: {}]   ;;  %s2875_s4 = inlined_call_operand.vmem [shape: f32[6,16,1], index: 4, kind: input, shape index: {}]   ;;  %s2876_s5 = inlined_call_operand.hbm [shape: f32[2,16,512], index: 5, kind: output, shape index: {}]  }
   0x1   :  { %2896 = sst [smem:[#allocation26_spill]] %s2871_s0 }
   0x2   :  { %2897 = sst [smem:[#allocation27_spill]] %s2872_s1 }
   0x3   :  { %2898 = sst [smem:[#allocation28_spill]] %s2874_s3 }
   0x4   :  { %2899 = sst [smem:[#allocation29_spill]] %s2875_s4 }
   0x5   :  { %2900 = sst [smem:[#allocation30_spill]] %s2876_s5 }
   0x6   :  { %10 = vsyncpa [#allocation4], 0 }
   0x7   :  { %12 = vsyncpa [#allocation4 + $0x1], 0 }
   0x8   :  { %13 = vsyncpa [#allocation7], 0 }
   0x9   :  { %15 = vsyncpa [#allocation7 + $0x1], 0 }
   0xa   :  { %16 = vsyncpa [#allocation5], 0 }
   0xb   :  { %18 = vsyncpa [#allocation5 + $0x1], 0  ;;  %s2163_s18 = smov 0   ;;  %s2165_s19 = smov 0  }
   0xc   :  { %s2167_s20 = smov 0   ;;  %s2169_s21 = smov 0  }
   0xd   :  { %s2171_s22 = smov 0   ;;  %s2173_s23 = smov 0  }
   0xe   :  { %s2175_s24 = smov 0   ;;  %s2177_s25 = smov 0  }
   0xf   :  { %s2179_s26 = smov 0   ;;  %s2181_s27 = smov 0  }
  0x10   :  { %s2183_s28 = smov 0   ;;  %s2185_s29 = smov 0  }
  0x11   :  { %s2187_s30 = smov 0   ;;  %s2189_s6 = smov 0  }
  0x12 LB: > { %2901 = sst [smem:[#allocation14_spill]] %s2058_s18  ;;  %s2234_s7 = sadd.s32 4294967295, %s2110_s6   ;;  %s2110_s6 = sphi %s2189_s6, %s24_s6   ;;  %s2106_s30 = sphi %s2187_s30, %s2976_s30   ;;  %s2102_s29 = sphi %s2185_s29, %s2975_s29   ;;  %s2098_s28 = sphi %s2183_s28, %s2974_s28   ;;  %s2094_s27 = sphi %s2181_s27, %s2973_s27   ;;  %s2090_s26 = sphi %s2179_s26, %s2972_s26   ;;  %s2086_s25 = sphi %s2177_s25, %s2971_s25   ;;  %s2082_s24 = sphi %s2175_s24, %s2970_s24   ;;  %s2078_s23 = sphi %s2173_s23, %s2969_s23   ;;  %s2074_s22 = sphi %s2171_s22, %s2968_s22   ;;  %s2070_s21 = sphi %s2169_s21, %s2967_s21   ;;  %s2066_s20 = sphi %s2167_s20, %s2966_s20   ;;  %s2062_s19 = sphi %s2165_s19, %s2958_s19   ;;  %s2058_s18 = sphi %s2163_s18, %s2965_s18  }
  0x13   : > { %2902 = sst [smem:[#allocation15_spill]] %s2066_s20  ;;  %s33_s9 = sadd.s32 1, %s2102_s29 }
  0x14   : > { %2903 = sst [smem:[#allocation16_spill]] %s2094_s27  ;;  %s36_s10 = sadd.s32 1, %s2106_s30 }
  0x15   : > { %2904 = sst [smem:[#allocation17_spill]] %s2098_s28  ;;  %p34_p0 = scmp.ge.s32.totalorder %s33_s9, 4 }
  0x16   : > { %s45_s11 = sadd.s32 1, %s2090_s26  ;;  %p52_p1 = scmp.ne.s32.totalorder %s2090_s26, %s2086_s25 }
  0x17   : > { %p53_p2 = scmp.eq.s32.totalorder %s2110_s6, 0  ;;  %s2978_s10 = smov (!%p34_p0, %s36_s10), %s2106_s30 }
  0x18   : > { %s2243_s12 = scalar_select %p34_p0, 0, %s33_s9  }
  0x19   : > { %p2253_p3 = por %p53_p2, %p52_p1  ;;  %p38_p4 = scmp.ge.s32.totalorder %s2978_s10, 2 }
  0x1a   : > { %2905 = sst [smem:[#allocation18_spill]] %s2243_s12  ;;  %s41_s13 = ssub.s32 %s2102_s29, %s2243_s12 }
  0x1b   : > { %s2906_s14 = scalar_select %p2253_p3, 1, 0 }
  0x1c   : > { %s69_s15 = sadd.s32 1, %s2243_s12  ;;  %s75_s17 = sadd.s32 1, %s2082_s24 }
  0x1d   : > { %s71_s16 = ssub.s32 %s33_s9, %s69_s15  ;;  %s2980_s10 = smov (%p38_p4, %s2978_s10), 0 }
  0x1e   : > { %2907 = sst [smem:[#allocation19_spill]] %s2980_s10  ;;  %p82_p5 = scmp.ne.s32.totalorder %s2082_s24, %s2078_s23 }
  0x1f   : > { %p88_p6 = scmp.ne.s32.totalorder %s2078_s23, %s2074_s22  ;;  %s40_s8 = ssub.s32 %s2106_s30, %s2980_s10 }
  0x20   : > { %p2886_p7 = scmp.eq.s32.totalorder %s2234_s7, 0  ;;  %s42_s5 = sor.u32 %s41_s13, %s40_s8 }
  0x21   : > { %s72_s28 = sor.u32 %s71_s16, %s40_s8  ;;  %p43_p8 = scmp.eq.s32.totalorder %s42_s5, 0 }
  0x22   : > { %p73_p9 = scmp.eq.s32.totalorder %s72_s28, 0  ;;  %p2270_p10 = por %p82_p5, %p53_p2 }
  0x23   : > { %p2276_p11 = por %p2886_p7, %p88_p6  ;;  %s98_s28 = sadd.s32 2, %s2102_s29 }
  0x24   : > { %s2908_s9 = scalar_select %p2270_p10, 1, 0 }
  0x25   : > { %s2909_s22 = scalar_select %p2276_p11, 1, 0 }
  0x26   : > { %s2281_s13 = scalar_select %p43_p8, %s2090_s26, %s45_s11  }
  0x27   : > { %s2284_s5 = scalar_select %p73_p9, %s2082_s24, %s75_s17  }
  0x28   : > { %2910 = sst [smem:[#allocation20_spill]] %s2281_s13  ;;  %s99_s15 = sadd.s32 2, %s2243_s12 }
  0x29   : > { %2911 = sst [smem:[#allocation21_spill]] %s2284_s5  ;;  %s101_s16 = ssub.s32 %s98_s28, %s99_s15 }
  0x2a   : > { %s105_s10 = sadd.s32 1, %s2070_s21  ;;  %s102_s27 = sor.u32 %s101_s16, %s40_s8 }
  0x2b   : > { %p112_p12 = scmp.ne.s32.totalorder %s2070_s21, %s2066_s20  ;;  %p103_p13 = scmp.eq.s32.totalorder %s102_s27, 0 }
  0x2c   : > { %p118_p0 = scmp.ne.s32.totalorder %s2066_s20, %s2062_s19  ;;  %p186_p5 = scmp.eq.s32.totalorder %s2234_s7, 7 }
  0x2d   : > { %p2295_p4 = por %p112_p12, %p53_p2  ;;  %p191_p9 = scmp.ne.s32.totalorder %s2086_s25, %s2058_s18 }
  0x2e   : > { %s2301_s11 = scalar_select %p103_p13, %s2070_s21, %s105_s10  }
  0x2f   : > { %s2912_s4 = scalar_select %p2295_p4, 1, 0 }
  0x30   : > { %2913 = sst [smem:[#allocation22_spill]] %s2301_s11  ;;  %p2305_p6 = por %p118_p0, %p2886_p7 }
  0x31   : > { %p2312_p8 = por %p186_p5, %p52_p1  ;;  %s2918_s19 = sadd.s32 4294967294, %s2110_s6  }
  0x32   : > { %s2914_s17 = scalar_select %p2305_p6, 1, 0 }
  0x33   : > { %s2916_s8 = scalar_select %p2312_p8, 1, 0 }
  0x34   : > { %2915 = sst [smem:[#allocation23_spill]] %s2914_s17  ;;  %p192_p11 = scmp.eq.s32.totalorder %s2918_s19, 7 }
  0x35   : > { %2917 = sst [smem:[#allocation24_spill]] %s2916_s8  ;;  %p1543_p2 = scmp.ge.s32.totalorder %s2110_s6, 1 }
  0x36   : > { %p199_p12 = scmp.lt.s32.totalorder %s2110_s6, 9  ;;  %p2322_p10 = por %p192_p11, %p191_p9 }
  0x37   : > { %s2112_s28 = smov [#allocation8]   ;;  %s2923_s3 = sld [smem:[#allocation28_spill]] }
  0x38   : > { %s2919_s27 = scalar_select %p2322_p10, 1, 0 }
  0x39   : > { %p2326_p13 = pnand %p1543_p2, %p199_p12  ;;  %s211_s15 = sshll.u32 %s2112_s28, 4  ;;  %s212_s15 = int_to_ptr.vmem [resolvable:$true] %s211_s15 }
  0x3a   : > { %2920 = sst [smem:[#allocation25_spill]] %s2919_s27 }
  0x3b   : > { %s2921_s10 = scalar_select %p2326_p13, 1, 0 }
  0x3c   : > { %p1718_p1 = pneg %p2326_p13 }
  0x3d   : > { %s1870_s13 = scalar_lea.hbm %s2923_s3, 768 }
  0x3e   : > { %p2334_p0 = pnand %p1718_p1, %p2886_p7  ;;  %p1871_p11 = scmp.ne.s32.totalorder %s2923_s3, %s1870_s13 }
  0x3f   : > { %p1877_p12 = scmp.lt.u32.totalorder %s1870_s13, %s2923_s3 }
  0x40   : > { %p1872_p5 = pneg %p2334_p0 }
  0x42   : > { %p1873_p9 = pnand %p1872_p5, %p1871_p11 }
  0x44   : > { %p1874_p2 = pneg %p1873_p9 }
  0x46   : > { %p1879_p1 = pnand %p1877_p12, %p1874_p2 }
  0x48   : > { %1882 = shalt.err (!%p1879_p1)
}
  0x49   : > { %s1883_s18 = scalar_lea.vmem %s212_s15, 768  ;;  %p1891_p6 = scmp.lt.s32.totalorder %s212_s15, %s212_s15 }
  0x4a   : > { %p1884_p7 = scmp.ne.s32.totalorder %s212_s15, %s1883_s18  ;;  %p1892_p13 = scmp.lt.s32.totalorder %s1883_s18, %s1883_s18 }
  0x4c   : > { %p1886_p10 = pnand %p1884_p7, %p1872_p5  ;;  %p1893_p4 = por %p1892_p13, %p1891_p6 }
  0x4e   : > { %p1887_p8 = pneg %p1886_p10 }
  0x50   : > { %p1894_p3 = pnand %p1893_p4, %p1887_p8 }
  0x52   : > { %1897 = shalt.err (!%p1894_p3)
}
  0x53   : > { %s2113_s12 = smov 64   ;;  %s2114_s5 = smov 4  }
  0x54   : > { %1721 = dma.hbm_to_vmem [thread:$0]  (!%p2334_p0), %s2923_s3, 768, %s212_s15, [#allocation7], %s2113_s12, %s2113_s12, %s2114_s5  }
  0x55   : > { %p1545_p11 = scmp.ge.s32.totalorder %s2110_s6, 8 }
  0x56   : > { %p2924_p9 = scmp.ne.s32.totalorder (!%p1545_p11), %s2906_s14, 0 }
  0x57   : > { %224 = sbr.rel (%p1545_p11) target bundleno = 163 (0xa3), region = 24 }
  0x5e   : > { %227 = sbr.rel (!%p2924_p9) target bundleno = 105 (0x69), region = 28  ;;  %s229_s18 = sand.u32 (%p2924_p9), 1, %s2090_s26  }
  0x5f   : > { %s1707_s13 = smul.u32 (%p2924_p9), 12, %s2106_s30  ;;  %s1546_s27 = sshll.u32 (%p2924_p9), %s229_s18, 3 }
  0x60   : > { %s2925_s0 = sld [smem:[#allocation26_spill]] (%p2924_p9)  ;;  %s231_s15 = scalar_lea.vmem (%p2924_p9), [#allocation2], %s1546_s27 }
  0x61   : > { %s233_s28 = sadd.s32 (%p2924_p9), %s2102_s29, %s1707_s13 }
  0x62   : > { %s1547_s8 = sshll.u32 (%p2924_p9), %s233_s28, 2 }
  0x66   : > { %s235_s20 = scalar_lea.vmem %s2925_s0, %s1547_s8 }
  0x67   : > { %v251_v0 = vld [vmem:[%s235_s20] sm:$0xf]  ;;  %v253_v1 = vld [vmem:[%s235_s20 + $0x18] sm:$0xf] }
  0x68   : > { %252 = vst [vmem:[%s231_s15] sm:$0xf] %v251_v0  ;;  %254 = vst [vmem:[%s231_s15 + $0x4] sm:$0xf] %v253_v1 }
  0x69 PF: > { %s282_s14 = sand.u32 1, %s2082_s24   ;;  %s1436_s12 = smul.u32 12, %s2106_s30 }
  0x6a   : > { %s1548_s5 = sshll.u32 %s282_s14, 3  ;;  %s2926_s1 = sld [smem:[#allocation27_spill]] }
  0x6b   : > { %s2366_s11 = sadd.s32 %s2102_s29, %s1436_s12  ;;  %s286_s17 = scalar_lea.vmem [#allocation3], %s1548_s5 }
  0x6c   : > { %s1549_s19 = sshll.u32 %s2366_s11, 6  ;;  %s295_s8 = sshll.u32 %s286_s17, 4  ;;  %s2374_s8 = int_to_ptr.vmem [resolvable:$true] %s295_s8 }
  0x6d   : > { %s2378_s28 = scalar_lea.sflag [#allocation4], %s282_s14  ;;  %p2927_p7 = scmp.ne.s32.totalorder %s2908_s9, 0 }
  0x70   : > { %s1439_s13 = scalar_lea.hbm %s2926_s1, %s1549_s19  ;;  %s1902_s5 = scalar_lea.hbm %s2926_s1, 1536 }
  0x71   : > { %s2376_s27 = scalar_lea.hbm %s1439_s13, 64  ;;  %s1926_s16 = scalar_lea.hbm %s1439_s13, 192 }
  0x72   : > { %p1899_p3 = scmp.ne.s32.totalorder %s2376_s27, %s1926_s16  ;;  %p1903_p6 = scmp.lt.u32.totalorder %s2376_s27, %s2926_s1 }
  0x73   : > { %p1904_p8 = scmp.lt.u32.totalorder %s1902_s5, %s1926_s16  ;;  %p1906_p0 = scmp.lt.u32.totalorder %s1926_s16, %s2376_s27 }
  0x74   : > { %p1900_p10 = pnand %p1899_p3, %p2927_p7 }
  0x75   : > { %p1905_p13 = por %p1904_p8, %p1903_p6 }
  0x76   : > { %p1901_p4 = pneg %p1900_p10 }
  0x77   : > { %p1907_p5 = por %p1906_p0, %p1905_p13 }
  0x79   : > { %p1908_p2 = pnand %p1907_p5, %p1901_p4 }
  0x7b   : > { %1911 = shalt.err (!%p1908_p2)
}
  0x7c   : > { %s1912_s14 = scalar_lea.vmem %s2374_s8, 128  ;;  %s2115_s18 = smov [#allocation3]  }
  0x7d   : > { %p1913_p12 = scmp.ne.s32.totalorder %s2374_s8, %s1912_s14  ;;  %s1916_s13 = sshll.u32 %s2115_s18, 4  ;;  %s1917_s13 = int_to_ptr.vmem [resolvable:$false] %s1916_s13 }
  0x7e   : > { %s1918_s15 = scalar_lea.vmem %s1917_s13, 256  ;;  %p1919_p9 = scmp.lt.s32.totalorder %s2374_s8, %s1917_s13 }
  0x7f   : > { %p1914_p1 = pnand %p1913_p12, %p2927_p7  ;;  %p1920_p3 = scmp.lt.s32.totalorder %s1918_s15, %s1912_s14 }
  0x81   : > { %p1915_p11 = pneg %p1914_p1  ;;  %p1921_p10 = por %p1920_p3, %p1919_p9 }
  0x83   : > { %p1922_p6 = pnand %p1921_p10, %p1915_p11 }
  0x85   : > { %1925 = shalt.err (!%p1922_p6)
}
  0x86   : > { %s2116_s16 = smov 384   ;;  %s2117_s12 = smov 64  }
  0x87   : > { %s2118_s5 = smov 4   ;;  %s305_s17 = sand.u32 1, %s2110_s6  }
  0x88   : > { %1710 = dma.hbm_to_vmem [thread:$0]  (%p2927_p7), %s2376_s27, 128, %s2374_s8, %s2378_s28, %s2116_s16, %s2117_s12, %s2118_s5  }
  0x89   : > { %s307_s20 = sand.u32 1, %s2070_s21   ;;  %s1447_s15 = scalar_lea.hbm %s2873_s2, %s1549_s19 }
  0x8a   : > { %s1550_s14 = sshll.u32 %s307_s20, 3  ;;  %s2411_s0 = scalar_lea.hbm %s1447_s15, 128 }
  0x8b   : > { %s309_s1 = scalar_lea.vmem [#allocation6], %s1550_s14  ;;  %s2415_s9 = scalar_lea.sflag [#allocation7], %s305_s17 }
  0x8c   : > { %s318_s3 = sshll.u32 %s309_s1, 4  ;;  %s1955_s8 = scalar_lea.hbm %s1447_s15, 256  ;;  %s2413_s3 = int_to_ptr.vmem [resolvable:$true] %s318_s3 }
  0x8d   : > { %p1928_p7 = scmp.ne.s32.totalorder %s2411_s0, %s1955_s8  ;;  %p2928_p4 = scmp.ne.s32.totalorder %s2912_s4, 0 }
  0x8e   : > { %s1931_s19 = scalar_lea.hbm %s2873_s2, 1536  ;;  %p1932_p0 = scmp.lt.u32.totalorder %s2411_s0, %s2873_s2 }
  0x8f   : > { %p1929_p8 = pnand %p1928_p7, %p2928_p4  ;;  %p1933_p5 = scmp.lt.u32.totalorder %s1931_s19, %s1955_s8 }
  0x90   : > { %p1935_p12 = scmp.lt.u32.totalorder %s1955_s8, %s2411_s0 }
  0x91   : > { %p1930_p13 = pneg %p1929_p8  ;;  %p1934_p2 = por %p1933_p5, %p1932_p0 }
  0x93   : > { %p1936_p1 = por %p1935_p12, %p1934_p2 }
  0x95   : > { %p1937_p11 = pnand %p1936_p1, %p1930_p13 }
  0x97   : > { %1940 = shalt.err (!%p1937_p11)
}
  0x98   : > { %s1941_s1 = scalar_lea.vmem %s2413_s3, 128  ;;  %s2119_s17 = smov [#allocation6]  }
  0x99   : > { %p1942_p9 = scmp.ne.s32.totalorder %s2413_s3, %s1941_s1  ;;  %s1945_s14 = sshll.u32 %s2119_s17, 4  ;;  %s1946_s14 = int_to_ptr.vmem [resolvable:$false] %s1945_s14 }
  0x9a   : > { %s1947_s18 = scalar_lea.vmem %s1946_s14, 256  ;;  %p1948_p6 = scmp.lt.s32.totalorder %s2413_s3, %s1946_s14 }
  0x9b   : > { %p1943_p3 = pnand %p1942_p9, %p2928_p4  ;;  %p1949_p7 = scmp.lt.s32.totalorder %s1947_s18, %s1941_s1 }
  0x9d   : > { %p1944_p10 = pneg %p1943_p3  ;;  %p1950_p8 = por %p1949_p7, %p1948_p6 }
  0x9f   : > { %p1951_p0 = pnand %p1950_p8, %p1944_p10 }
  0xa1   : > { %1954 = shalt.err (!%p1951_p0)
}
  0xa2   : > { %1711 = dma.hbm_to_vmem [thread:$0]  (%p2928_p4), %s2411_s0, 128, %s2413_s3, %s2415_s9, %s2116_s16, %s2117_s12, %s2118_s5  }
  0xa3 PF: > { %p2929_p13 = scmp.ne.s32.totalorder %s2921_s10, 0 }
  0xa4   : > { %s2444_s13 = sand.u32 (!%p2929_p13), 1, %s2086_s25   ;;  %s339_s15 = sand.u32 (!%p2929_p13), 1, %s2078_s23  }
  0xa5   : > { %330 = sbr.rel (%p2929_p13) target bundleno = 2337 (0x921), region = 77  ;;  %s1553_s8 = sshll.u32 (!%p2929_p13), %s2444_s13, 3 }
  0xa6   : > { %s1554_s4 = sshll.u32 (!%p2929_p13), %s339_s15, 3  ;;  %s335_s11 = scalar_lea.vmem (!%p2929_p13), [#allocation2], %s1553_s8 }
  0xa7   : > { %s340_s27 = scalar_lea.sflag (!%p2929_p13), [#allocation4], %s339_s15  ;;  %s343_s19 = scalar_lea.vmem (!%p2929_p13), [#allocation3], %s1554_s4 }
  0xa8   : > { %p2930_p5 = scmp.ne.s32.totalorder (!%p2929_p13), %s2909_s22, 0 }
  0xac   : > { %2041 = dma.done.wait (%p2930_p5), %s340_s27, 128  }
  0xad   : > { %2043 = vsyncadd (%p2930_p5), %s340_s27, 4294967168  ;;  %s2931_s0 = sld [smem:[#allocation15_spill]]  ;;  %s2932_s3 = sld [smem:[#allocation23_spill]] }
  0xae   : > { %s348_s10 = sand.u32 1, %s2234_s7  }
  0xaf   : > { %s349_s5 = scalar_lea.sflag [#allocation7], %s348_s10 }
  0xb3   : > { %s350_s16 = sand.u32 1, %s2931_s0   ;;  %p2933_p4 = scmp.ne.s32.totalorder %s2932_s3, 0 }
  0xb4   : > { %s1555_s12 = sshll.u32 %s350_s16, 3 }
  0xb5   : > { %s352_s9 = scalar_lea.vmem [#allocation6], %s1555_s12 }
  0xb6   : > { %2045 = dma.done.wait (%p2933_p4), %s349_s5, 128  }
  0xb7   : > { %2047 = vsyncadd (%p2933_p4), %s349_s5, 4294967168  ;;  %p2934_p2 = scmp.eq.s32.totalorder %s2234_s7, 0 }
  0xb9   : > { %2049 = dma.done.wait (%p2934_p2), [#allocation7], 768   ;;  %p2935_p12 = pmov %p2934_p2 }
  0xba   : > { %v1861_v2 = vld [vmem:[%s352_s9] sm:$0xff]   ;;  %v1863_v6 = vld [vmem:[%s343_s19] sm:$0xff]   ;;  %v2120_v7 = vmov 0.0   ;;  %s2121_s7 = smov 1   ;;  %vm2122_vm0 = vmmov 0   ;;  %v2123_v27 = vmov 0   ;;  %v425_v43 = vlaneseq }
  0xbb   : > { %2051 = vsyncadd (%p2935_p12), [#allocation7], 4294966528  ;;  %v1862_v3 = vld [vmem:[%s335_s11] sm:$0xff]   ;;  %v2462_v4 = vunpack.c.l.bf16 %v1861_v2  ;;  %v2464_v5 = vunpack.c.h.bf16 %v1861_v2  ;;  %1657 = vmatprep.subr.bf16.mxu1 %v2120_v7  ;;  %v2473_v12 = vunpack.c.l.bf16 %v1863_v6  ;;  %v2475_v13 = vunpack.c.h.bf16 %v1863_v6  ;;  %1663 = vmatprep.mubr.msk.bf16.mxu1 %vm2122_vm0, %v2120_v7  ;;  %s2124_s22 = smov 127   ;;  %s2936_s1 = sld [smem:[#allocation29_spill]]  ;;  %v1864_v41 = vld [vmem:[#allocation8] sm:$0xff]  }
  0xbc   : > { %v2467_v8 = vunpack.c.l.bf16 %v1862_v3  ;;  %v2469_v9 = vunpack.c.h.bf16 %v1862_v3  ;;  %549 = vmatprep.mubr.bf16.mxu0 %v2123_v27  ;;  %1859 = vset.pattern.permute.xlu0 %v2123_v27  ;;  %vm468_vm1 = vcmask 7168   ;;  %vm484_vm2 = vcmask 1039360   ;;  %s2937_s18 = sld [smem:[#allocation16_spill]]  ;;  %s2125_s0 = smov 3  }
  0xbd   : > { %v446_v10 = vmul.f32 0.01, %v2462_v4  ;;  %v449_v11 = vmul.f32 0.01, %v2464_v5  ;;  %v445_v18 = vmul.f32 0.01, %v2473_v12  ;;  %1860 = vset.pattern.permute.xlu1 %v2123_v27 }
  0xbe   : > { %v444_v14 = vmul.f32 0.01, %v2467_v8  ;;  %v447_v15 = vmul.f32 0.01, %v2469_v9  ;;  %v448_v19 = vmul.f32 0.01, %v2475_v13 }
  0xbf   : > { %v452_v16 = vmax.f32 %v2462_v4, %v446_v10  ;;  %v455_v17 = vmax.f32 %v2464_v5, %v449_v11  ;;  %v451_v23 = vmax.f32 %v2473_v12, %v445_v18  ;;  %vm513_vm3 = vcmask 392192   ;;  %s2126_s3 = smov 125   ;;  %s2127_s14 = smov 9  }
  0xc0   : > { %v450_v20 = vmax.f32 %v2467_v8, %v444_v14  ;;  %v453_v21 = vmax.f32 %v2469_v9, %v447_v15  ;;  %v454_v24 = vmax.f32 %v2475_v13, %v448_v19  ;;  %v426_v44 = vand.u32 127, %v425_v43  ;;  %s2951_s28 = sld [smem:[#allocation24_spill]]  ;;  %s2129_s11 = smov [#allocation9]  }
  0xc1   : > { %v458_v22 = vpack.c.bf16 %v455_v17, %v452_v16  ;;  %v497_v28 = vld [vmem:[%s2936_s1 + $0x8] sm:$0xff]  ;;  %v496_v29 = vld [vmem:[%s2936_s1] sm:$0xff]  ;;  %v1622_v2 = vld [vmem:[%s2936_s1 + $0x50] sm:$0xff]  ;;  %s1960_s27 = sshll.u32 %s2129_s11, 4  ;;  %s1961_s27 = int_to_ptr.vmem [resolvable:$false] %s1960_s27 }
  0xc2   : > { %v456_v25 = vpack.c.bf16 %v453_v21, %v450_v20  ;;  %v457_v26 = vpack.c.bf16 %v454_v24, %v451_v23  ;;  %s1561_s15 = sshll.u32 %s2937_s18, 7  ;;  %v428_v45 = vadd.s32 256, %v426_v44  ;;  %v427_v47 = vadd.s32 128, %v426_v44  ;;  %v1623_v20 = vld [vmem:[%s2936_s1 + $0x58] sm:$0xff]  ;;  %s1962_s19 = scalar_lea.vmem %s1961_s27, 512 }
  0xc3   : > { %460 = vrot.lane.b32.xlu1 %v458_v22, %s2121_s7  ;;  %s1562_s8 = sadd.s32 4294967168, %s1561_s15  ;;  %s2128_s15 = smov 119  }
  0xc4   : > { %464 = vrot.lane.b32.xlu0 %v456_v25, %s2121_s7  ;;  %v431_v46 = vstv %s1562_s8  ;;  %s1383_s8 = scalar_lea.sflag [#allocation5], %s2444_s13 }
  0xc5   : > { %v434_v48 = vadd.s32 %v431_v46, %v428_v45  ;;  %v432_v50 = vadd.s32 %v431_v46, %v426_v44  ;;  %v433_v53 = vadd.s32 %v431_v46, %v427_v47 }
  0xc6   : > { %p2953_p11 = scmp.ne.s32.totalorder %s2951_s28, 0 }
  0xc7   : > { %480 = vrot.lane.b32.xlu1 %v457_v26, %s2124_s22  ;;  %vm437_vm4 = vcmp.ge.s32.totalorder %v434_v48, 0  ;;  %vm440_vm5 = vcmp.lt.s32.totalorder %v434_v48, 512  ;;  %vm435_vm6 = vcmp.ge.s32.totalorder %v432_v50, 0  ;;  %vm438_vm7 = vcmp.lt.s32.totalorder %v432_v50, 512 }
  0xc8   : > { %466 = vrot.lane.b32.xlu0 %v457_v26, %s2121_s7  ;;  %vm436_vm8 = vcmp.ge.s32.totalorder %v433_v53, 0  ;;  %vm439_vm9 = vcmp.lt.s32.totalorder %v433_v53, 512  ;;  %vm2520_vm10 = vmand %vm437_vm4, %vm440_vm5  ;;  %vm803_vm4 = vcmask 23552   ;;  %vm819_vm5 = vcmask 1022976  }
  0xc9   : > { %vm2526_vm11 = vmand %vm435_vm6, %vm438_vm7  ;;  %vm1149_vm6 = vcmask 973824  }
  0xca   : > { %vm2534_vm12 = vmand %vm436_vm8, %vm439_vm9 }
  0xcb   : > { %478 = vrot.lane.b32.xlu1 %v456_v25, %s2124_s22  ;;  %vm2564_vm13 = vmpackc.low %vm2534_vm12, %vm2534_vm12 }
  0xcc   : > { %482 = vrot.lane.b32.xlu0 %v458_v22, %s2124_s22  ;;  %vm2573_vm14 = vmpackc.low %vm2526_vm11, %vm2526_vm11 }
  0xcd   : > { %vm2583_vm15 = vmpackc.low %vm2520_vm10, %vm2520_vm10 }
  0xcf   : > { %505 = vperm.xlu1 %1860, %v497_v28  }
  0xd0   : > { %500 = vperm.xlu0 %1859, %v496_v29  }
 0x135   : > { %v461_v30 = vpop.permute.xlu1 %460 }
 0x136   : > { %v465_v31 = vpop.permute.xlu0 %464 }
 0x137   : > { %v476_v36 = vsel %vm468_vm1, %v461_v30, %v465_v31 }
 0x139   : > { %v481_v33 = vpop.permute.xlu1 %480 }
 0x13a   : > { %v467_v32 = vpop.permute.xlu0 %466 }
 0x13b   : > { %v469_v34 = vsel %vm468_vm1, %v465_v31, %v467_v32  ;;  %v470_v35 = vsel %vm468_vm1, %v467_v32, %v461_v30 }
 0x13c   : > { %517 = vmatprep.subr.bf16.mxu0 %v469_v34  ;;  %1658 = vmatpush3.bf16.msra.mxu1 %v470_v35 }
 0x13d   : > { %518 = vmatpush1.bf16.msra.mxu0 %v476_v36  ;;  %1659 = vmatprep.subr.bf16.mxu1 %v2120_v7  ;;  %v479_v39 = vpop.permute.xlu1 %478 }
 0x13e   : > { %v483_v37 = vpop.permute.xlu0 %482  ;;  %519 = vmatprep.subr.bf16.mxu0 %v457_v26  ;;  %v485_v42 = vsel %vm484_vm2, %v479_v39, %v481_v33 }
 0x13f   : > { %v486_v38 = vsel %vm484_vm2, %v481_v33, %v483_v37  ;;  %v492_v40 = vsel %vm484_vm2, %v483_v37, %v479_v39  ;;  %v1567_v39 = vld [vmem:[%s2936_s1 + $0x18] sm:$0xff] }
 0x140   : > { %1660 = vmatpush3.bf16.msra.mxu1 %v458_v22 }
 0x141   : > { %520 = vmatpush1.bf16.msra.mxu0 %v456_v25  ;;  %1661 = vmatprep.subr.bf16.mxu1 %v2120_v7 }
 0x142   : > { %521 = vmatprep.subr.bf16.mxu0 %v486_v38  ;;  %v1566_v38 = vld [vmem:[%s2936_s1 + $0x10] sm:$0xff] }
 0x144   : > { %1662 = vmatpush3.bf16.msra.mxu1 %v492_v40 }
 0x145   : > { %522 = vmatpush1.bf16.msra.mxu0 %v485_v42  ;;  %1667 = vmatprep.subr.bf16.mxu1 %v2120_v7 }
 0x147   : > { %1664 = vmatmul.mubr.msk.bf16.vlgmr.msra.gmra.mrb[0].mxu1 %vm513_vm3, %v1864_v41 }
 0x148   : > { %1564 = vmatmul.mubr.msk.bf16.vlgmr.msra.gmra.mrb[0].mxu0 %vm513_vm3, %v1864_v41  ;;  %1673 = vmatprep.mubr.msk.bf16.mxu1 %vm2122_vm0, %v2120_v7 }
 0x149   : > { %715 = vmatprep.mubr.bf16.mxu0 %v2123_v27 }
 0x14e   : > { %v506_v52 = vpop.permute.xlu1 %505 }
 0x14f   : > { %v501_v49 = vpop.permute.xlu0 %500 }
 0x21a   : > { %v594_v51 = vpop.f32.mrb[0].mxu1 }
 0x21b   : > { %v551_v54 = vpop.f32.mrb[0].mxu0  ;;  %v1665_v55 = vpop.f32.mrb[1].mxu1  ;;  %v595_v56 = vadd.f32 %v594_v51, %v501_v49 }
 0x21c   : > { %v552_v57 = vadd.f32 %v551_v54, %v501_v49  ;;  %v553_v58 = vpop.f32.mrb[1].mxu0  ;;  %v597_v59 = vpop.f32.mrb[2].mxu1  ;;  %v1865_v55 = vld [vmem:[#allocation8 + $0x8] sm:$0xff]  }
 0x21d   : > { %v603_v60 = vmul.f32 0.01, %v595_v56  ;;  %v554_v61 = vadd.f32 %v553_v58, %v501_v49  ;;  %v598_v62 = vadd.f32 %v597_v59, %v506_v52  ;;  %v555_v63 = vpop.f32.mrb[2].mxu0  ;;  %v1666_v0 = vpop.f32.mrb[3].mxu1 }
 0x21e   : > { %v601_v1 = vmul.f32 0.01, %v552_v57  ;;  %v556_v3 = vadd.f32 %v555_v63, %v506_v52  ;;  %v557_v6 = vpop.f32.mrb[3].mxu0 }
 0x21f   : > { %v609_v10 = vmax.f32 %v595_v56, %v603_v60  ;;  %v602_v11 = vmul.f32 0.01, %v554_v61  ;;  %v606_v14 = vmul.f32 0.01, %v598_v62  ;;  %v558_v15 = vadd.f32 %v557_v6, %v506_v52 }
 0x220   : > { %v607_v16 = vmax.f32 %v552_v57, %v601_v1  ;;  %v604_v17 = vmul.f32 0.01, %v556_v3 }
 0x221   : > { %v608_v18 = vmax.f32 %v554_v61, %v602_v11  ;;  %v612_v19 = vmax.f32 %v598_v62, %v606_v14  ;;  %v605_v21 = vmul.f32 0.01, %v558_v15  ;;  %v621_v22 = vsel %vm2520_vm10, %v609_v10, 0.0 }
 0x222   : > { %v610_v24 = vmax.f32 %v556_v3, %v604_v17  ;;  %v619_v31 = vsel %vm2526_vm11, %v607_v16, 0.0 }
 0x223   : > { %v624_v25 = vsel %vm2520_vm10, %v612_v19, 0.0  ;;  %v1577_v26 = vpack.c.bf16 %v612_v19, %v609_v10  ;;  %v611_v28 = vmax.f32 %v558_v15, %v605_v21  ;;  %v620_v33 = vsel %vm2534_vm12, %v608_v18, 0.0 }
 0x224   : > { %v622_v29 = vsel %vm2526_vm11, %v610_v24, 0.0  ;;  %v1573_v30 = vpack.c.bf16 %v610_v24, %v607_v16  ;;  %v627_v32 = vpack.c.bf16 %v624_v25, %v621_v22 }
 0x225   : > { %v623_v34 = vsel %vm2534_vm12, %v611_v28, 0.0  ;;  %v1570_v35 = vpack.c.bf16 %v611_v28, %v608_v18  ;;  %v625_v36 = vpack.c.bf16 %v622_v29, %v619_v31 }
 0x226   : > { %v626_v37 = vpack.c.bf16 %v623_v34, %v620_v33 }
 0x227   : > { %633 = vrot.lane.b32.xlu1 %v625_v36, %s2121_s7 }
 0x228   : > { %635 = vrot.lane.b32.xlu0 %v626_v37, %s2121_s7 }
 0x22b   : > { %629 = vrot.lane.b32.xlu1 %v627_v32, %s2121_s7 }
 0x22c   : > { %647 = vrot.lane.b32.xlu0 %v626_v37, %s2124_s22 }
 0x22f   : > { %649 = vrot.lane.b32.xlu1 %v627_v32, %s2124_s22 }
 0x230   : > { %645 = vrot.lane.b32.xlu0 %v625_v36, %s2124_s22 }
 0x233   : > { %667 = vperm.xlu1 %1860, %v1566_v38  }
 0x234   : > { %672 = vperm.xlu0 %1859, %v1567_v39  }
 0x299   : > { %v634_v40 = vpop.permute.xlu1 %633 }
 0x29a   : > { %v636_v41 = vpop.permute.xlu0 %635 }
 0x29b   : > { %v637_v42 = vsel %vm468_vm1, %v634_v40, %v636_v41 }
 0x29c   : > { %683 = vmatprep.subr.bf16.mxu0 %v637_v42 }
 0x29d   : > { %v630_v43 = vpop.permute.xlu1 %629 }
 0x29e   : > { %v638_v45 = vsel %vm468_vm1, %v636_v41, %v630_v43  ;;  %v643_v46 = vsel %vm468_vm1, %v630_v43, %v634_v40  ;;  %v648_v47 = vpop.permute.xlu0 %647  ;;  %v1580_v43 = vld [vmem:[%s2936_s1 + $0x20] sm:$0xff] }
 0x29f   : > { %684 = vmatpush1.bf16.msra.mxu0 %v643_v46  ;;  %1668 = vmatpush3.bf16.msra.mxu1 %v638_v45  ;;  %v1581_v45 = vld [vmem:[%s2936_s1 + $0x28] sm:$0xff] }
 0x2a0   : > { %1571 = vmatprep.subr.msk.bf16.mxu0 %vm2564_vm13, %v1570_v35  ;;  %1669 = vmatprep.subr.bf16.mxu1 %v2120_v7 }
 0x2a1   : > { %v650_v50 = vpop.permute.xlu1 %649 }
 0x2a2   : > { %v652_v51 = vsel %vm484_vm2, %v648_v47, %v650_v50  ;;  %v646_v52 = vpop.permute.xlu0 %645 }
 0x2a3   : > { %1574 = vmatpush1.bf16.msk.msra.mxu0 %vm2573_vm14, %v1573_v30  ;;  %1670 = vmatpush3.bf16.msk.msra.mxu1 %vm2583_vm15, %v1577_v26  ;;  %v651_v53 = vsel %vm484_vm2, %v646_v52, %v648_v47  ;;  %v657_v54 = vsel %vm484_vm2, %v650_v50, %v646_v52 }
 0x2a4   : > { %687 = vmatprep.subr.bf16.mxu0 %v652_v51  ;;  %1671 = vmatprep.subr.bf16.mxu1 %v2120_v7 }
 0x2a7   : > { %688 = vmatpush1.bf16.msra.mxu0 %v651_v53  ;;  %1672 = vmatpush3.bf16.msra.mxu1 %v657_v54 }
 0x2a8   : > { %1677 = vmatprep.subr.bf16.mxu1 %v2120_v7 }
 0x2aa   : > { %1575 = vmatmul.mubr.msk.bf16.vlgmr.msra.gmra.mrb[4].mxu0 %vm513_vm3, %v1865_v55  ;;  %1674 = vmatmul.mubr.msk.bf16.vlgmr.msra.gmra.mrb[4].mxu1 %vm513_vm3, %v1865_v55 }
 0x2ab   : > { %885 = vmatprep.mubr.bf16.mxu0 %v2123_v27  ;;  %1683 = vmatprep.mubr.msk.bf16.mxu1 %vm2122_vm0, %v2120_v7 }
 0x2b2   : > { %v668_v56 = vpop.permute.xlu1 %667 }
 0x2b3   : > { %v673_v57 = vpop.permute.xlu0 %672 }
 0x37d   : > { %v717_v58 = vpop.f32.mrb[4].mxu0  ;;  %v760_v59 = vpop.f32.mrb[4].mxu1 }
 0x37e   : > { %v718_v60 = vadd.f32 %v717_v58, %v668_v56  ;;  %v761_v61 = vadd.f32 %v760_v59, %v668_v56  ;;  %v719_v62 = vpop.f32.mrb[5].mxu0  ;;  %v1675_v63 = vpop.f32.mrb[5].mxu1 }
 0x37f   : > { %v720_v0 = vadd.f32 %v719_v62, %v668_v56  ;;  %v721_v1 = vpop.f32.mrb[6].mxu0  ;;  %v763_v3 = vpop.f32.mrb[6].mxu1 }
 0x380   : > { %v2602_v6 = vadd.f32 %v718_v60, %v2467_v8  ;;  %v2605_v10 = vadd.f32 %v761_v61, %v2462_v4  ;;  %v722_v11 = vadd.f32 %v721_v1, %v673_v57  ;;  %v764_v14 = vadd.f32 %v763_v3, %v673_v57  ;;  %v723_v15 = vpop.f32.mrb[7].mxu0  ;;  %v1676_v16 = vpop.f32.mrb[7].mxu1  ;;  %v1866_v60 = vld [vmem:[#allocation8 + $0x10] sm:$0xff]  }
 0x381   : > { %v2608_v17 = vadd.f32 %v720_v0, %v2473_v12  ;;  %v724_v18 = vadd.f32 %v723_v15, %v673_v57 }
 0x382   : > { %v773_v19 = vmul.f32 0.01, %v2602_v6  ;;  %v775_v21 = vmul.f32 0.01, %v2605_v10  ;;  %v2613_v22 = vadd.f32 %v722_v11, %v2469_v9  ;;  %v2616_v8 = vadd.f32 %v764_v14, %v2464_v5 }
 0x383   : > { %v774_v4 = vmul.f32 0.01, %v2608_v17  ;;  %v2620_v24 = vadd.f32 %v724_v18, %v2475_v13 }
 0x384   : > { %v776_v25 = vmul.f32 0.01, %v2613_v22  ;;  %v778_v12 = vmul.f32 0.01, %v2616_v8  ;;  %v779_v26 = vmax.f32 %v2602_v6, %v773_v19  ;;  %v781_v5 = vmax.f32 %v2605_v10, %v775_v21 }
 0x385   : > { %v777_v28 = vmul.f32 0.01, %v2620_v24  ;;  %v780_v29 = vmax.f32 %v2608_v17, %v774_v4 }
 0x386   : > { %v782_v9 = vmax.f32 %v2613_v22, %v776_v25  ;;  %v784_v30 = vmax.f32 %v2616_v8, %v778_v12  ;;  %v785_v13 = vsel %vm2526_vm11, %v779_v26, 0.0  ;;  %v787_v41 = vsel %vm2520_vm10, %v781_v5, 0.0 }
 0x387   : > { %v783_v31 = vmax.f32 %v2620_v24, %v777_v28  ;;  %v786_v36 = vsel %vm2534_vm12, %v780_v29, 0.0 }
 0x388   : > { %v788_v32 = vsel %vm2526_vm11, %v782_v9, 0.0  ;;  %v1587_v33 = vpack.c.bf16 %v782_v9, %v779_v26  ;;  %v1591_v34 = vpack.c.bf16 %v784_v30, %v781_v5  ;;  %v790_v40 = vsel %vm2520_vm10, %v784_v30, 0.0 }
 0x389   : > { %v791_v35 = vpack.c.bf16 %v788_v32, %v785_v13  ;;  %v789_v37 = vsel %vm2534_vm12, %v783_v31, 0.0  ;;  %v1584_v38 = vpack.c.bf16 %v783_v31, %v780_v29  ;;  %v793_v42 = vpack.c.bf16 %v790_v40, %v787_v41 }
 0x38a   : > { %v792_v39 = vpack.c.bf16 %v789_v37, %v786_v36 }
 0x38b   : > { %799 = vrot.lane.b32.xlu1 %v791_v35, %s2125_s0 }
 0x38c   : > { %801 = vrot.lane.b32.xlu0 %v792_v39, %s2125_s0 }
 0x38f   : > { %795 = vrot.lane.b32.xlu1 %v793_v42, %s2125_s0 }
 0x390   : > { %815 = vrot.lane.b32.xlu0 %v792_v39, %s2126_s3 }
 0x393   : > { %817 = vrot.lane.b32.xlu1 %v793_v42, %s2126_s3 }
 0x394   : > { %813 = vrot.lane.b32.xlu0 %v791_v35, %s2126_s3 }
 0x397   : > { %837 = vperm.xlu1 %1860, %v1580_v43  }
 0x398   : > { %842 = vperm.xlu0 %1859, %v1581_v45  }
 0x3fd   : > { %v800_v46 = vpop.permute.xlu1 %799 }
 0x3fe   : > { %v802_v47 = vpop.permute.xlu0 %801 }
 0x3ff   : > { %v804_v50 = vsel %vm803_vm4, %v800_v46, %v802_v47 }
 0x400   : > { %853 = vmatprep.subr.bf16.mxu0 %v804_v50 }
 0x401   : > { %v796_v51 = vpop.permute.xlu1 %795 }
 0x402   : > { %v805_v52 = vsel %vm803_vm4, %v802_v47, %v796_v51  ;;  %v811_v53 = vsel %vm803_vm4, %v796_v51, %v800_v46  ;;  %v816_v54 = vpop.permute.xlu0 %815  ;;  %v1594_v51 = vld [vmem:[%s2936_s1 + $0x30] sm:$0xff] }
 0x403   : > { %854 = vmatpush1.bf16.msra.mxu0 %v811_v53  ;;  %1678 = vmatpush3.bf16.msra.mxu1 %v805_v52  ;;  %v1595_v52 = vld [vmem:[%s2936_s1 + $0x38] sm:$0xff] }
 0x404   : > { %1585 = vmatprep.subr.msk.bf16.mxu0 %vm2564_vm13, %v1584_v38  ;;  %1679 = vmatprep.subr.bf16.mxu1 %v2120_v7 }
 0x405   : > { %v818_v55 = vpop.permute.xlu1 %817 }
 0x406   : > { %v821_v56 = vsel %vm819_vm5, %v816_v54, %v818_v55  ;;  %v814_v57 = vpop.permute.xlu0 %813 }
 0x407   : > { %1588 = vmatpush1.bf16.msk.msra.mxu0 %vm2573_vm14, %v1587_v33  ;;  %1680 = vmatpush3.bf16.msk.msra.mxu1 %vm2583_vm15, %v1591_v34  ;;  %v820_v58 = vsel %vm819_vm5, %v814_v57, %v816_v54  ;;  %v827_v59 = vsel %vm819_vm5, %v818_v55, %v814_v57 }
 0x408   : > { %857 = vmatprep.subr.bf16.mxu0 %v821_v56  ;;  %1681 = vmatprep.subr.bf16.mxu1 %v2120_v7 }
 0x40b   : > { %858 = vmatpush1.bf16.msra.mxu0 %v820_v58  ;;  %1682 = vmatpush3.bf16.msra.mxu1 %v827_v59 }
 0x40c   : > { %1687 = vmatprep.subr.bf16.mxu1 %v2120_v7 }
 0x40e   : > { %1589 = vmatmul.mubr.msk.bf16.vlgmr.msra.gmra.mrb[8].mxu0 %vm513_vm3, %v1866_v60  ;;  %1684 = vmatmul.mubr.msk.bf16.vlgmr.msra.gmra.mrb[8].mxu1 %vm513_vm3, %v1866_v60 }
 0x40f   : > { %1045 = vmatprep.mubr.bf16.mxu0 %v2123_v27  ;;  %1693 = vmatprep.mubr.msk.bf16.mxu1 %vm2122_vm0, %v2120_v7 }
 0x416   : > { %v838_v61 = vpop.permute.xlu1 %837 }
 0x417   : > { %v843_v62 = vpop.permute.xlu0 %842 }
 0x4e1   : > { %v887_v63 = vpop.f32.mrb[8].mxu0  ;;  %v930_v0 = vpop.f32.mrb[8].mxu1 }
 0x4e2   : > { %v888_v1 = vadd.f32 %v887_v63, %v838_v61  ;;  %v931_v3 = vadd.f32 %v930_v0, %v838_v61  ;;  %v889_v11 = vpop.f32.mrb[9].mxu0  ;;  %v1685_v14 = vpop.f32.mrb[9].mxu1 }
 0x4e3   : > { %v890_v15 = vadd.f32 %v889_v11, %v838_v61  ;;  %v891_v16 = vpop.f32.mrb[10].mxu0  ;;  %v933_v18 = vpop.f32.mrb[10].mxu1 }
 0x4e4   : > { %v937_v19 = vmul.f32 0.01, %v888_v1  ;;  %v939_v21 = vmul.f32 0.01, %v931_v3  ;;  %v892_v4 = vadd.f32 %v891_v16, %v843_v62  ;;  %v934_v25 = vadd.f32 %v933_v18, %v843_v62  ;;  %v893_v12 = vpop.f32.mrb[11].mxu0  ;;  %v1686_v26 = vpop.f32.mrb[11].mxu1 }
 0x4e5   : > { %v938_v28 = vmul.f32 0.01, %v890_v15  ;;  %v894_v29 = vadd.f32 %v893_v12, %v843_v62 }
 0x4e6   : > { %v943_v9 = vmax.f32 %v888_v1, %v937_v19  ;;  %v945_v5 = vmax.f32 %v931_v3, %v939_v21  ;;  %v940_v30 = vmul.f32 0.01, %v892_v4  ;;  %v942_v31 = vmul.f32 0.01, %v934_v25  ;;  %v1867_v1 = vld [vmem:[#allocation8 + $0x18] sm:$0xff]  }
 0x4e7   : > { %v944_v13 = vmax.f32 %v890_v15, %v938_v28  ;;  %v941_v32 = vmul.f32 0.01, %v894_v29 }
 0x4e8   : > { %v946_v33 = vmax.f32 %v892_v4, %v940_v30  ;;  %v948_v34 = vmax.f32 %v934_v25, %v942_v31  ;;  %v949_v35 = vsel %vm2526_vm11, %v943_v9, 0.0  ;;  %v951_v36 = vsel %vm2520_vm10, %v945_v5, 0.0 }
 0x4e9   : > { %v950_v37 = vsel %vm2534_vm12, %v944_v13, 0.0  ;;  %v947_v38 = vmax.f32 %v894_v29, %v941_v32 }
 0x4ea   : > { %v952_v39 = vsel %vm2526_vm11, %v946_v33, 0.0  ;;  %v1601_v40 = vpack.c.bf16 %v946_v33, %v943_v9  ;;  %v954_v41 = vsel %vm2520_vm10, %v948_v34, 0.0  ;;  %v1605_v42 = vpack.c.bf16 %v948_v34, %v945_v5 }
 0x4eb   : > { %v953_v43 = vsel %vm2534_vm12, %v947_v38, 0.0  ;;  %v1598_v45 = vpack.c.bf16 %v947_v38, %v944_v13  ;;  %v955_v46 = vpack.c.bf16 %v952_v39, %v949_v35  ;;  %v957_v47 = vpack.c.bf16 %v954_v41, %v951_v36 }
 0x4ec   : > { %v956_v50 = vpack.c.bf16 %v953_v43, %v950_v37 }
 0x4ed   : > { %963 = vrot.lane.b32.xlu1 %v955_v46, %s2121_s7 }
 0x4ee   : > { %965 = vrot.lane.b32.xlu0 %v956_v50, %s2121_s7 }
 0x4f1   : > { %959 = vrot.lane.b32.xlu1 %v957_v47, %s2121_s7 }
 0x4f2   : > { %977 = vrot.lane.b32.xlu0 %v956_v50, %s2124_s22 }
 0x4f5   : > { %979 = vrot.lane.b32.xlu1 %v957_v47, %s2124_s22 }
 0x4f6   : > { %975 = vrot.lane.b32.xlu0 %v955_v46, %s2124_s22 }
 0x4f9   : > { %997 = vperm.xlu1 %1860, %v1594_v51  }
 0x4fa   : > { %1002 = vperm.xlu0 %1859, %v1595_v52  }
 0x55f   : > { %v964_v53 = vpop.permute.xlu1 %963 }
 0x560   : > { %v966_v54 = vpop.permute.xlu0 %965 }
 0x561   : > { %v967_v55 = vsel %vm468_vm1, %v964_v53, %v966_v54 }
 0x562   : > { %1013 = vmatprep.subr.bf16.mxu0 %v967_v55 }
 0x563   : > { %v960_v56 = vpop.permute.xlu1 %959 }
 0x564   : > { %v968_v57 = vsel %vm468_vm1, %v966_v54, %v960_v56  ;;  %v973_v58 = vsel %vm468_vm1, %v960_v56, %v964_v53  ;;  %v978_v59 = vpop.permute.xlu0 %977  ;;  %v1608_v56 = vld [vmem:[%s2936_s1 + $0x40] sm:$0xff] }
 0x565   : > { %1014 = vmatpush1.bf16.msra.mxu0 %v973_v58  ;;  %1688 = vmatpush3.bf16.msra.mxu1 %v968_v57  ;;  %v1609_v57 = vld [vmem:[%s2936_s1 + $0x48] sm:$0xff] }
 0x566   : > { %1599 = vmatprep.subr.msk.bf16.mxu0 %vm2564_vm13, %v1598_v45  ;;  %1689 = vmatprep.subr.bf16.mxu1 %v2120_v7 }
 0x567   : > { %v980_v60 = vpop.permute.xlu1 %979 }
 0x568   : > { %v982_v61 = vsel %vm484_vm2, %v978_v59, %v980_v60  ;;  %v976_v62 = vpop.permute.xlu0 %975 }
 0x569   : > { %1602 = vmatpush1.bf16.msk.msra.mxu0 %vm2573_vm14, %v1601_v40  ;;  %1690 = vmatpush3.bf16.msk.msra.mxu1 %vm2583_vm15, %v1605_v42  ;;  %v981_v63 = vsel %vm484_vm2, %v976_v62, %v978_v59  ;;  %v987_v0 = vsel %vm484_vm2, %v980_v60, %v976_v62 }
 0x56a   : > { %1017 = vmatprep.subr.bf16.mxu0 %v982_v61  ;;  %1691 = vmatprep.subr.bf16.mxu1 %v2120_v7 }
 0x56d   : > { %1018 = vmatpush1.bf16.msra.mxu0 %v981_v63  ;;  %1692 = vmatpush3.bf16.msra.mxu1 %v987_v0 }
 0x56e   : > { %1697 = vmatprep.subr.bf16.mxu1 %v2120_v7 }
 0x570   : > { %1603 = vmatmul.mubr.msk.bf16.vlgmr.msra.gmra.mrb[12].mxu0 %vm513_vm3, %v1867_v1  ;;  %1694 = vmatmul.mubr.msk.bf16.vlgmr.msra.gmra.mrb[12].mxu1 %vm513_vm3, %v1867_v1 }
 0x571   : > { %1215 = vmatprep.mubr.bf16.mxu0 %v2123_v27  ;;  %1703 = vmatprep.mubr.msk.bf16.mxu1 %vm2122_vm0, %v2120_v7  ;;  %vm1133_vm0 = vcmask 72704  }
 0x578   : > { %v998_v3 = vpop.permute.xlu1 %997 }
 0x579   : > { %v1003_v11 = vpop.permute.xlu0 %1002 }
 0x643   : > { %v1047_v14 = vpop.f32.mrb[12].mxu0  ;;  %v1090_v15 = vpop.f32.mrb[12].mxu1 }
 0x644   : > { %v1048_v16 = vadd.f32 %v1047_v14, %v998_v3  ;;  %v1091_v18 = vadd.f32 %v1090_v15, %v998_v3  ;;  %v1049_v19 = vpop.f32.mrb[13].mxu0  ;;  %v1695_v21 = vpop.f32.mrb[13].mxu1 }
 0x645   : > { %v1050_v4 = vadd.f32 %v1049_v19, %v998_v3  ;;  %v1051_v25 = vpop.f32.mrb[14].mxu0  ;;  %v1093_v12 = vpop.f32.mrb[14].mxu1 }
 0x646   : > { %v1097_v26 = vadd.f32 %v1048_v16, %v2602_v6  ;;  %v1099_v28 = vadd.f32 %v1091_v18, %v2605_v10  ;;  %v1052_v29 = vadd.f32 %v1051_v25, %v1003_v11  ;;  %v1094_v9 = vadd.f32 %v1093_v12, %v1003_v11  ;;  %v1053_v5 = vpop.f32.mrb[15].mxu0  ;;  %v1696_v30 = vpop.f32.mrb[15].mxu1  ;;  %v1868_v16 = vld [vmem:[#allocation8 + $0x20] sm:$0xff]  }
 0x647   : > { %v2710_v31 = vadd.f32 %v1050_v4, %v2608_v17  ;;  %v1054_v13 = vadd.f32 %v1053_v5, %v1003_v11 }
 0x648   : > { %v1103_v32 = vmul.f32 0.01, %v1097_v26  ;;  %v1105_v33 = vmul.f32 0.01, %v1099_v28  ;;  %v1100_v34 = vadd.f32 %v1052_v29, %v2613_v22  ;;  %v1102_v35 = vadd.f32 %v1094_v9, %v2616_v8 }
 0x649   : > { %v1104_v36 = vmul.f32 0.01, %v2710_v31  ;;  %v2716_v6 = vadd.f32 %v1054_v13, %v2620_v24 }
 0x64a   : > { %v1109_v10 = vmax.f32 %v1097_v26, %v1103_v32  ;;  %v1111_v37 = vmax.f32 %v1099_v28, %v1105_v33  ;;  %v1106_v38 = vmul.f32 0.01, %v1100_v34  ;;  %v1108_v39 = vmul.f32 0.01, %v1102_v35 }
 0x64b   : > { %v1107_v40 = vmul.f32 0.01, %v2716_v6  ;;  %v1110_v17 = vmax.f32 %v2710_v31, %v1104_v36 }
 0x64c   : > { %v1112_v41 = vmax.f32 %v1100_v34, %v1106_v38  ;;  %v1114_v42 = vmax.f32 %v1102_v35, %v1108_v39  ;;  %v1115_v22 = vsel %vm2526_vm11, %v1109_v10, 0.0  ;;  %v1117_v24 = vsel %vm2520_vm10, %v1111_v37, 0.0 }
 0x64d   : > { %v1113_v8 = vmax.f32 %v2716_v6, %v1107_v40  ;;  %v1116_v43 = vsel %vm2534_vm12, %v1110_v17, 0.0 }
 0x64e   : > { %v1615_v45 = vpack.c.bf16 %v1112_v41, %v1109_v10  ;;  %v1619_v46 = vpack.c.bf16 %v1114_v42, %v1111_v37  ;;  %v1118_v47 = vsel %vm2526_vm11, %v1112_v41, 0.0  ;;  %v1120_v50 = vsel %vm2520_vm10, %v1114_v42, 0.0 }
 0x64f   : > { %v1121_v51 = vpack.c.bf16 %v1118_v47, %v1115_v22  ;;  %v1119_v52 = vsel %vm2534_vm12, %v1113_v8, 0.0  ;;  %v1123_v53 = vpack.c.bf16 %v1120_v50, %v1117_v24  ;;  %v1612_v54 = vpack.c.bf16 %v1113_v8, %v1110_v17 }
 0x650   : > { %v1122_v55 = vpack.c.bf16 %v1119_v52, %v1116_v43 }
 0x651   : > { %1129 = vrot.lane.b32.xlu1 %v1121_v51, %s2127_s14 }
 0x652   : > { %1131 = vrot.lane.b32.xlu0 %v1122_v55, %s2127_s14 }
 0x655   : > { %1125 = vrot.lane.b32.xlu1 %v1123_v53, %s2127_s14  ;;  %s2952_s14 = sld [smem:[#allocation30_spill]] }
 0x656   : > { %1145 = vrot.lane.b32.xlu0 %v1122_v55, %s2128_s15 }
 0x659   : > { %1147 = vrot.lane.b32.xlu1 %v1123_v53, %s2128_s15 }
 0x65a   : > { %1143 = vrot.lane.b32.xlu0 %v1121_v51, %s2128_s15 }
 0x65d   : > { %1167 = vperm.xlu1 %1860, %v1608_v56  }
 0x65e   : > { %1172 = vperm.xlu0 %1859, %v1609_v57  }
 0x6c3   : > { %v1130_v58 = vpop.permute.xlu1 %1129 }
 0x6c4   : > { %v1132_v59 = vpop.permute.xlu0 %1131 }
 0x6c5   : > { %v1134_v60 = vsel %vm1133_vm0, %v1130_v58, %v1132_v59 }
 0x6c6   : > { %1183 = vmatprep.subr.bf16.mxu0 %v1134_v60 }
 0x6c7   : > { %v1126_v61 = vpop.permute.xlu1 %1125 }
 0x6c8   : > { %v1135_v62 = vsel %vm1133_vm0, %v1132_v59, %v1126_v61  ;;  %v1141_v63 = vsel %vm1133_vm0, %v1126_v61, %v1130_v58  ;;  %v1146_v0 = vpop.permute.xlu0 %1145 }
 0x6c9   : > { %1184 = vmatpush1.bf16.msra.mxu0 %v1141_v63  ;;  %1698 = vmatpush3.bf16.msra.mxu1 %v1135_v62  ;;  %v1869_v62 = vld [vmem:[#allocation8 + $0x28] sm:$0xff]  }
 0x6ca   : > { %1613 = vmatprep.subr.msk.bf16.mxu0 %vm2564_vm13, %v1612_v54  ;;  %1699 = vmatprep.subr.bf16.mxu1 %v2120_v7 }
 0x6cb   : > { %v1148_v1 = vpop.permute.xlu1 %1147 }
 0x6cc   : > { %v1151_v3 = vsel %vm1149_vm6, %v1146_v0, %v1148_v1  ;;  %v1144_v11 = vpop.permute.xlu0 %1143 }
 0x6cd   : > { %1616 = vmatpush1.bf16.msk.msra.mxu0 %vm2573_vm14, %v1615_v45  ;;  %1700 = vmatpush3.bf16.msk.msra.mxu1 %vm2583_vm15, %v1619_v46  ;;  %v1150_v14 = vsel %vm1149_vm6, %v1144_v11, %v1146_v0  ;;  %v1157_v15 = vsel %vm1149_vm6, %v1148_v1, %v1144_v11 }
 0x6ce   : > { %1187 = vmatprep.subr.bf16.mxu0 %v1151_v3  ;;  %1701 = vmatprep.subr.bf16.mxu1 %v2120_v7 }
 0x6d1   : > { %1188 = vmatpush1.bf16.msra.mxu0 %v1150_v14  ;;  %1702 = vmatpush3.bf16.msra.mxu1 %v1157_v15 }
 0x6d4   : > { %1617 = vmatmul.mubr.msk.bf16.vlgmr.msra.gmra.mrb[16].mxu0 %vm513_vm3, %v1868_v16  ;;  %1704 = vmatmul.mubr.msk.bf16.vlgmr.msra.gmra.mrb[16].mxu1 %vm513_vm3, %v1868_v16 }
 0x6d5   : > { %1369 = vmatprep.mubr.bf16.mxu0 %v2123_v27 }
 0x6dc   : > { %v1168_v18 = vpop.permute.xlu1 %1167 }
 0x6dd   : > { %v1173_v19 = vpop.permute.xlu0 %1172 }
 0x7a7   : > { %v1217_v21 = vpop.f32.mrb[16].mxu0  ;;  %v1260_v4 = vpop.f32.mrb[16].mxu1 }
 0x7a8   : > { %v1218_v49 = vadd.f32 %v1217_v21, %v1168_v18  ;;  %v1261_v25 = vadd.f32 %v1260_v4, %v1168_v18  ;;  %v1219_v12 = vpop.f32.mrb[17].mxu0  ;;  %v1705_v26 = vpop.f32.mrb[17].mxu1 }
 0x7a9   : > { %v1220_v7 = vadd.f32 %v1219_v12, %v1168_v18  ;;  %v1221_v28 = vpop.f32.mrb[18].mxu0  ;;  %v1263_v29 = vpop.f32.mrb[18].mxu1 }
 0x7aa   : > { %v1267_v9 = vmul.f32 0.01, %v1218_v49  ;;  %v1269_v5 = vmul.f32 0.01, %v1261_v25  ;;  %v1222_v30 = vadd.f32 %v1221_v28, %v1173_v19  ;;  %v1264_v13 = vadd.f32 %v1263_v29, %v1173_v19  ;;  %v1223_v32 = vpop.f32.mrb[19].mxu0  ;;  %v1706_v33 = vpop.f32.mrb[19].mxu1 }
 0x7ab   : > { %v1268_v34 = vmul.f32 0.01, %v1220_v7  ;;  %v1224_v35 = vadd.f32 %v1223_v32, %v1173_v19 }
 0x7ac   : > { %v1273_v27 = vmax.f32 %v1218_v49, %v1267_v9  ;;  %v1275_v36 = vmax.f32 %v1261_v25, %v1269_v5  ;;  %v1270_v10 = vmul.f32 0.01, %v1222_v30  ;;  %v1272_v37 = vmul.f32 0.01, %v1264_v13 }
 0x7ad   : > { %v1274_v38 = vmax.f32 %v1220_v7, %v1268_v34  ;;  %v1271_v39 = vmul.f32 0.01, %v1224_v35 }
 0x7ae   : > { %v1276_v40 = vmax.f32 %v1222_v30, %v1270_v10  ;;  %v1278_v17 = vmax.f32 %v1264_v13, %v1272_v37  ;;  %v1279_v41 = vsel %vm2526_vm11, %v1273_v27, 0.0  ;;  %v1281_v42 = vsel %vm2520_vm10, %v1275_v36, 0.0 }
 0x7af   : > { %v1277_v22 = vmax.f32 %v1224_v35, %v1271_v39  ;;  %v1280_v8 = vsel %vm2534_vm12, %v1274_v38, 0.0 }
 0x7b0   : > { %v1282_v43 = vsel %vm2526_vm11, %v1276_v40, 0.0  ;;  %v1629_v24 = vpack.c.bf16 %v1276_v40, %v1273_v27  ;;  %v1284_v45 = vsel %vm2520_vm10, %v1278_v17, 0.0 }
 0x7b1   : > { %v1283_v46 = vsel %vm2534_vm12, %v1277_v22, 0.0  ;;  %v1626_v47 = vpack.c.bf16 %v1277_v22, %v1274_v38  ;;  %v1285_v50 = vpack.c.bf16 %v1282_v43, %v1279_v41  ;;  %v1287_v51 = vpack.c.bf16 %v1284_v45, %v1281_v42 }
 0x7b2   : > { %v1286_v52 = vpack.c.bf16 %v1283_v46, %v1280_v8 }
 0x7b3   : > { %1293 = vrot.lane.b32.xlu1 %v1285_v50, %s2121_s7 }
 0x7b4   : > { %1295 = vrot.lane.b32.xlu0 %v1286_v52, %s2121_s7 }
 0x7b7   : > { %1289 = vrot.lane.b32.xlu1 %v1287_v51, %s2121_s7  ;;  %s2950_s7 = sld [smem:[#allocation17_spill]] }
 0x7b8   : > { %1305 = vrot.lane.b32.xlu0 %v1286_v52, %s2124_s22 }
 0x7bb   : > { %1307 = vrot.lane.b32.xlu1 %v1287_v51, %s2124_s22 }
 0x7bc   : > { %1303 = vrot.lane.b32.xlu0 %v1285_v50, %s2124_s22  ;;  %s1557_s22 = sshll.u32 %s2444_s13, 4 }
 0x7bd   : > { %s1633_s16 = sshll.u32 %s2950_s7, 3  ;;  %s391_s5 = scalar_lea.vmem [#allocation9], %s1557_s22 }
 0x7be   : > { %s1394_s12 = sadd.s32 %s2937_s18, %s1633_s16  ;;  %s1397_s9 = sshll.u32 %s391_s5, 4  ;;  %s2787_s9 = int_to_ptr.vmem [resolvable:$true] %s1397_s9 }
 0x7bf   : > { %1321 = vperm.xlu1 %1860, %v1622_v2   ;;  %s1634_s20 = sshll.u32 %s1394_s12, 7  ;;  %s1956_s4 = scalar_lea.vmem %s2787_s9, 256 }
 0x7c0   : > { %1326 = vperm.xlu0 %1859, %v1623_v20   ;;  %s2792_s15 = scalar_lea.hbm %s2952_s14, %s1634_s20  ;;  %p1957_p1 = scmp.ne.s32.totalorder %s2787_s9, %s1956_s4 }
 0x7c1   : > { %p1963_p10 = scmp.lt.s32.totalorder %s2787_s9, %s1961_s27  ;;  %p1964_p6 = scmp.lt.s32.totalorder %s1962_s19, %s1956_s4 }
 0x7c2   : > { %p1958_p9 = pnand %p1957_p1, %p2953_p11 }
 0x7c3   : > { %p1965_p7 = por %p1964_p6, %p1963_p10 }
 0x7c4   : > { %p1959_p3 = pneg %p1958_p9 }
 0x7c6   : > { %p1966_p8 = pnand %p1965_p7, %p1959_p3 }
 0x825   : > { %v1294_v23 = vpop.permute.xlu1 %1293 }
 0x826   : > { %v1296_v53 = vpop.permute.xlu0 %1295 }
 0x827   : > { %v1297_v54 = vsel %vm468_vm1, %v1294_v23, %v1296_v53 }
 0x828   : > { %1337 = vmatprep.subr.bf16.mxu0 %v1297_v54 }
 0x829   : > { %v1290_v55 = vpop.permute.xlu1 %1289 }
 0x82a   : > { %v1301_v56 = vsel %vm468_vm1, %v1290_v55, %v1294_v23  ;;  %v1306_v57 = vpop.permute.xlu0 %1305 }
 0x82b   : > { %1338 = vmatpush1.bf16.msra.mxu0 %v1301_v56 }
 0x82c   : > { %1627 = vmatprep.subr.msk.bf16.mxu0 %vm2564_vm13, %v1626_v47 }
 0x82d   : > { %v1308_v58 = vpop.permute.xlu1 %1307 }
 0x82e   : > { %v1310_v59 = vsel %vm484_vm2, %v1306_v57, %v1308_v58  ;;  %v1304_v60 = vpop.permute.xlu0 %1303 }
 0x82f   : > { %1630 = vmatpush1.bf16.msk.msra.mxu0 %vm2573_vm14, %v1629_v24  ;;  %v1309_v61 = vsel %vm484_vm2, %v1304_v60, %v1306_v57 }
 0x830   : > { %1341 = vmatprep.subr.bf16.mxu0 %v1310_v59 }
 0x833   : > { %1342 = vmatpush1.bf16.msra.mxu0 %v1309_v61 }
 0x836   : > { %1631 = vmatmul.mubr.msk.bf16.vlgmr.msra.gmra.mrb[20].mxu0 %vm513_vm3, %v1869_v62 }
 0x83e   : > { %v1322_v44 = vpop.permute.xlu1 %1321 }
 0x83f   : > { %v1327_v3 = vpop.permute.xlu0 %1326 }
 0x909   : > { %v1371_v63 = vpop.f32.mrb[20].mxu0 }
 0x90a   : > { %v1372_v0 = vpop.f32.mrb[21].mxu0 }
 0x90b   : > { %v1373_v1 = vadd.f32 %v1372_v0, %v1322_v44  ;;  %v1374_v48 = vpop.f32.mrb[22].mxu0 }
 0x90c   : > { %v1375_v11 = vpop.f32.mrb[23].mxu0 }
 0x90d   : > { %v1378_v14 = vadd.f32 %v1373_v1, %v2710_v31  ;;  %v1376_v15 = vadd.f32 %v1375_v11, %v1327_v3 }
 0x90f   : > { %1380 = vst [vmem:[%s391_s5] sm:$0xff] %v1378_v14  ;;  %v1379_v16 = vadd.f32 %v1376_v15, %v2716_v6 }
 0x911   : > { %1381 = vst [vmem:[%s391_s5 + $0x8] sm:$0xff] %v1379_v16 }
 0x912   : > { %1969 = shalt.err (!%p1966_p8)
}
 0x913   : > { %s1970_s0 = scalar_lea.hbm %s2792_s15, 256  ;;  %s1974_s7 = scalar_lea.hbm %s2952_s14, 2048 }
 0x914   : > { %p1971_p0 = scmp.ne.s32.totalorder %s2792_s15, %s1970_s0  ;;  %p1975_p4 = scmp.lt.u32.totalorder %s2792_s15, %s2952_s14 }
 0x915   : > { %p1976_p2 = scmp.lt.u32.totalorder %s1974_s7, %s1970_s0  ;;  %p1978_p1 = scmp.lt.u32.totalorder %s1970_s0, %s2792_s15 }
 0x916   : > { %p1972_p13 = pnand %p1971_p0, %p2953_p11 }
 0x917   : > { %p1977_p12 = por %p1976_p2, %p1975_p4 }
 0x918   : > { %p1973_p5 = pneg %p1972_p13 }
 0x919   : > { %p1979_p9 = por %p1978_p1, %p1977_p12 }
 0x91b   : > { %p1980_p3 = pnand %p1979_p9, %p1973_p5 }
 0x91d   : > { %1983 = shalt.err (!%p1980_p3)
}
 0x91e   : > { %s2130_s12 = smov 128   ;;  %s2131_s5 = smov 512  }
 0x91f   : > { %s2132_s20 = smov 8  }
 0x920   : > { %1716 = dma.vmem_to_hbm [thread:$0]  (%p2953_p11), %s2787_s9, 256, %s2792_s15, %s1383_s8, %s2130_s12, %s2131_s5, %s2132_s20  }
 0x921 PF: > { %s2954_s18 = sld [smem:[#allocation14_spill]]  ;;  %s2955_s17 = sld [smem:[#allocation25_spill]] }
 0x922   : > { %p1728_p10 = scmp.ge.s32.totalorder %s2110_s6, 2 }
 0x927   : > { %s1412_s4 = sand.u32 1, %s2954_s18   ;;  %p2956_p6 = scmp.ne.s32.totalorder %s2955_s17, 0 }
 0x928   : > { %s1413_s11 = scalar_lea.sflag [#allocation5], %s1412_s4 }
 0x929   : > { %p1723_p7 = pnand %p1728_p10, %p2956_p6 }
 0x92b   : > { %2053 = dma.done.wait (!%p1723_p7), %s1413_s11, 256  }
 0x92c   : > { %2055 = vsyncadd (!%p1723_p7), %s1413_s11, 4294967040  ;;  %s24_s6 = sadd.s32 1, %s2110_s6   ;;  %s2958_s19 = sld [smem:[#allocation15_spill]] }
 0x92d   : > { %p2824_p8 = scmp.ge.s32.totalorder %s24_s6, 10   ;;  %s2959_s13 = sld [smem:[#allocation22_spill]] }
 0x92e   : > { %s2960_s9 = sld [smem:[#allocation21_spill]]  ;;  %s2961_s28 = sld [smem:[#allocation20_spill]] }
 0x92f   : > { %s2962_s15 = sld [smem:[#allocation18_spill]]  ;;  %s2963_s8 = sld [smem:[#allocation19_spill]] }
 0x930   : > { %s2965_s18 = smov %s2086_s25  ;;  %s2966_s20 = smov %s2070_s21 }
 0x931   : > { %s2968_s22 = smov %s2078_s23  ;;  %s2969_s23 = smov %s2082_s24 }
 0x932   : > { %s2971_s25 = smov %s2090_s26  ;;  %s2973_s27 = smov %s2102_s29 }
 0x933   : > { %s2967_s21 = smov %s2959_s13  ;;  %23 = sbr.rel (!%p2824_p8) target bundleno = 18 (0x12), region = 161 }
 0x934   : > { %s2970_s24 = smov %s2960_s9  ;;  %s2972_s26 = smov %s2961_s28 }
 0x935   : > { %s2974_s28 = smov %s2106_s30  ;;  %s2975_s29 = smov %s2962_s15 }
 0x936   : > { %s2976_s30 = smov %s2963_s8 }
 0x93a   :  { %1418 = vsyncpa [#allocation4], 1 }
 0x93b   :  { %1420 = vsyncpa [#allocation4 + $0x1], 1 }
 0x93c   :  { %1421 = vsyncpa [#allocation7], 1 }
 0x93d   :  { %1423 = vsyncpa [#allocation7 + $0x1], 1 }
 0x93e   :  { %1424 = vsyncpa [#allocation5], 1 }
 0x93f   :  { %1426 = vsyncpa [#allocation5 + $0x1], 1 }

// kernel: tpu_custom_call.1
= control target key start
LH: loop header
LB: loop body
LE: loop exit
PB: predicated region body
PF: predicated region fallthrough
CT: control target
= control target key end

     0   :  { %s2871_s0 = inlined_call_operand.vmem [shape: bf16[2,16,768], index: 0, kind: input, shape index: {}]   ;;  %s2872_s1 = inlined_call_operand.hbm [shape: bf16[2,16,768], index: 1, kind: input, shape index: {}]   ;;  %s2873_s2 = inlined_call_operand.hbm [shape: bf16[2,16,768], index: 2, kind: input, shape index: {}]   ;;  %s2874_s3 = inlined_call_operand.hbm [shape: bf16[6,16,48], index: 3, kind: input, shape index: {}]   ;;  %s2875_s4 = inlined_call_operand.vmem [shape: f32[6,16,1], index: 4, kind: input, shape index: {}]   ;;  %s2876_s5 = inlined_call_operand.hbm [shape: f32[2,16,512], index: 5, kind: output, shape index: {}]  }
   0x1   :  { %2896 = sst [smem:[#allocation26_spill]] %s2871_s0 }
   0x2   :  { %2897 = sst [smem:[#allocation27_spill]] %s2872_s1 }
   0x3   :  { %2898 = sst [smem:[#allocation28_spill]] %s2874_s3 }
   0x4   :  { %2899 = sst [smem:[#allocation29_spill]] %s2875_s4 }
   0x5   :  { %2900 = sst [smem:[#allocation30_spill]] %s2876_s5 }
   0x6   :  { %10 = vsyncpa [#allocation4], 0 }
   0x7   :  { %12 = vsyncpa [#allocation4 + $0x1], 0 }
   0x8   :  { %13 = vsyncpa [#allocation7], 0 }
   0x9   :  { %15 = vsyncpa [#allocation7 + $0x1], 0 }
   0xa   :  { %16 = vsyncpa [#allocation5], 0 }
   0xb   :  { %18 = vsyncpa [#allocation5 + $0x1], 0  ;;  %s2163_s18 = smov 0   ;;  %s2165_s19 = smov 0  }
   0xc   :  { %s2167_s20 = smov 0   ;;  %s2169_s21 = smov 0  }
   0xd   :  { %s2171_s22 = smov 0   ;;  %s2173_s23 = smov 0  }
   0xe   :  { %s2175_s24 = smov 0   ;;  %s2177_s25 = smov 0  }
   0xf   :  { %s2179_s26 = smov 0   ;;  %s2181_s27 = smov 0  }
  0x10   :  { %s2183_s28 = smov 0   ;;  %s2185_s29 = smov 0  }
  0x11   :  { %s2187_s30 = smov 0   ;;  %s2189_s6 = smov 0  }
  0x12 LB: > { %2901 = sst [smem:[#allocation14_spill]] %s2058_s18  ;;  %s2234_s7 = sadd.s32 4294967295, %s2110_s6   ;;  %s2110_s6 = sphi %s2189_s6, %s24_s6   ;;  %s2106_s30 = sphi %s2187_s30, %s2976_s30   ;;  %s2102_s29 = sphi %s2185_s29, %s2975_s29   ;;  %s2098_s28 = sphi %s2183_s28, %s2974_s28   ;;  %s2094_s27 = sphi %s2181_s27, %s2973_s27   ;;  %s2090_s26 = sphi %s2179_s26, %s2972_s26   ;;  %s2086_s25 = sphi %s2177_s25, %s2971_s25   ;;  %s2082_s24 = sphi %s2175_s24, %s2970_s24   ;;  %s2078_s23 = sphi %s2173_s23, %s2969_s23   ;;  %s2074_s22 = sphi %s2171_s22, %s2968_s22   ;;  %s2070_s21 = sphi %s2169_s21, %s2967_s21   ;;  %s2066_s20 = sphi %s2167_s20, %s2966_s20   ;;  %s2062_s19 = sphi %s2165_s19, %s2958_s19   ;;  %s2058_s18 = sphi %s2163_s18, %s2965_s18  }
  0x13   : > { %2902 = sst [smem:[#allocation15_spill]] %s2066_s20  ;;  %s33_s9 = sadd.s32 1, %s2102_s29 }
  0x14   : > { %2903 = sst [smem:[#allocation16_spill]] %s2094_s27  ;;  %s36_s10 = sadd.s32 1, %s2106_s30 }
  0x15   : > { %2904 = sst [smem:[#allocation17_spill]] %s2098_s28  ;;  %p34_p0 = scmp.ge.s32.totalorder %s33_s9, 4 }
  0x16   : > { %s45_s11 = sadd.s32 1, %s2090_s26  ;;  %p52_p1 = scmp.ne.s32.totalorder %s2090_s26, %s2086_s25 }
  0x17   : > { %p53_p2 = scmp.eq.s32.totalorder %s2110_s6, 0  ;;  %s2978_s10 = smov (!%p34_p0, %s36_s10), %s2106_s30 }
  0x18   : > { %s2243_s12 = scalar_select %p34_p0, 0, %s33_s9  }
  0x19   : > { %p2253_p3 = por %p53_p2, %p52_p1  ;;  %p38_p4 = scmp.ge.s32.totalorder %s2978_s10, 2 }
  0x1a   : > { %2905 = sst [smem:[#allocation18_spill]] %s2243_s12  ;;  %s41_s13 = ssub.s32 %s2102_s29, %s2243_s12 }
  0x1b   : > { %s2906_s14 = scalar_select %p2253_p3, 1, 0 }
  0x1c   : > { %s69_s15 = sadd.s32 1, %s2243_s12  ;;  %s75_s17 = sadd.s32 1, %s2082_s24 }
  0x1d   : > { %s71_s16 = ssub.s32 %s33_s9, %s69_s15  ;;  %s2980_s10 = smov (%p38_p4, %s2978_s10), 0 }
  0x1e   : > { %2907 = sst [smem:[#allocation19_spill]] %s2980_s10  ;;  %p82_p5 = scmp.ne.s32.totalorder %s2082_s24, %s2078_s23 }
  0x1f   : > { %p88_p6 = scmp.ne.s32.totalorder %s2078_s23, %s2074_s22  ;;  %s40_s8 = ssub.s32 %s2106_s30, %s2980_s10 }
  0x20   : > { %p2886_p7 = scmp.eq.s32.totalorder %s2234_s7, 0  ;;  %s42_s5 = sor.u32 %s41_s13, %s40_s8 }
  0x21   : > { %s72_s28 = sor.u32 %s71_s16, %s40_s8  ;;  %p43_p8 = scmp.eq.s32.totalorder %s42_s5, 0 }
  0x22   : > { %p73_p9 = scmp.eq.s32.totalorder %s72_s28, 0  ;;  %p2270_p10 = por %p82_p5, %p53_p2 }
  0x23   : > { %p2276_p11 = por %p2886_p7, %p88_p6  ;;  %s98_s28 = sadd.s32 2, %s2102_s29 }
  0x24   : > { %s2908_s9 = scalar_select %p2270_p10, 1, 0 }
  0x25   : > { %s2909_s22 = scalar_select %p2276_p11, 1, 0 }
  0x26   : > { %s2281_s13 = scalar_select %p43_p8, %s2090_s26, %s45_s11  }
  0x27   : > { %s2284_s5 = scalar_select %p73_p9, %s2082_s24, %s75_s17  }
  0x28   : > { %2910 = sst [smem:[#allocation20_spill]] %s2281_s13  ;;  %s99_s15 = sadd.s32 2, %s2243_s12 }
  0x29   : > { %2911 = sst [smem:[#allocation21_spill]] %s2284_s5  ;;  %s101_s16 = ssub.s32 %s98_s28, %s99_s15 }
  0x2a   : > { %s105_s10 = sadd.s32 1, %s2070_s21  ;;  %s102_s27 = sor.u32 %s101_s16, %s40_s8 }
  0x2b   : > { %p112_p12 = scmp.ne.s32.totalorder %s2070_s21, %s2066_s20  ;;  %p103_p13 = scmp.eq.s32.totalorder %s102_s27, 0 }
  0x2c   : > { %p118_p0 = scmp.ne.s32.totalorder %s2066_s20, %s2062_s19  ;;  %p186_p5 = scmp.eq.s32.totalorder %s2234_s7, 7 }
  0x2d   : > { %p2295_p4 = por %p112_p12, %p53_p2  ;;  %p191_p9 = scmp.ne.s32.totalorder %s2086_s25, %s2058_s18 }
  0x2e   : > { %s2301_s11 = scalar_select %p103_p13, %s2070_s21, %s105_s10  }
  0x2f   : > { %s2912_s4 = scalar_select %p2295_p4, 1, 0 }
  0x30   : > { %2913 = sst [smem:[#allocation22_spill]] %s2301_s11  ;;  %p2305_p6 = por %p118_p0, %p2886_p7 }
  0x31   : > { %p2312_p8 = por %p186_p5, %p52_p1  ;;  %s2918_s19 = sadd.s32 4294967294, %s2110_s6  }
  0x32   : > { %s2914_s17 = scalar_select %p2305_p6, 1, 0 }
  0x33   : > { %s2916_s8 = scalar_select %p2312_p8, 1, 0 }
  0x34   : > { %2915 = sst [smem:[#allocation23_spill]] %s2914_s17  ;;  %p192_p11 = scmp.eq.s32.totalorder %s2918_s19, 7 }
  0x35   : > { %2917 = sst [smem:[#allocation24_spill]] %s2916_s8  ;;  %p1543_p2 = scmp.ge.s32.totalorder %s2110_s6, 1 }
  0x36   : > { %p199_p12 = scmp.lt.s32.totalorder %s2110_s6, 9  ;;  %p2322_p10 = por %p192_p11, %p191_p9 }
  0x37   : > { %s2112_s28 = smov [#allocation8]   ;;  %s2923_s3 = sld [smem:[#allocation28_spill]] }
  0x38   : > { %s2919_s27 = scalar_select %p2322_p10, 1, 0 }
  0x39   : > { %p2326_p13 = pnand %p1543_p2, %p199_p12  ;;  %s211_s15 = sshll.u32 %s2112_s28, 4  ;;  %s212_s15 = int_to_ptr.vmem [resolvable:$true] %s211_s15 }
  0x3a   : > { %2920 = sst [smem:[#allocation25_spill]] %s2919_s27 }
  0x3b   : > { %s2921_s10 = scalar_select %p2326_p13, 1, 0 }
  0x3c   : > { %p1718_p1 = pneg %p2326_p13 }
  0x3d   : > { %s1870_s13 = scalar_lea.hbm %s2923_s3, 768 }
  0x3e   : > { %p2334_p0 = pnand %p1718_p1, %p2886_p7  ;;  %p1871_p11 = scmp.ne.s32.totalorder %s2923_s3, %s1870_s13 }
  0x3f   : > { %p1877_p12 = scmp.lt.u32.totalorder %s1870_s13, %s2923_s3 }
  0x40   : > { %p1872_p5 = pneg %p2334_p0 }
  0x42   : > { %p1873_p9 = pnand %p1872_p5, %p1871_p11 }
  0x44   : > { %p1874_p2 = pneg %p1873_p9 }
  0x46   : > { %p1879_p1 = pnand %p1877_p12, %p1874_p2 }
  0x48   : > { %1882 = shalt.err (!%p1879_p1)
}
  0x49   : > { %s1883_s18 = scalar_lea.vmem %s212_s15, 768  ;;  %p1891_p6 = scmp.lt.s32.totalorder %s212_s15, %s212_s15 }
  0x4a   : > { %p1884_p7 = scmp.ne.s32.totalorder %s212_s15, %s1883_s18  ;;  %p1892_p13 = scmp.lt.s32.totalorder %s1883_s18, %s1883_s18 }
  0x4c   : > { %p1886_p10 = pnand %p1884_p7, %p1872_p5  ;;  %p1893_p4 = por %p1892_p13, %p1891_p6 }
  0x4e   : > { %p1887_p8 = pneg %p1886_p10 }
  0x50   : > { %p1894_p3 = pnand %p1893_p4, %p1887_p8 }
  0x52   : > { %1897 = shalt.err (!%p1894_p3)
}
  0x53   : > { %s2113_s12 = smov 64   ;;  %s2114_s5 = smov 4  }
  0x54   : > { %1721 = dma.hbm_to_vmem [thread:$0]  (!%p2334_p0), %s2923_s3, 768, %s212_s15, [#allocation7], %s2113_s12, %s2113_s12, %s2114_s5  }
  0x55   : > { %p1545_p11 = scmp.ge.s32.totalorder %s2110_s6, 8 }
  0x56   : > { %p2924_p9 = scmp.ne.s32.totalorder (!%p1545_p11), %s2906_s14, 0 }
  0x57   : > { %224 = sbr.rel (%p1545_p11) target bundleno = 163 (0xa3), region = 24 }
  0x5e   : > { %227 = sbr.rel (!%p2924_p9) target bundleno = 105 (0x69), region = 28  ;;  %s229_s18 = sand.u32 (%p2924_p9), 1, %s2090_s26  }
  0x5f   : > { %s1707_s13 = smul.u32 (%p2924_p9), 12, %s2106_s30  ;;  %s1546_s27 = sshll.u32 (%p2924_p9), %s229_s18, 3 }
  0x60   : > { %s2925_s0 = sld [smem:[#allocation26_spill]] (%p2924_p9)  ;;  %s231_s15 = scalar_lea.vmem (%p2924_p9), [#allocation2], %s1546_s27 }
  0x61   : > { %s233_s28 = sadd.s32 (%p2924_p9), %s2102_s29, %s1707_s13 }
  0x62   : > { %s1547_s8 = sshll.u32 (%p2924_p9), %s233_s28, 2 }
  0x66   : > { %s235_s20 = scalar_lea.vmem %s2925_s0, %s1547_s8 }
  0x67   : > { %v251_v0 = vld [vmem:[%s235_s20] sm:$0xf]  ;;  %v253_v1 = vld [vmem:[%s235_s20 + $0x18] sm:$0xf] }
  0x68   : > { %252 = vst [vmem:[%s231_s15] sm:$0xf] %v251_v0  ;;  %254 = vst [vmem:[%s231_s15 + $0x4] sm:$0xf] %v253_v1 }
  0x69 PF: > { %s282_s14 = sand.u32 1, %s2082_s24   ;;  %s1436_s12 = smul.u32 12, %s2106_s30 }
  0x6a   : > { %s1548_s5 = sshll.u32 %s282_s14, 3  ;;  %s2926_s1 = sld [smem:[#allocation27_spill]] }
  0x6b   : > { %s2366_s11 = sadd.s32 %s2102_s29, %s1436_s12  ;;  %s286_s17 = scalar_lea.vmem [#allocation3], %s1548_s5 }
  0x6c   : > { %s1549_s19 = sshll.u32 %s2366_s11, 6  ;;  %s295_s8 = sshll.u32 %s286_s17, 4  ;;  %s2374_s8 = int_to_ptr.vmem [resolvable:$true] %s295_s8 }
  0x6d   : > { %s2378_s28 = scalar_lea.sflag [#allocation4], %s282_s14  ;;  %p2927_p7 = scmp.ne.s32.totalorder %s2908_s9, 0 }
  0x70   : > { %s1439_s13 = scalar_lea.hbm %s2926_s1, %s1549_s19  ;;  %s1902_s5 = scalar_lea.hbm %s2926_s1, 1536 }
  0x71   : > { %s2376_s27 = scalar_lea.hbm %s1439_s13, 64  ;;  %s1926_s16 = scalar_lea.hbm %s1439_s13, 192 }
  0x72   : > { %p1899_p3 = scmp.ne.s32.totalorder %s2376_s27, %s1926_s16  ;;  %p1903_p6 = scmp.lt.u32.totalorder %s2376_s27, %s2926_s1 }
  0x73   : > { %p1904_p8 = scmp.lt.u32.totalorder %s1902_s5, %s1926_s16  ;;  %p1906_p0 = scmp.lt.u32.totalorder %s1926_s16, %s2376_s27 }
  0x74   : > { %p1900_p10 = pnand %p1899_p3, %p2927_p7 }
  0x75   : > { %p1905_p13 = por %p1904_p8, %p1903_p6 }
  0x76   : > { %p1901_p4 = pneg %p1900_p10 }
  0x77   : > { %p1907_p5 = por %p1906_p0, %p1905_p13 }
  0x79   : > { %p1908_p2 = pnand %p1907_p5, %p1901_p4 }
  0x7b   : > { %1911 = shalt.err (!%p1908_p2)
}
  0x7c   : > { %s1912_s14 = scalar_lea.vmem %s2374_s8, 128  ;;  %s2115_s18 = smov [#allocation3]  }
  0x7d   : > { %p1913_p12 = scmp.ne.s32.totalorder %s2374_s8, %s1912_s14  ;;  %s1916_s13 = sshll.u32 %s2115_s18, 4  ;;  %s1917_s13 = int_to_ptr.vmem [resolvable:$false] %s1916_s13 }
  0x7e   : > { %s1918_s15 = scalar_lea.vmem %s1917_s13, 256  ;;  %p1919_p9 = scmp.lt.s32.totalorder %s2374_s8, %s1917_s13 }
  0x7f   : > { %p1914_p1 = pnand %p1913_p12, %p2927_p7  ;;  %p1920_p3 = scmp.lt.s32.totalorder %s1918_s15, %s1912_s14 }
  0x81   : > { %p1915_p11 = pneg %p1914_p1  ;;  %p1921_p10 = por %p1920_p3, %p1919_p9 }
  0x83   : > { %p1922_p6 = pnand %p1921_p10, %p1915_p11 }
  0x85   : > { %1925 = shalt.err (!%p1922_p6)
}
  0x86   : > { %s2116_s16 = smov 384   ;;  %s2117_s12 = smov 64  }
  0x87   : > { %s2118_s5 = smov 4   ;;  %s305_s17 = sand.u32 1, %s2110_s6  }
  0x88   : > { %1710 = dma.hbm_to_vmem [thread:$0]  (%p2927_p7), %s2376_s27, 128, %s2374_s8, %s2378_s28, %s2116_s16, %s2117_s12, %s2118_s5  }
  0x89   : > { %s307_s20 = sand.u32 1, %s2070_s21   ;;  %s1447_s15 = scalar_lea.hbm %s2873_s2, %s1549_s19 }
  0x8a   : > { %s1550_s14 = sshll.u32 %s307_s20, 3  ;;  %s2411_s0 = scalar_lea.hbm %s1447_s15, 128 }
  0x8b   : > { %s309_s1 = scalar_lea.vmem [#allocation6], %s1550_s14  ;;  %s2415_s9 = scalar_lea.sflag [#allocation7], %s305_s17 }
  0x8c   : > { %s318_s3 = sshll.u32 %s309_s1, 4  ;;  %s1955_s8 = scalar_lea.hbm %s1447_s15, 256  ;;  %s2413_s3 = int_to_ptr.vmem [resolvable:$true] %s318_s3 }
  0x8d   : > { %p1928_p7 = scmp.ne.s32.totalorder %s2411_s0, %s1955_s8  ;;  %p2928_p4 = scmp.ne.s32.totalorder %s2912_s4, 0 }
  0x8e   : > { %s1931_s19 = scalar_lea.hbm %s2873_s2, 1536  ;;  %p1932_p0 = scmp.lt.u32.totalorder %s2411_s0, %s2873_s2 }
  0x8f   : > { %p1929_p8 = pnand %p1928_p7, %p2928_p4  ;;  %p1933_p5 = scmp.lt.u32.totalorder %s1931_s19, %s1955_s8 }
  0x90   : > { %p1935_p12 = scmp.lt.u32.totalorder %s1955_s8, %s2411_s0 }
  0x91   : > { %p1930_p13 = pneg %p1929_p8  ;;  %p1934_p2 = por %p1933_p5, %p1932_p0 }
  0x93   : > { %p1936_p1 = por %p1935_p12, %p1934_p2 }
  0x95   : > { %p1937_p11 = pnand %p1936_p1, %p1930_p13 }
  0x97   : > { %1940 = shalt.err (!%p1937_p11)
}
  0x98   : > { %s1941_s1 = scalar_lea.vmem %s2413_s3, 128  ;;  %s2119_s17 = smov [#allocation6]  }
  0x99   : > { %p1942_p9 = scmp.ne.s32.totalorder %s2413_s3, %s1941_s1  ;;  %s1945_s14 = sshll.u32 %s2119_s17, 4  ;;  %s1946_s14 = int_to_ptr.vmem [resolvable:$false] %s1945_s14 }
  0x9a   : > { %s1947_s18 = scalar_lea.vmem %s1946_s14, 256  ;;  %p1948_p6 = scmp.lt.s32.totalorder %s2413_s3, %s1946_s14 }
  0x9b   : > { %p1943_p3 = pnand %p1942_p9, %p2928_p4  ;;  %p1949_p7 = scmp.lt.s32.totalorder %s1947_s18, %s1941_s1 }
  0x9d   : > { %p1944_p10 = pneg %p1943_p3  ;;  %p1950_p8 = por %p1949_p7, %p1948_p6 }
  0x9f   : > { %p1951_p0 = pnand %p1950_p8, %p1944_p10 }
  0xa1   : > { %1954 = shalt.err (!%p1951_p0)
}
  0xa2   : > { %1711 = dma.hbm_to_vmem [thread:$0]  (%p2928_p4), %s2411_s0, 128, %s2413_s3, %s2415_s9, %s2116_s16, %s2117_s12, %s2118_s5  }
  0xa3 PF: > { %p2929_p13 = scmp.ne.s32.totalorder %s2921_s10, 0 }
  0xa4   : > { %s2444_s13 = sand.u32 (!%p2929_p13), 1, %s2086_s25   ;;  %s339_s15 = sand.u32 (!%p2929_p13), 1, %s2078_s23  }
  0xa5   : > { %330 = sbr.rel (%p2929_p13) target bundleno = 2337 (0x921), region = 77  ;;  %s1553_s8 = sshll.u32 (!%p2929_p13), %s2444_s13, 3 }
  0xa6   : > { %s1554_s4 = sshll.u32 (!%p2929_p13), %s339_s15, 3  ;;  %s335_s11 = scalar_lea.vmem (!%p2929_p13), [#allocation2], %s1553_s8 }
  0xa7   : > { %s340_s27 = scalar_lea.sflag (!%p2929_p13), [#allocation4], %s339_s15  ;;  %s343_s19 = scalar_lea.vmem (!%p2929_p13), [#allocation3], %s1554_s4 }
  0xa8   : > { %p2930_p5 = scmp.ne.s32.totalorder (!%p2929_p13), %s2909_s22, 0 }
  0xac   : > { %2041 = dma.done.wait (%p2930_p5), %s340_s27, 128  }
  0xad   : > { %2043 = vsyncadd (%p2930_p5), %s340_s27, 4294967168  ;;  %s2931_s0 = sld [smem:[#allocation15_spill]]  ;;  %s2932_s3 = sld [smem:[#allocation23_spill]] }
  0xae   : > { %s348_s10 = sand.u32 1, %s2234_s7  }
  0xaf   : > { %s349_s5 = scalar_lea.sflag [#allocation7], %s348_s10 }
  0xb3   : > { %s350_s16 = sand.u32 1, %s2931_s0   ;;  %p2933_p4 = scmp.ne.s32.totalorder %s2932_s3, 0 }
  0xb4   : > { %s1555_s12 = sshll.u32 %s350_s16, 3 }
  0xb5   : > { %s352_s9 = scalar_lea.vmem [#allocation6], %s1555_s12 }
  0xb6   : > { %2045 = dma.done.wait (%p2933_p4), %s349_s5, 128  }
  0xb7   : > { %2047 = vsyncadd (%p2933_p4), %s349_s5, 4294967168  ;;  %p2934_p2 = scmp.eq.s32.totalorder %s2234_s7, 0 }
  0xb9   : > { %2049 = dma.done.wait (%p2934_p2), [#allocation7], 768   ;;  %p2935_p12 = pmov %p2934_p2 }
  0xba   : > { %v1861_v2 = vld [vmem:[%s352_s9] sm:$0xff]   ;;  %v1863_v6 = vld [vmem:[%s343_s19] sm:$0xff]   ;;  %v2120_v7 = vmov 0.0   ;;  %s2121_s7 = smov 1   ;;  %vm2122_vm0 = vmmov 0   ;;  %v2123_v27 = vmov 0   ;;  %v425_v43 = vlaneseq }
  0xbb   : > { %2051 = vsyncadd (%p2935_p12), [#allocation7], 4294966528  ;;  %v1862_v3 = vld [vmem:[%s335_s11] sm:$0xff]   ;;  %v2462_v4 = vunpack.c.l.bf16 %v1861_v2  ;;  %v2464_v5 = vunpack.c.h.bf16 %v1861_v2  ;;  %1657 = vmatprep.subr.bf16.mxu1 %v2120_v7  ;;  %v2473_v12 = vunpack.c.l.bf16 %v1863_v6  ;;  %v2475_v13 = vunpack.c.h.bf16 %v1863_v6  ;;  %1663 = vmatprep.mubr.msk.bf16.mxu1 %vm2122_vm0, %v2120_v7  ;;  %s2124_s22 = smov 127   ;;  %s2936_s1 = sld [smem:[#allocation29_spill]]  ;;  %v1864_v41 = vld [vmem:[#allocation8] sm:$0xff]  }
  0xbc   : > { %v2467_v8 = vunpack.c.l.bf16 %v1862_v3  ;;  %v2469_v9 = vunpack.c.h.bf16 %v1862_v3  ;;  %549 = vmatprep.mubr.bf16.mxu0 %v2123_v27  ;;  %1859 = vset.pattern.permute.xlu0 %v2123_v27  ;;  %vm468_vm1 = vcmask 7168   ;;  %vm484_vm2 = vcmask 1039360   ;;  %s2937_s18 = sld [smem:[#allocation16_spill]]  ;;  %s2125_s0 = smov 3  }
  0xbd   : > { %v446_v10 = vmul.f32 0.01, %v2462_v4  ;;  %v449_v11 = vmul.f32 0.01, %v2464_v5  ;;  %v445_v18 = vmul.f32 0.01, %v2473_v12  ;;  %1860 = vset.pattern.permute.xlu1 %v2123_v27 }
  0xbe   : > { %v444_v14 = vmul.f32 0.01, %v2467_v8  ;;  %v447_v15 = vmul.f32 0.01, %v2469_v9  ;;  %v448_v19 = vmul.f32 0.01, %v2475_v13 }
  0xbf   : > { %v452_v16 = vmax.f32 %v2462_v4, %v446_v10  ;;  %v455_v17 = vmax.f32 %v2464_v5, %v449_v11  ;;  %v451_v23 = vmax.f32 %v2473_v12, %v445_v18  ;;  %vm513_vm3 = vcmask 392192   ;;  %s2126_s3 = smov 125   ;;  %s2127_s14 = smov 9  }
  0xc0   : > { %v450_v20 = vmax.f32 %v2467_v8, %v444_v14  ;;  %v453_v21 = vmax.f32 %v2469_v9, %v447_v15  ;;  %v454_v24 = vmax.f32 %v2475_v13, %v448_v19  ;;  %v426_v44 = vand.u32 127, %v425_v43  ;;  %s2951_s28 = sld [smem:[#allocation24_spill]]  ;;  %s2129_s11 = smov [#allocation9]  }
  0xc1   : > { %v458_v22 = vpack.c.bf16 %v455_v17, %v452_v16  ;;  %v497_v28 = vld [vmem:[%s2936_s1 + $0x8] sm:$0xff]  ;;  %v496_v29 = vld [vmem:[%s2936_s1] sm:$0xff]  ;;  %v1622_v2 = vld [vmem:[%s2936_s1 + $0x50] sm:$0xff]  ;;  %s1960_s27 = sshll.u32 %s2129_s11, 4  ;;  %s1961_s27 = int_to_ptr.vmem [resolvable:$false] %s1960_s27 }
  0xc2   : > { %v456_v25 = vpack.c.bf16 %v453_v21, %v450_v20  ;;  %v457_v26 = vpack.c.bf16 %v454_v24, %v451_v23  ;;  %s1561_s15 = sshll.u32 %s2937_s18, 7  ;;  %v428_v45 = vadd.s32 256, %v426_v44  ;;  %v427_v47 = vadd.s32 128, %v426_v44  ;;  %v1623_v20 = vld [vmem:[%s2936_s1 + $0x58] sm:$0xff]  ;;  %s1962_s19 = scalar_lea.vmem %s1961_s27, 512 }
  0xc3   : > { %460 = vrot.lane.b32.xlu1 %v458_v22, %s2121_s7  ;;  %s1562_s8 = sadd.s32 4294967168, %s1561_s15  ;;  %s2128_s15 = smov 119  }
  0xc4   : > { %464 = vrot.lane.b32.xlu0 %v456_v25, %s2121_s7  ;;  %v431_v46 = vstv %s1562_s8  ;;  %s1383_s8 = scalar_lea.sflag [#allocation5], %s2444_s13 }
  0xc5   : > { %v434_v48 = vadd.s32 %v431_v46, %v428_v45  ;;  %v432_v50 = vadd.s32 %v431_v46, %v426_v44  ;;  %v433_v53 = vadd.s32 %v431_v46, %v427_v47 }
  0xc6   : > { %p2953_p11 = scmp.ne.s32.totalorder %s2951_s28, 0 }
  0xc7   : > { %480 = vrot.lane.b32.xlu1 %v457_v26, %s2124_s22  ;;  %vm437_vm4 = vcmp.ge.s32.totalorder %v434_v48, 0  ;;  %vm440_vm5 = vcmp.lt.s32.totalorder %v434_v48, 512  ;;  %vm435_vm6 = vcmp.ge.s32.totalorder %v432_v50, 0  ;;  %vm438_vm7 = vcmp.lt.s32.totalorder %v432_v50, 512 }
  0xc8   : > { %466 = vrot.lane.b32.xlu0 %v457_v26, %s2121_s7  ;;  %vm436_vm8 = vcmp.ge.s32.totalorder %v433_v53, 0  ;;  %vm439_vm9 = vcmp.lt.s32.totalorder %v433_v53, 512  ;;  %vm2520_vm10 = vmand %vm437_vm4, %vm440_vm5  ;;  %vm803_vm4 = vcmask 23552   ;;  %vm819_vm5 = vcmask 1022976  }
  0xc9   : > { %vm2526_vm11 = vmand %vm435_vm6, %vm438_vm7  ;;  %vm1149_vm6 = vcmask 973824  }
  0xca   : > { %vm2534_vm12 = vmand %vm436_vm8, %vm439_vm9 }
  0xcb   : > { %478 = vrot.lane.b32.xlu1 %v456_v25, %s2124_s22  ;;  %vm2564_vm13 = vmpackc.low %vm2534_vm12, %vm2534_vm12 }
  0xcc   : > { %482 = vrot.lane.b32.xlu0 %v458_v22, %s2124_s22  ;;  %vm2573_vm14 = vmpackc.low %vm2526_vm11, %vm2526_vm11 }
  0xcd   : > { %vm2583_vm15 = vmpackc.low %vm2520_vm10, %vm2520_vm10 }
  0xcf   : > { %505 = vperm.xlu1 %1860, %v497_v28  }
  0xd0   : > { %500 = vperm.xlu0 %1859, %v496_v29  }
 0x135   : > { %v461_v30 = vpop.permute.xlu1 %460 }
 0x136   : > { %v465_v31 = vpop.permute.xlu0 %464 }
 0x137   : > { %v476_v36 = vsel %vm468_vm1, %v461_v30, %v465_v31 }
 0x139   : > { %v481_v33 = vpop.permute.xlu1 %480 }
 0x13a   : > { %v467_v32 = vpop.permute.xlu0 %466 }
 0x13b   : > { %v469_v34 = vsel %vm468_vm1, %v465_v31, %v467_v32  ;;  %v470_v35 = vsel %vm468_vm1, %v467_v32, %v461_v30 }
 0x13c   : > { %517 = vmatprep.subr.bf16.mxu0 %v469_v34  ;;  %1658 = vmatpush3.bf16.msra.mxu1 %v470_v35 }
 0x13d   : > { %518 = vmatpush1.bf16.msra.mxu0 %v476_v36  ;;  %1659 = vmatprep.subr.bf16.mxu1 %v2120_v7  ;;  %v479_v39 = vpop.permute.xlu1 %478 }
 0x13e   : > { %v483_v37 = vpop.permute.xlu0 %482  ;;  %519 = vmatprep.subr.bf16.mxu0 %v457_v26  ;;  %v485_v42 = vsel %vm484_vm2, %v479_v39, %v481_v33 }
 0x13f   : > { %v486_v38 = vsel %vm484_vm2, %v481_v33, %v483_v37  ;;  %v492_v40 = vsel %vm484_vm2, %v483_v37, %v479_v39  ;;  %v1567_v39 = vld [vmem:[%s2936_s1 + $0x18] sm:$0xff] }
 0x140   : > { %1660 = vmatpush3.bf16.msra.mxu1 %v458_v22 }
 0x141   : > { %520 = vmatpush1.bf16.msra.mxu0 %v456_v25  ;;  %1661 = vmatprep.subr.bf16.mxu1 %v2120_v7 }
 0x142   : > { %521 = vmatprep.subr.bf16.mxu0 %v486_v38  ;;  %v1566_v38 = vld [vmem:[%s2936_s1 + $0x10] sm:$0xff] }
 0x144   : > { %1662 = vmatpush3.bf16.msra.mxu1 %v492_v40 }
 0x145   : > { %522 = vmatpush1.bf16.msra.mxu0 %v485_v42  ;;  %1667 = vmatprep.subr.bf16.mxu1 %v2120_v7 }
 0x147   : > { %1664 = vmatmul.mubr.msk.bf16.vlgmr.msra.gmra.mrb[0].mxu1 %vm513_vm3, %v1864_v41 }
 0x148   : > { %1564 = vmatmul.mubr.msk.bf16.vlgmr.msra.gmra.mrb[0].mxu0 %vm513_vm3, %v1864_v41  ;;  %1673 = vmatprep.mubr.msk.bf16.mxu1 %vm2122_vm0, %v2120_v7 }
 0x149   : > { %715 = vmatprep.mubr.bf16.mxu0 %v2123_v27 }
 0x14e   : > { %v506_v52 = vpop.permute.xlu1 %505 }
 0x14f   : > { %v501_v49 = vpop.permute.xlu0 %500 }
 0x21a   : > { %v594_v51 = vpop.f32.mrb[0].mxu1 }
 0x21b   : > { %v551_v54 = vpop.f32.mrb[0].mxu0  ;;  %v1665_v55 = vpop.f32.mrb[1].mxu1  ;;  %v595_v56 = vadd.f32 %v594_v51, %v501_v49 }
 0x21c   : > { %v552_v57 = vadd.f32 %v551_v54, %v501_v49  ;;  %v553_v58 = vpop.f32.mrb[1].mxu0  ;;  %v597_v59 = vpop.f32.mrb[2].mxu1  ;;  %v1865_v55 = vld [vmem:[#allocation8 + $0x8] sm:$0xff]  }
 0x21d   : > { %v603_v60 = vmul.f32 0.01, %v595_v56  ;;  %v554_v61 = vadd.f32 %v553_v58, %v501_v49  ;;  %v598_v62 = vadd.f32 %v597_v59, %v506_v52  ;;  %v555_v63 = vpop.f32.mrb[2].mxu0  ;;  %v1666_v0 = vpop.f32.mrb[3].mxu1 }
 0x21e   : > { %v601_v1 = vmul.f32 0.01, %v552_v57  ;;  %v556_v3 = vadd.f32 %v555_v63, %v506_v52  ;;  %v557_v6 = vpop.f32.mrb[3].mxu0 }
 0x21f   : > { %v609_v10 = vmax.f32 %v595_v56, %v603_v60  ;;  %v602_v11 = vmul.f32 0.01, %v554_v61  ;;  %v606_v14 = vmul.f32 0.01, %v598_v62  ;;  %v558_v15 = vadd.f32 %v557_v6, %v506_v52 }
 0x220   : > { %v607_v16 = vmax.f32 %v552_v57, %v601_v1  ;;  %v604_v17 = vmul.f32 0.01, %v556_v3 }
 0x221   : > { %v608_v18 = vmax.f32 %v554_v61, %v602_v11  ;;  %v612_v19 = vmax.f32 %v598_v62, %v606_v14  ;;  %v605_v21 = vmul.f32 0.01, %v558_v15  ;;  %v621_v22 = vsel %vm2520_vm10, %v609_v10, 0.0 }
 0x222   : > { %v610_v24 = vmax.f32 %v556_v3, %v604_v17  ;;  %v619_v31 = vsel %vm2526_vm11, %v607_v16, 0.0 }
 0x223   : > { %v624_v25 = vsel %vm2520_vm10, %v612_v19, 0.0  ;;  %v1577_v26 = vpack.c.bf16 %v612_v19, %v609_v10  ;;  %v611_v28 = vmax.f32 %v558_v15, %v605_v21  ;;  %v620_v33 = vsel %vm2534_vm12, %v608_v18, 0.0 }
 0x224   : > { %v622_v29 = vsel %vm2526_vm11, %v610_v24, 0.0  ;;  %v1573_v30 = vpack.c.bf16 %v610_v24, %v607_v16  ;;  %v627_v32 = vpack.c.bf16 %v624_v25, %v621_v22 }
 0x225   : > { %v623_v34 = vsel %vm2534_vm12, %v611_v28, 0.0  ;;  %v1570_v35 = vpack.c.bf16 %v611_v28, %v608_v18  ;;  %v625_v36 = vpack.c.bf16 %v622_v29, %v619_v31 }
 0x226   : > { %v626_v37 = vpack.c.bf16 %v623_v34, %v620_v33 }
 0x227   : > { %633 = vrot.lane.b32.xlu1 %v625_v36, %s2121_s7 }
 0x228   : > { %635 = vrot.lane.b32.xlu0 %v626_v37, %s2121_s7 }
 0x22b   : > { %629 = vrot.lane.b32.xlu1 %v627_v32, %s2121_s7 }
 0x22c   : > { %647 = vrot.lane.b32.xlu0 %v626_v37, %s2124_s22 }
 0x22f   : > { %649 = vrot.lane.b32.xlu1 %v627_v32, %s2124_s22 }
 0x230   : > { %645 = vrot.lane.b32.xlu0 %v625_v36, %s2124_s22 }
 0x233   : > { %667 = vperm.xlu1 %1860, %v1566_v38  }
 0x234   : > { %672 = vperm.xlu0 %1859, %v1567_v39  }
 0x299   : > { %v634_v40 = vpop.permute.xlu1 %633 }
 0x29a   : > { %v636_v41 = vpop.permute.xlu0 %635 }
 0x29b   : > { %v637_v42 = vsel %vm468_vm1, %v634_v40, %v636_v41 }
 0x29c   : > { %683 = vmatprep.subr.bf16.mxu0 %v637_v42 }
 0x29d   : > { %v630_v43 = vpop.permute.xlu1 %629 }
 0x29e   : > { %v638_v45 = vsel %vm468_vm1, %v636_v41, %v630_v43  ;;  %v643_v46 = vsel %vm468_vm1, %v630_v43, %v634_v40  ;;  %v648_v47 = vpop.permute.xlu0 %647  ;;  %v1580_v43 = vld [vmem:[%s2936_s1 + $0x20] sm:$0xff] }
 0x29f   : > { %684 = vmatpush1.bf16.msra.mxu0 %v643_v46  ;;  %1668 = vmatpush3.bf16.msra.mxu1 %v638_v45  ;;  %v1581_v45 = vld [vmem:[%s2936_s1 + $0x28] sm:$0xff] }
 0x2a0   : > { %1571 = vmatprep.subr.msk.bf16.mxu0 %vm2564_vm13, %v1570_v35  ;;  %1669 = vmatprep.subr.bf16.mxu1 %v2120_v7 }
 0x2a1   : > { %v650_v50 = vpop.permute.xlu1 %649 }
 0x2a2   : > { %v652_v51 = vsel %vm484_vm2, %v648_v47, %v650_v50  ;;  %v646_v52 = vpop.permute.xlu0 %645 }
 0x2a3   : > { %1574 = vmatpush1.bf16.msk.msra.mxu0 %vm2573_vm14, %v1573_v30  ;;  %1670 = vmatpush3.bf16.msk.msra.mxu1 %vm2583_vm15, %v1577_v26  ;;  %v651_v53 = vsel %vm484_vm2, %v646_v52, %v648_v47  ;;  %v657_v54 = vsel %vm484_vm2, %v650_v50, %v646_v52 }
 0x2a4   : > { %687 = vmatprep.subr.bf16.mxu0 %v652_v51  ;;  %1671 = vmatprep.subr.bf16.mxu1 %v2120_v7 }
 0x2a7   : > { %688 = vmatpush1.bf16.msra.mxu0 %v651_v53  ;;  %1672 = vmatpush3.bf16.msra.mxu1 %v657_v54 }
 0x2a8   : > { %1677 = vmatprep.subr.bf16.mxu1 %v2120_v7 }
 0x2aa   : > { %1575 = vmatmul.mubr.msk.bf16.vlgmr.msra.gmra.mrb[4].mxu0 %vm513_vm3, %v1865_v55  ;;  %1674 = vmatmul.mubr.msk.bf16.vlgmr.msra.gmra.mrb[4].mxu1 %vm513_vm3, %v1865_v55 }
 0x2ab   : > { %885 = vmatprep.mubr.bf16.mxu0 %v2123_v27  ;;  %1683 = vmatprep.mubr.msk.bf16.mxu1 %vm2122_vm0, %v2120_v7 }
 0x2b2   : > { %v668_v56 = vpop.permute.xlu1 %667 }
 0x2b3   : > { %v673_v57 = vpop.permute.xlu0 %672 }
 0x37d   : > { %v717_v58 = vpop.f32.mrb[4].mxu0  ;;  %v760_v59 = vpop.f32.mrb[4].mxu1 }
 0x37e   : > { %v718_v60 = vadd.f32 %v717_v58, %v668_v56  ;;  %v761_v61 = vadd.f32 %v760_v59, %v668_v56  ;;  %v719_v62 = vpop.f32.mrb[5].mxu0  ;;  %v1675_v63 = vpop.f32.mrb[5].mxu1 }
 0x37f   : > { %v720_v0 = vadd.f32 %v719_v62, %v668_v56  ;;  %v721_v1 = vpop.f32.mrb[6].mxu0  ;;  %v763_v3 = vpop.f32.mrb[6].mxu1 }
 0x380   : > { %v2602_v6 = vadd.f32 %v718_v60, %v2467_v8  ;;  %v2605_v10 = vadd.f32 %v761_v61, %v2462_v4  ;;  %v722_v11 = vadd.f32 %v721_v1, %v673_v57  ;;  %v764_v14 = vadd.f32 %v763_v3, %v673_v57  ;;  %v723_v15 = vpop.f32.mrb[7].mxu0  ;;  %v1676_v16 = vpop.f32.mrb[7].mxu1  ;;  %v1866_v60 = vld [vmem:[#allocation8 + $0x10] sm:$0xff]  }
 0x381   : > { %v2608_v17 = vadd.f32 %v720_v0, %v2473_v12  ;;  %v724_v18 = vadd.f32 %v723_v15, %v673_v57 }
 0x382   : > { %v773_v19 = vmul.f32 0.01, %v2602_v6  ;;  %v775_v21 = vmul.f32 0.01, %v2605_v10  ;;  %v2613_v22 = vadd.f32 %v722_v11, %v2469_v9  ;;  %v2616_v8 = vadd.f32 %v764_v14, %v2464_v5 }
 0x383   : > { %v774_v4 = vmul.f32 0.01, %v2608_v17  ;;  %v2620_v24 = vadd.f32 %v724_v18, %v2475_v13 }
 0x384   : > { %v776_v25 = vmul.f32 0.01, %v2613_v22  ;;  %v778_v12 = vmul.f32 0.01, %v2616_v8  ;;  %v779_v26 = vmax.f32 %v2602_v6, %v773_v19  ;;  %v781_v5 = vmax.f32 %v2605_v10, %v775_v21 }
 0x385   : > { %v777_v28 = vmul.f32 0.01, %v2620_v24  ;;  %v780_v29 = vmax.f32 %v2608_v17, %v774_v4 }
 0x386   : > { %v782_v9 = vmax.f32 %v2613_v22, %v776_v25  ;;  %v784_v30 = vmax.f32 %v2616_v8, %v778_v12  ;;  %v785_v13 = vsel %vm2526_vm11, %v779_v26, 0.0  ;;  %v787_v41 = vsel %vm2520_vm10, %v781_v5, 0.0 }
 0x387   : > { %v783_v31 = vmax.f32 %v2620_v24, %v777_v28  ;;  %v786_v36 = vsel %vm2534_vm12, %v780_v29, 0.0 }
 0x388   : > { %v788_v32 = vsel %vm2526_vm11, %v782_v9, 0.0  ;;  %v1587_v33 = vpack.c.bf16 %v782_v9, %v779_v26  ;;  %v1591_v34 = vpack.c.bf16 %v784_v30, %v781_v5  ;;  %v790_v40 = vsel %vm2520_vm10, %v784_v30, 0.0 }
 0x389   : > { %v791_v35 = vpack.c.bf16 %v788_v32, %v785_v13  ;;  %v789_v37 = vsel %vm2534_vm12, %v783_v31, 0.0  ;;  %v1584_v38 = vpack.c.bf16 %v783_v31, %v780_v29  ;;  %v793_v42 = vpack.c.bf16 %v790_v40, %v787_v41 }
 0x38a   : > { %v792_v39 = vpack.c.bf16 %v789_v37, %v786_v36 }
 0x38b   : > { %799 = vrot.lane.b32.xlu1 %v791_v35, %s2125_s0 }
 0x38c   : > { %801 = vrot.lane.b32.xlu0 %v792_v39, %s2125_s0 }
 0x38f   : > { %795 = vrot.lane.b32.xlu1 %v793_v42, %s2125_s0 }
 0x390   : > { %815 = vrot.lane.b32.xlu0 %v792_v39, %s2126_s3 }
 0x393   : > { %817 = vrot.lane.b32.xlu1 %v793_v42, %s2126_s3 }
 0x394   : > { %813 = vrot.lane.b32.xlu0 %v791_v35, %s2126_s3 }
 0x397   : > { %837 = vperm.xlu1 %1860, %v1580_v43  }
 0x398   : > { %842 = vperm.xlu0 %1859, %v1581_v45  }
 0x3fd   : > { %v800_v46 = vpop.permute.xlu1 %799 }
 0x3fe   : > { %v802_v47 = vpop.permute.xlu0 %801 }
 0x3ff   : > { %v804_v50 = vsel %vm803_vm4, %v800_v46, %v802_v47 }
 0x400   : > { %853 = vmatprep.subr.bf16.mxu0 %v804_v50 }
 0x401   : > { %v796_v51 = vpop.permute.xlu1 %795 }
 0x402   : > { %v805_v52 = vsel %vm803_vm4, %v802_v47, %v796_v51  ;;  %v811_v53 = vsel %vm803_vm4, %v796_v51, %v800_v46  ;;  %v816_v54 = vpop.permute.xlu0 %815  ;;  %v1594_v51 = vld [vmem:[%s2936_s1 + $0x30] sm:$0xff] }
 0x403   : > { %854 = vmatpush1.bf16.msra.mxu0 %v811_v53  ;;  %1678 = vmatpush3.bf16.msra.mxu1 %v805_v52  ;;  %v1595_v52 = vld [vmem:[%s2936_s1 + $0x38] sm:$0xff] }
 0x404   : > { %1585 = vmatprep.subr.msk.bf16.mxu0 %vm2564_vm13, %v1584_v38  ;;  %1679 = vmatprep.subr.bf16.mxu1 %v2120_v7 }
 0x405   : > { %v818_v55 = vpop.permute.xlu1 %817 }
 0x406   : > { %v821_v56 = vsel %vm819_vm5, %v816_v54, %v818_v55  ;;  %v814_v57 = vpop.permute.xlu0 %813 }
 0x407   : > { %1588 = vmatpush1.bf16.msk.msra.mxu0 %vm2573_vm14, %v1587_v33  ;;  %1680 = vmatpush3.bf16.msk.msra.mxu1 %vm2583_vm15, %v1591_v34  ;;  %v820_v58 = vsel %vm819_vm5, %v814_v57, %v816_v54  ;;  %v827_v59 = vsel %vm819_vm5, %v818_v55, %v814_v57 }
 0x408   : > { %857 = vmatprep.subr.bf16.mxu0 %v821_v56  ;;  %1681 = vmatprep.subr.bf16.mxu1 %v2120_v7 }
 0x40b   : > { %858 = vmatpush1.bf16.msra.mxu0 %v820_v58  ;;  %1682 = vmatpush3.bf16.msra.mxu1 %v827_v59 }
 0x40c   : > { %1687 = vmatprep.subr.bf16.mxu1 %v2120_v7 }
 0x40e   : > { %1589 = vmatmul.mubr.msk.bf16.vlgmr.msra.gmra.mrb[8].mxu0 %vm513_vm3, %v1866_v60  ;;  %1684 = vmatmul.mubr.msk.bf16.vlgmr.msra.gmra.mrb[8].mxu1 %vm513_vm3, %v1866_v60 }
 0x40f   : > { %1045 = vmatprep.mubr.bf16.mxu0 %v2123_v27  ;;  %1693 = vmatprep.mubr.msk.bf16.mxu1 %vm2122_vm0, %v2120_v7 }
 0x416   : > { %v838_v61 = vpop.permute.xlu1 %837 }
 0x417   : > { %v843_v62 = vpop.permute.xlu0 %842 }
 0x4e1   : > { %v887_v63 = vpop.f32.mrb[8].mxu0  ;;  %v930_v0 = vpop.f32.mrb[8].mxu1 }
 0x4e2   : > { %v888_v1 = vadd.f32 %v887_v63, %v838_v61  ;;  %v931_v3 = vadd.f32 %v930_v0, %v838_v61  ;;  %v889_v11 = vpop.f32.mrb[9].mxu0  ;;  %v1685_v14 = vpop.f32.mrb[9].mxu1 }
 0x4e3   : > { %v890_v15 = vadd.f32 %v889_v11, %v838_v61  ;;  %v891_v16 = vpop.f32.mrb[10].mxu0  ;;  %v933_v18 = vpop.f32.mrb[10].mxu1 }
 0x4e4   : > { %v937_v19 = vmul.f32 0.01, %v888_v1  ;;  %v939_v21 = vmul.f32 0.01, %v931_v3  ;;  %v892_v4 = vadd.f32 %v891_v16, %v843_v62  ;;  %v934_v25 = vadd.f32 %v933_v18, %v843_v62  ;;  %v893_v12 = vpop.f32.mrb[11].mxu0  ;;  %v1686_v26 = vpop.f32.mrb[11].mxu1 }
 0x4e5   : > { %v938_v28 = vmul.f32 0.01, %v890_v15  ;;  %v894_v29 = vadd.f32 %v893_v12, %v843_v62 }
 0x4e6   : > { %v943_v9 = vmax.f32 %v888_v1, %v937_v19  ;;  %v945_v5 = vmax.f32 %v931_v3, %v939_v21  ;;  %v940_v30 = vmul.f32 0.01, %v892_v4  ;;  %v942_v31 = vmul.f32 0.01, %v934_v25  ;;  %v1867_v1 = vld [vmem:[#allocation8 + $0x18] sm:$0xff]  }
 0x4e7   : > { %v944_v13 = vmax.f32 %v890_v15, %v938_v28  ;;  %v941_v32 = vmul.f32 0.01, %v894_v29 }
 0x4e8   : > { %v946_v33 = vmax.f32 %v892_v4, %v940_v30  ;;  %v948_v34 = vmax.f32 %v934_v25, %v942_v31  ;;  %v949_v35 = vsel %vm2526_vm11, %v943_v9, 0.0  ;;  %v951_v36 = vsel %vm2520_vm10, %v945_v5, 0.0 }
 0x4e9   : > { %v950_v37 = vsel %vm2534_vm12, %v944_v13, 0.0  ;;  %v947_v38 = vmax.f32 %v894_v29, %v941_v32 }
 0x4ea   : > { %v952_v39 = vsel %vm2526_vm11, %v946_v33, 0.0  ;;  %v1601_v40 = vpack.c.bf16 %v946_v33, %v943_v9  ;;  %v954_v41 = vsel %vm2520_vm10, %v948_v34, 0.0  ;;  %v1605_v42 = vpack.c.bf16 %v948_v34, %v945_v5 }
 0x4eb   : > { %v953_v43 = vsel %vm2534_vm12, %v947_v38, 0.0  ;;  %v1598_v45 = vpack.c.bf16 %v947_v38, %v944_v13  ;;  %v955_v46 = vpack.c.bf16 %v952_v39, %v949_v35  ;;  %v957_v47 = vpack.c.bf16 %v954_v41, %v951_v36 }
 0x4ec   : > { %v956_v50 = vpack.c.bf16 %v953_v43, %v950_v37 }
 0x4ed   : > { %963 = vrot.lane.b32.xlu1 %v955_v46, %s2121_s7 }
 0x4ee   : > { %965 = vrot.lane.b32.xlu0 %v956_v50, %s2121_s7 }
 0x4f1   : > { %959 = vrot.lane.b32.xlu1 %v957_v47, %s2121_s7 }
 0x4f2   : > { %977 = vrot.lane.b32.xlu0 %v956_v50, %s2124_s22 }
 0x4f5   : > { %979 = vrot.lane.b32.xlu1 %v957_v47, %s2124_s22 }
 0x4f6   : > { %975 = vrot.lane.b32.xlu0 %v955_v46, %s2124_s22 }
 0x4f9   : > { %997 = vperm.xlu1 %1860, %v1594_v51  }
 0x4fa   : > { %1002 = vperm.xlu0 %1859, %v1595_v52  }
 0x55f   : > { %v964_v53 = vpop.permute.xlu1 %963 }
 0x560   : > { %v966_v54 = vpop.permute.xlu0 %965 }
 0x561   : > { %v967_v55 = vsel %vm468_vm1, %v964_v53, %v966_v54 }
 0x562   : > { %1013 = vmatprep.subr.bf16.mxu0 %v967_v55 }
 0x563   : > { %v960_v56 = vpop.permute.xlu1 %959 }
 0x564   : > { %v968_v57 = vsel %vm468_vm1, %v966_v54, %v960_v56  ;;  %v973_v58 = vsel %vm468_vm1, %v960_v56, %v964_v53  ;;  %v978_v59 = vpop.permute.xlu0 %977  ;;  %v1608_v56 = vld [vmem:[%s2936_s1 + $0x40] sm:$0xff] }
 0x565   : > { %1014 = vmatpush1.bf16.msra.mxu0 %v973_v58  ;;  %1688 = vmatpush3.bf16.msra.mxu1 %v968_v57  ;;  %v1609_v57 = vld [vmem:[%s2936_s1 + $0x48] sm:$0xff] }
 0x566   : > { %1599 = vmatprep.subr.msk.bf16.mxu0 %vm2564_vm13, %v1598_v45  ;;  %1689 = vmatprep.subr.bf16.mxu1 %v2120_v7 }
 0x567   : > { %v980_v60 = vpop.permute.xlu1 %979 }
 0x568   : > { %v982_v61 = vsel %vm484_vm2, %v978_v59, %v980_v60  ;;  %v976_v62 = vpop.permute.xlu0 %975 }
 0x569   : > { %1602 = vmatpush1.bf16.msk.msra.mxu0 %vm2573_vm14, %v1601_v40  ;;  %1690 = vmatpush3.bf16.msk.msra.mxu1 %vm2583_vm15, %v1605_v42  ;;  %v981_v63 = vsel %vm484_vm2, %v976_v62, %v978_v59  ;;  %v987_v0 = vsel %vm484_vm2, %v980_v60, %v976_v62 }
 0x56a   : > { %1017 = vmatprep.subr.bf16.mxu0 %v982_v61  ;;  %1691 = vmatprep.subr.bf16.mxu1 %v2120_v7 }
 0x56d   : > { %1018 = vmatpush1.bf16.msra.mxu0 %v981_v63  ;;  %1692 = vmatpush3.bf16.msra.mxu1 %v987_v0 }
 0x56e   : > { %1697 = vmatprep.subr.bf16.mxu1 %v2120_v7 }
 0x570   : > { %1603 = vmatmul.mubr.msk.bf16.vlgmr.msra.gmra.mrb[12].mxu0 %vm513_vm3, %v1867_v1  ;;  %1694 = vmatmul.mubr.msk.bf16.vlgmr.msra.gmra.mrb[12].mxu1 %vm513_vm3, %v1867_v1 }
 0x571   : > { %1215 = vmatprep.mubr.bf16.mxu0 %v2123_v27  ;;  %1703 = vmatprep.mubr.msk.bf16.mxu1 %vm2122_vm0, %v2120_v7  ;;  %vm1133_vm0 = vcmask 72704  }
 0x578   : > { %v998_v3 = vpop.permute.xlu1 %997 }
 0x579   : > { %v1003_v11 = vpop.permute.xlu0 %1002 }
 0x643   : > { %v1047_v14 = vpop.f32.mrb[12].mxu0  ;;  %v1090_v15 = vpop.f32.mrb[12].mxu1 }
 0x644   : > { %v1048_v16 = vadd.f32 %v1047_v14, %v998_v3  ;;  %v1091_v18 = vadd.f32 %v1090_v15, %v998_v3  ;;  %v1049_v19 = vpop.f32.mrb[13].mxu0  ;;  %v1695_v21 = vpop.f32.mrb[13].mxu1 }
 0x645   : > { %v1050_v4 = vadd.f32 %v1049_v19, %v998_v3  ;;  %v1051_v25 = vpop.f32.mrb[14].mxu0  ;;  %v1093_v12 = vpop.f32.mrb[14].mxu1 }
 0x646   : > { %v1097_v26 = vadd.f32 %v1048_v16, %v2602_v6  ;;  %v1099_v28 = vadd.f32 %v1091_v18, %v2605_v10  ;;  %v1052_v29 = vadd.f32 %v1051_v25, %v1003_v11  ;;  %v1094_v9 = vadd.f32 %v1093_v12, %v1003_v11  ;;  %v1053_v5 = vpop.f32.mrb[15].mxu0  ;;  %v1696_v30 = vpop.f32.mrb[15].mxu1  ;;  %v1868_v16 = vld [vmem:[#allocation8 + $0x20] sm:$0xff]  }
 0x647   : > { %v2710_v31 = vadd.f32 %v1050_v4, %v2608_v17  ;;  %v1054_v13 = vadd.f32 %v1053_v5, %v1003_v11 }
 0x648   : > { %v1103_v32 = vmul.f32 0.01, %v1097_v26  ;;  %v1105_v33 = vmul.f32 0.01, %v1099_v28  ;;  %v1100_v34 = vadd.f32 %v1052_v29, %v2613_v22  ;;  %v1102_v35 = vadd.f32 %v1094_v9, %v2616_v8 }
 0x649   : > { %v1104_v36 = vmul.f32 0.01, %v2710_v31  ;;  %v2716_v6 = vadd.f32 %v1054_v13, %v2620_v24 }
 0x64a   : > { %v1109_v10 = vmax.f32 %v1097_v26, %v1103_v32  ;;  %v1111_v37 = vmax.f32 %v1099_v28, %v1105_v33  ;;  %v1106_v38 = vmul.f32 0.01, %v1100_v34  ;;  %v1108_v39 = vmul.f32 0.01, %v1102_v35 }
 0x64b   : > { %v1107_v40 = vmul.f32 0.01, %v2716_v6  ;;  %v1110_v17 = vmax.f32 %v2710_v31, %v1104_v36 }
 0x64c   : > { %v1112_v41 = vmax.f32 %v1100_v34, %v1106_v38  ;;  %v1114_v42 = vmax.f32 %v1102_v35, %v1108_v39  ;;  %v1115_v22 = vsel %vm2526_vm11, %v1109_v10, 0.0  ;;  %v1117_v24 = vsel %vm2520_vm10, %v1111_v37, 0.0 }
 0x64d   : > { %v1113_v8 = vmax.f32 %v2716_v6, %v1107_v40  ;;  %v1116_v43 = vsel %vm2534_vm12, %v1110_v17, 0.0 }
 0x64e   : > { %v1615_v45 = vpack.c.bf16 %v1112_v41, %v1109_v10  ;;  %v1619_v46 = vpack.c.bf16 %v1114_v42, %v1111_v37  ;;  %v1118_v47 = vsel %vm2526_vm11, %v1112_v41, 0.0  ;;  %v1120_v50 = vsel %vm2520_vm10, %v1114_v42, 0.0 }
 0x64f   : > { %v1121_v51 = vpack.c.bf16 %v1118_v47, %v1115_v22  ;;  %v1119_v52 = vsel %vm2534_vm12, %v1113_v8, 0.0  ;;  %v1123_v53 = vpack.c.bf16 %v1120_v50, %v1117_v24  ;;  %v1612_v54 = vpack.c.bf16 %v1113_v8, %v1110_v17 }
 0x650   : > { %v1122_v55 = vpack.c.bf16 %v1119_v52, %v1116_v43 }
 0x651   : > { %1129 = vrot.lane.b32.xlu1 %v1121_v51, %s2127_s14 }
 0x652   : > { %1131 = vrot.lane.b32.xlu0 %v1122_v55, %s2127_s14 }
 0x655   : > { %1125 = vrot.lane.b32.xlu1 %v1123_v53, %s2127_s14  ;;  %s2952_s14 = sld [smem:[#allocation30_spill]] }
 0x656   : > { %1145 = vrot.lane.b32.xlu0 %v1122_v55, %s2128_s15 }
 0x659   : > { %1147 = vrot.lane.b32.xlu1 %v1123_v53, %s2128_s15 }
 0x65a   : > { %1143 = vrot.lane.b32.xlu0 %v1121_v51, %s2128_s15 }
 0x65d   : > { %1167 = vperm.xlu1 %1860, %v1608_v56  }
 0x65e   : > { %1172 = vperm.xlu0 %1859, %v1609_v57  }
 0x6c3   : > { %v1130_v58 = vpop.permute.xlu1 %1129 }
 0x6c4   : > { %v1132_v59 = vpop.permute.xlu0 %1131 }
 0x6c5   : > { %v1134_v60 = vsel %vm1133_vm0, %v1130_v58, %v1132_v59 }
 0x6c6   : > { %1183 = vmatprep.subr.bf16.mxu0 %v1134_v60 }
 0x6c7   : > { %v1126_v61 = vpop.permute.xlu1 %1125 }
 0x6c8   : > { %v1135_v62 = vsel %vm1133_vm0, %v1132_v59, %v1126_v61  ;;  %v1141_v63 = vsel %vm1133_vm0, %v1126_v61, %v1130_v58  ;;  %v1146_v0 = vpop.permute.xlu0 %1145 }
 0x6c9   : > { %1184 = vmatpush1.bf16.msra.mxu0 %v1141_v63  ;;  %1698 = vmatpush3.bf16.msra.mxu1 %v1135_v62  ;;  %v1869_v62 = vld [vmem:[#allocation8 + $0x28] sm:$0xff]  }
 0x6ca   : > { %1613 = vmatprep.subr.msk.bf16.mxu0 %vm2564_vm13, %v1612_v54  ;;  %1699 = vmatprep.subr.bf16.mxu1 %v2120_v7 }
 0x6cb   : > { %v1148_v1 = vpop.permute.xlu1 %1147 }
 0x6cc   : > { %v1151_v3 = vsel %vm1149_vm6, %v1146_v0, %v1148_v1  ;;  %v1144_v11 = vpop.permute.xlu0 %1143 }
 0x6cd   : > { %1616 = vmatpush1.bf16.msk.msra.mxu0 %vm2573_vm14, %v1615_v45  ;;  %1700 = vmatpush3.bf16.msk.msra.mxu1 %vm2583_vm15, %v1619_v46  ;;  %v1150_v14 = vsel %vm1149_vm6, %v1144_v11, %v1146_v0  ;;  %v1157_v15 = vsel %vm1149_vm6, %v1148_v1, %v1144_v11 }
 0x6ce   : > { %1187 = vmatprep.subr.bf16.mxu0 %v1151_v3  ;;  %1701 = vmatprep.subr.bf16.mxu1 %v2120_v7 }
 0x6d1   : > { %1188 = vmatpush1.bf16.msra.mxu0 %v1150_v14  ;;  %1702 = vmatpush3.bf16.msra.mxu1 %v1157_v15 }
 0x6d4   : > { %1617 = vmatmul.mubr.msk.bf16.vlgmr.msra.gmra.mrb[16].mxu0 %vm513_vm3, %v1868_v16  ;;  %1704 = vmatmul.mubr.msk.bf16.vlgmr.msra.gmra.mrb[16].mxu1 %vm513_vm3, %v1868_v16 }
 0x6d5   : > { %1369 = vmatprep.mubr.bf16.mxu0 %v2123_v27 }
 0x6dc   : > { %v1168_v18 = vpop.permute.xlu1 %1167 }
 0x6dd   : > { %v1173_v19 = vpop.permute.xlu0 %1172 }
 0x7a7   : > { %v1217_v21 = vpop.f32.mrb[16].mxu0  ;;  %v1260_v4 = vpop.f32.mrb[16].mxu1 }
 0x7a8   : > { %v1218_v49 = vadd.f32 %v1217_v21, %v1168_v18  ;;  %v1261_v25 = vadd.f32 %v1260_v4, %v1168_v18  ;;  %v1219_v12 = vpop.f32.mrb[17].mxu0  ;;  %v1705_v26 = vpop.f32.mrb[17].mxu1 }
 0x7a9   : > { %v1220_v7 = vadd.f32 %v1219_v12, %v1168_v18  ;;  %v1221_v28 = vpop.f32.mrb[18].mxu0  ;;  %v1263_v29 = vpop.f32.mrb[18].mxu1 }
 0x7aa   : > { %v1267_v9 = vmul.f32 0.01, %v1218_v49  ;;  %v1269_v5 = vmul.f32 0.01, %v1261_v25  ;;  %v1222_v30 = vadd.f32 %v1221_v28, %v1173_v19  ;;  %v1264_v13 = vadd.f32 %v1263_v29, %v1173_v19  ;;  %v1223_v32 = vpop.f32.mrb[19].mxu0  ;;  %v1706_v33 = vpop.f32.mrb[19].mxu1 }
 0x7ab   : > { %v1268_v34 = vmul.f32 0.01, %v1220_v7  ;;  %v1224_v35 = vadd.f32 %v1223_v32, %v1173_v19 }
 0x7ac   : > { %v1273_v27 = vmax.f32 %v1218_v49, %v1267_v9  ;;  %v1275_v36 = vmax.f32 %v1261_v25, %v1269_v5  ;;  %v1270_v10 = vmul.f32 0.01, %v1222_v30  ;;  %v1272_v37 = vmul.f32 0.01, %v1264_v13 }
 0x7ad   : > { %v1274_v38 = vmax.f32 %v1220_v7, %v1268_v34  ;;  %v1271_v39 = vmul.f32 0.01, %v1224_v35 }
 0x7ae   : > { %v1276_v40 = vmax.f32 %v1222_v30, %v1270_v10  ;;  %v1278_v17 = vmax.f32 %v1264_v13, %v1272_v37  ;;  %v1279_v41 = vsel %vm2526_vm11, %v1273_v27, 0.0  ;;  %v1281_v42 = vsel %vm2520_vm10, %v1275_v36, 0.0 }
 0x7af   : > { %v1277_v22 = vmax.f32 %v1224_v35, %v1271_v39  ;;  %v1280_v8 = vsel %vm2534_vm12, %v1274_v38, 0.0 }
 0x7b0   : > { %v1282_v43 = vsel %vm2526_vm11, %v1276_v40, 0.0  ;;  %v1629_v24 = vpack.c.bf16 %v1276_v40, %v1273_v27  ;;  %v1284_v45 = vsel %vm2520_vm10, %v1278_v17, 0.0 }
 0x7b1   : > { %v1283_v46 = vsel %vm2534_vm12, %v1277_v22, 0.0  ;;  %v1626_v47 = vpack.c.bf16 %v1277_v22, %v1274_v38  ;;  %v1285_v50 = vpack.c.bf16 %v1282_v43, %v1279_v41  ;;  %v1287_v51 = vpack.c.bf16 %v1284_v45, %v1281_v42 }
 0x7b2   : > { %v1286_v52 = vpack.c.bf16 %v1283_v46, %v1280_v8 }
 0x7b3   : > { %1293 = vrot.lane.b32.xlu1 %v1285_v50, %s2121_s7 }
 0x7b4   : > { %1295 = vrot.lane.b32.xlu0 %v1286_v52, %s2121_s7 }
 0x7b7   : > { %1289 = vrot.lane.b32.xlu1 %v1287_v51, %s2121_s7  ;;  %s2950_s7 = sld [smem:[#allocation17_spill]] }
 0x7b8   : > { %1305 = vrot.lane.b32.xlu0 %v1286_v52, %s2124_s22 }
 0x7bb   : > { %1307 = vrot.lane.b32.xlu1 %v1287_v51, %s2124_s22 }
 0x7bc   : > { %1303 = vrot.lane.b32.xlu0 %v1285_v50, %s2124_s22  ;;  %s1557_s22 = sshll.u32 %s2444_s13, 4 }
 0x7bd   : > { %s1633_s16 = sshll.u32 %s2950_s7, 3  ;;  %s391_s5 = scalar_lea.vmem [#allocation9], %s1557_s22 }
 0x7be   : > { %s1394_s12 = sadd.s32 %s2937_s18, %s1633_s16  ;;  %s1397_s9 = sshll.u32 %s391_s5, 4  ;;  %s2787_s9 = int_to_ptr.vmem [resolvable:$true] %s1397_s9 }
 0x7bf   : > { %1321 = vperm.xlu1 %1860, %v1622_v2   ;;  %s1634_s20 = sshll.u32 %s1394_s12, 7  ;;  %s1956_s4 = scalar_lea.vmem %s2787_s9, 256 }
 0x7c0   : > { %1326 = vperm.xlu0 %1859, %v1623_v20   ;;  %s2792_s15 = scalar_lea.hbm %s2952_s14, %s1634_s20  ;;  %p1957_p1 = scmp.ne.s32.totalorder %s2787_s9, %s1956_s4 }
 0x7c1   : > { %p1963_p10 = scmp.lt.s32.totalorder %s2787_s9, %s1961_s27  ;;  %p1964_p6 = scmp.lt.s32.totalorder %s1962_s19, %s1956_s4 }
 0x7c2   : > { %p1958_p9 = pnand %p1957_p1, %p2953_p11 }
 0x7c3   : > { %p1965_p7 = por %p1964_p6, %p1963_p10 }
 0x7c4   : > { %p1959_p3 = pneg %p1958_p9 }
 0x7c6   : > { %p1966_p8 = pnand %p1965_p7, %p1959_p3 }
 0x825   : > { %v1294_v23 = vpop.permute.xlu1 %1293 }
 0x826   : > { %v1296_v53 = vpop.permute.xlu0 %1295 }
 0x827   : > { %v1297_v54 = vsel %vm468_vm1, %v1294_v23, %v1296_v53 }
 0x828   : > { %1337 = vmatprep.subr.bf16.mxu0 %v1297_v54 }
 0x829   : > { %v1290_v55 = vpop.permute.xlu1 %1289 }
 0x82a   : > { %v1301_v56 = vsel %vm468_vm1, %v1290_v55, %v1294_v23  ;;  %v1306_v57 = vpop.permute.xlu0 %1305 }
 0x82b   : > { %1338 = vmatpush1.bf16.msra.mxu0 %v1301_v56 }
 0x82c   : > { %1627 = vmatprep.subr.msk.bf16.mxu0 %vm2564_vm13, %v1626_v47 }
 0x82d   : > { %v1308_v58 = vpop.permute.xlu1 %1307 }
 0x82e   : > { %v1310_v59 = vsel %vm484_vm2, %v1306_v57, %v1308_v58  ;;  %v1304_v60 = vpop.permute.xlu0 %1303 }
 0x82f   : > { %1630 = vmatpush1.bf16.msk.msra.mxu0 %vm2573_vm14, %v1629_v24  ;;  %v1309_v61 = vsel %vm484_vm2, %v1304_v60, %v1306_v57 }
 0x830   : > { %1341 = vmatprep.subr.bf16.mxu0 %v1310_v59 }
 0x833   : > { %1342 = vmatpush1.bf16.msra.mxu0 %v1309_v61 }
 0x836   : > { %1631 = vmatmul.mubr.msk.bf16.vlgmr.msra.gmra.mrb[20].mxu0 %vm513_vm3, %v1869_v62 }
 0x83e   : > { %v1322_v44 = vpop.permute.xlu1 %1321 }
 0x83f   : > { %v1327_v3 = vpop.permute.xlu0 %1326 }
 0x909   : > { %v1371_v63 = vpop.f32.mrb[20].mxu0 }
 0x90a   : > { %v1372_v0 = vpop.f32.mrb[21].mxu0 }
 0x90b   : > { %v1373_v1 = vadd.f32 %v1372_v0, %v1322_v44  ;;  %v1374_v48 = vpop.f32.mrb[22].mxu0 }
 0x90c   : > { %v1375_v11 = vpop.f32.mrb[23].mxu0 }
 0x90d   : > { %v1378_v14 = vadd.f32 %v1373_v1, %v2710_v31  ;;  %v1376_v15 = vadd.f32 %v1375_v11, %v1327_v3 }
 0x90f   : > { %1380 = vst [vmem:[%s391_s5] sm:$0xff] %v1378_v14  ;;  %v1379_v16 = vadd.f32 %v1376_v15, %v2716_v6 }
 0x911   : > { %1381 = vst [vmem:[%s391_s5 + $0x8] sm:$0xff] %v1379_v16 }
 0x912   : > { %1969 = shalt.err (!%p1966_p8)
}
 0x913   : > { %s1970_s0 = scalar_lea.hbm %s2792_s15, 256  ;;  %s1974_s7 = scalar_lea.hbm %s2952_s14, 2048 }
 0x914   : > { %p1971_p0 = scmp.ne.s32.totalorder %s2792_s15, %s1970_s0  ;;  %p1975_p4 = scmp.lt.u32.totalorder %s2792_s15, %s2952_s14 }
 0x915   : > { %p1976_p2 = scmp.lt.u32.totalorder %s1974_s7, %s1970_s0  ;;  %p1978_p1 = scmp.lt.u32.totalorder %s1970_s0, %s2792_s15 }
 0x916   : > { %p1972_p13 = pnand %p1971_p0, %p2953_p11 }
 0x917   : > { %p1977_p12 = por %p1976_p2, %p1975_p4 }
 0x918   : > { %p1973_p5 = pneg %p1972_p13 }
 0x919   : > { %p1979_p9 = por %p1978_p1, %p1977_p12 }
 0x91b   : > { %p1980_p3 = pnand %p1979_p9, %p1973_p5 }
 0x91d   : > { %1983 = shalt.err (!%p1980_p3)
}
 0x91e   : > { %s2130_s12 = smov 128   ;;  %s2131_s5 = smov 512  }
 0x91f   : > { %s2132_s20 = smov 8  }
 0x920   : > { %1716 = dma.vmem_to_hbm [thread:$0]  (%p2953_p11), %s2787_s9, 256, %s2792_s15, %s1383_s8, %s2130_s12, %s2131_s5, %s2132_s20  }
 0x921 PF: > { %s2954_s18 = sld [smem:[#allocation14_spill]]  ;;  %s2955_s17 = sld [smem:[#allocation25_spill]] }
 0x922   : > { %p1728_p10 = scmp.ge.s32.totalorder %s2110_s6, 2 }
 0x927   : > { %s1412_s4 = sand.u32 1, %s2954_s18   ;;  %p2956_p6 = scmp.ne.s32.totalorder %s2955_s17, 0 }
 0x928   : > { %s1413_s11 = scalar_lea.sflag [#allocation5], %s1412_s4 }
 0x929   : > { %p1723_p7 = pnand %p1728_p10, %p2956_p6 }
 0x92b   : > { %2053 = dma.done.wait (!%p1723_p7), %s1413_s11, 256  }
 0x92c   : > { %2055 = vsyncadd (!%p1723_p7), %s1413_s11, 4294967040  ;;  %s24_s6 = sadd.s32 1, %s2110_s6   ;;  %s2958_s19 = sld [smem:[#allocation15_spill]] }
 0x92d   : > { %p2824_p8 = scmp.ge.s32.totalorder %s24_s6, 10   ;;  %s2959_s13 = sld [smem:[#allocation22_spill]] }
 0x92e   : > { %s2960_s9 = sld [smem:[#allocation21_spill]]  ;;  %s2961_s28 = sld [smem:[#allocation20_spill]] }
 0x92f   : > { %s2962_s15 = sld [smem:[#allocation18_spill]]  ;;  %s2963_s8 = sld [smem:[#allocation19_spill]] }
 0x930   : > { %s2965_s18 = smov %s2086_s25  ;;  %s2966_s20 = smov %s2070_s21 }
 0x931   : > { %s2968_s22 = smov %s2078_s23  ;;  %s2969_s23 = smov %s2082_s24 }
 0x932   : > { %s2971_s25 = smov %s2090_s26  ;;  %s2973_s27 = smov %s2102_s29 }
 0x933   : > { %s2967_s21 = smov %s2959_s13  ;;  %23 = sbr.rel (!%p2824_p8) target bundleno = 18 (0x12), region = 161 }
 0x934   : > { %s2970_s24 = smov %s2960_s9  ;;  %s2972_s26 = smov %s2961_s28 }
 0x935   : > { %s2974_s28 = smov %s2106_s30  ;;  %s2975_s29 = smov %s2962_s15 }
 0x936   : > { %s2976_s30 = smov %s2963_s8 }
 0x93a   :  { %1418 = vsyncpa [#allocation4], 1 }
 0x93b   :  { %1420 = vsyncpa [#allocation4 + $0x1], 1 }
 0x93c   :  { %1421 = vsyncpa [#allocation7], 1 }
 0x93d   :  { %1423 = vsyncpa [#allocation7 + $0x1], 1 }
 0x93e   :  { %1424 = vsyncpa [#allocation5], 1 }
 0x93f   :  { %1426 = vsyncpa [#allocation5 + $0x1], 1 }

</bundles_post_ra>
